<compile_context>
chip_gen: v7x
topology: tpu7x:2x2x1
jax: 0.10.0
libtpu: 0.0.40
codegen_flags: <defaults>
</compile_context>

<pallas_src>
import functools

import jax
import jax.numpy as jnp
from jax.experimental import pallas as pl
from jax.experimental.pallas import tpu as pltpu


def _mish(x):
    # mish(x) = x * tanh(softplus(x)) = x * (t^2 + 2t) / (t^2 + 2t + 2), t = e^x
    # Single transcendental (EUP); the clamp keeps t^2 finite (ratio is
    # exactly 1.0 there in f32, so no jnp.where is needed).
    t = jnp.exp(jnp.minimum(x, 30.0))
    p = t * (t + 2.0)
    return x * (p / (p + 2.0))


def _fused_kernel(x_ref, w0_ref, w1_ref, w2_ref, w3_ref,
                  sb0_ref, sb1_ref, sb2_ref, sb3_ref,
                  out_ref, pad_a, pad_b, pad_c, *, D, H, W, Cin, Cm):
    """One batch element: layer0..layer3 fully in VMEM.

    x_ref:       [1, D, H, W*Cin]            (channels-last fused on lanes)
    wL_ref:      [9, W*CinL, W*Cm]           block-Toeplitz weights, kw taps AND
                                             the zero W-boundary baked in
                                             (indexed by kd*3+kh)
    sbL_ref:     [2, W*Cm]                   row 0 = scale, row 1 = bias (tiled over W)
    out_ref:     [1, D*H, W*Cm]              lane-dense output
    pad_a:       [D+2, H+2, W*Cin]  f32      D/H-padded layer-0 input
    pad_b/pad_c: [D+2, H+2, W*Cm]   f32      D/H-padded intermediate activations
    """

    def zero_halos(pad):
        # Only the D/H halo planes/rows; interiors are fully overwritten each
        # grid step.  Done every step (NOT gated on program_id) so it stays
        # correct when the batch grid is partitioned across TensorCores.
        dP, hP, L = pad.shape
        pad[0:1, :, :] = jnp.zeros((1, hP, L), jnp.float32)
        pad[dP - 1:dP, :, :] = jnp.zeros((1, hP, L), jnp.float32)
        pad[1:dP - 1, 0:1, :] = jnp.zeros((dP - 2, 1, L), jnp.float32)
        pad[1:dP - 1, hP - 1:hP, :] = jnp.zeros((dP - 2, 1, L), jnp.float32)

    zero_halos(pad_a)
    zero_halos(pad_b)
    zero_halos(pad_c)

    # Scatter the input block into the interior (lane offset 0: aligned store).
    pad_a[1:D + 1, 1:H + 1, :] = x_ref[0].astype(jnp.float32)

    def conv_bn(src_pad, w_ref, sb_ref, cin, mish):
        # 9 shifted-slab matmuls; kw and the W-boundary are folded into K by
        # the block-Toeplitz weight, so K is exactly W*cin (one K-tile when
        # W*cin == 128) and the accumulator is lane-dense.
        k_dim = W * cin
        acc = jnp.zeros((D * H, W * Cm), jnp.float32)
        for kh in range(3):
            # kh sublane shift hoisted: paid 3x per layer instead of 9x.
            shifted = src_pad[:, kh:kh + H, :]               # [D+2, H, W*cin]
            for kd in range(3):
                # Leading-dim slice is tile-granular (free); reshape merges
                # D,H (H is a multiple of 8 -> no relayout).
                slab = shifted[kd:kd + D].reshape(D * H, k_dim)
                acc = acc + jnp.dot(slab, w_ref[kd * 3 + kh],
                                    preferred_element_type=jnp.float32)
        acc = acc * sb_ref[0:1, :] + sb_ref[1:2, :]          # folded eval-mode BN
        if mish:
            acc = _mish(acc)
        return acc                                           # [D*H, W*Cm]

    # dres0: convbn+Mish, convbn+Mish
    y0 = conv_bn(pad_a, w0_ref, sb0_ref, Cin, mish=True)
    pad_b[1:D + 1, 1:H + 1, :] = y0.reshape(D, H, W * Cm)
    y1 = conv_bn(pad_b, w1_ref, sb1_ref, Cm, mish=True)
    pad_c[1:D + 1, 1:H + 1, :] = y1.reshape(D, H, W * Cm)

    # dres1: convbn+Mish, convbn (no act); then residual add of dres0 output.
    y2 = conv_bn(pad_c, w2_ref, sb2_ref, Cm, mish=True)
    pad_b[1:D + 1, 1:H + 1, :] = y2.reshape(D, H, W * Cm)
    y3 = conv_bn(pad_b, w3_ref, sb3_ref, Cm, mish=False)

    # Residual: use y1 directly (aligned value / aligned VMEM spill) instead
    # of re-reading pad_c at a sublane/lane offset.
    out_ref[0] = (y3 + y1).astype(out_ref.dtype)


def _toeplitz_weight(w, W):
    """[3,3,3,Cin,Cout] -> [9, W*Cin, W*Cout] block-Toeplitz.

    kw taps AND the zero W-boundary (padding=1 along W) are folded into the
    K axis: target input index (wo+kw-1) that falls outside [0, W) simply has
    no matching row, so boundary columns are handled with no physical W pad.
    """
    _, _, _, cin, cout = w.shape
    r = jnp.arange(W * cin)
    wo = jnp.arange(W)
    kw = jnp.arange(3)
    ci = jnp.arange(cin)
    # tgt < 0 or tgt >= W*cin never matches r -> out-of-range taps drop out.
    tgt = (wo[:, None, None] + kw[None, :, None] - 1) * cin + ci[None, None, :]  # [W,3,cin]
    mask = (r[:, None, None, None] == tgt[None]).astype(w.dtype)                 # [W*cin,W,3,cin]
    big = jnp.einsum('rwkc,dhkco->dhrwo', mask, w)                               # [3,3,W*cin,W,cout]
    return big.reshape(9, W * cin, W * cout)


def _sb_rows(scale, bias, W):
    """Per-channel scale/bias tiled over W -> [2, W*Cout] (matches lane layout)."""
    return jnp.stack([jnp.tile(scale, W), jnp.tile(bias, W)]).astype(jnp.float32)


def init_cost_volume_forward(volume, params):
    """volume: [N, Cin, D, H, W] (PyTorch NCDHW).  Returns [N, Cmid, D, H, W]."""
    N, Cin, D, H, W = volume.shape
    Cm = params[0][0].shape[-1]

    # Channels-last, with W and C fused onto the lane axis (lane-dense).
    x = jnp.transpose(volume, (0, 2, 3, 4, 1)).reshape(N, D, H, W * Cin)

    wts = [_toeplitz_weight(w, W) for (w, _, _) in params]
    sbs = [_sb_rows(s, b, W) for (_, s, b) in params]

    kernel = functools.partial(_fused_kernel, D=D, H=H, W=W, Cin=Cin, Cm=Cm)

    # Grid-invariant weights / scale-bias: whole-array VMEM operands (no
    # index_map -> resident once, not double-buffered across grid steps).
    in_specs = [pl.BlockSpec((1, D, H, W * Cin), lambda n: (n, 0, 0, 0))]
    in_specs += [pl.BlockSpec(memory_space=pltpu.MemorySpace.VMEM)
                 for _ in range(len(wts) + len(sbs))]

    out = pl.pallas_call(
        kernel,
        out_shape=jax.ShapeDtypeStruct((N, D * H, W * Cm), volume.dtype),
        grid=(N,),
        in_specs=in_specs,
        out_specs=pl.BlockSpec((1, D * H, W * Cm), lambda n: (n, 0, 0)),
        scratch_shapes=[
            pltpu.VMEM((D + 2, H + 2, W * Cin), jnp.float32),
            pltpu.VMEM((D + 2, H + 2, W * Cm), jnp.float32),
            pltpu.VMEM((D + 2, H + 2, W * Cm), jnp.float32),
        ],
        compiler_params=pltpu.CompilerParams(
            dimension_semantics=("parallel",),
            vmem_limit_bytes=32 * 1024 * 1024),
    )(x, *wts, *sbs)

    return jnp.transpose(out.reshape(N, D, H, W, Cm), (0, 4, 1, 2, 3))


def init_params(key, in_channels, mid_channels):
    """Deterministic synthetic parameters for the 4 convbn_3d layers."""
    chans = [(in_channels, mid_channels), (mid_channels, mid_channels),
             (mid_channels, mid_channels), (mid_channels, mid_channels)]
    params = []
    for i, (ci, co) in enumerate(chans):
        kw, kg, kb, km, kv = jax.random.split(jax.random.fold_in(key, i), 5)
        fan_in = ci * 27
        w = jax.random.normal(kw, (3, 3, 3, ci, co), jnp.float32) * (2.0 / fan_in) ** 0.5
        gamma = 1.0 + 0.1 * jax.random.normal(kg, (co,), jnp.float32)
        beta = 0.1 * jax.random.normal(kb, (co,), jnp.float32)
        mean = 0.1 * jax.random.normal(km, (co,), jnp.float32)
        var = jax.random.uniform(kv, (co,), jnp.float32, 0.5, 1.5)
        eps = 1e-5
        scale = gamma / jnp.sqrt(var + eps)
        bias = beta - mean * scale
        params.append((w, scale, bias))
    return params


# ---------------- pure-JAX reference (for correctness check) ----------------
def _ref_mish(x):
    return x * jnp.tanh(jax.nn.softplus(x))


def _ref_conv_bn(x, w, scale, bias, *, mish, residual=None):
    y = jax.lax.conv_general_dilated(
        x, w, window_strides=(1, 1, 1), padding=[(1, 1), (1, 1), (1, 1)],
        dimension_numbers=('NDHWC', 'DHWIO', 'NDHWC'),
        precision=jax.lax.Precision.HIGHEST)
    y = y * scale + bias
    if mish:
        y = _ref_mish(y)
    if residual is not None:
        y = y + residual
    return y


def _ref_forward(volume, params):
    x = jnp.transpose(volume, (0, 2, 3, 4, 1))
    (w0, s0, b0), (w1, s1, b1), (w2, s2, b2), (w3, s3, b3) = params
    out = _ref_conv_bn(x, w0, s0, b0, mish=True)
    out = _ref_conv_bn(out, w1, s1, b1, mish=True)
    t = _ref_conv_bn(out, w2, s2, b2, mish=True)
    out = _ref_conv_bn(t, w3, s3, b3, mish=False, residual=out)
    return jnp.transpose(out, (0, 4, 1, 2, 3))


if __name__ == "__main__":
    key = jax.random.PRNGKey(0)
    kp, kx = jax.random.split(key)

    in_channels, mid_channels = 4, 8
    N, D, H, W = 2, 8, 16, 16

    params = init_params(kp, in_channels, mid_channels)
    volume = jax.random.normal(kx, (N, in_channels, D, H, W), jnp.float32)

    out = init_cost_volume_forward(volume, params)
    out = jax.block_until_ready(out)

    assert out.shape == (N, mid_channels, D, H, W), out.shape

    ref = jax.block_until_ready(_ref_forward(volume, params))
    max_err = float(jnp.max(jnp.abs(out - ref)))
    assert max_err < 5e-3, f"mismatch vs reference: max abs err {max_err}"

    print("KERNEL_OK")
</pallas_src>

<mosaic_0001>
module attributes {stable_mosaic.version = 11 : i64} {
  func.func @_fused_kernel(%arg0: i32, %arg1: memref<1x8x16x64xf32, #tpu.memory_space<vmem>>, %arg2: memref<9x64x128xf32, #tpu.memory_space<vmem>>, %arg3: memref<9x128x128xf32, #tpu.memory_space<vmem>>, %arg4: memref<9x128x128xf32, #tpu.memory_space<vmem>>, %arg5: memref<9x128x128xf32, #tpu.memory_space<vmem>>, %arg6: memref<2x128xf32, #tpu.memory_space<vmem>>, %arg7: memref<2x128xf32, #tpu.memory_space<vmem>>, %arg8: memref<2x128xf32, #tpu.memory_space<vmem>>, %arg9: memref<2x128xf32, #tpu.memory_space<vmem>>, %arg10: memref<1x128x128xf32, #tpu.memory_space<vmem>>, %arg11: memref<10x18x64xf32, #tpu.memory_space<vmem>>, %arg12: memref<10x18x128xf32, #tpu.memory_space<vmem>>, %arg13: memref<10x18x128xf32, #tpu.memory_space<vmem>>) attributes {dimension_semantics = [#tpu.dimension_semantics<parallel>], iteration_bounds = array<i64: 2>, scalar_prefetch = 0 : i64, scratch_operands = 3 : i64, tpu.core_type = #tpu.core_type<tc>, window_params = [{transform_indices = @transform_0, window_bounds = array<i64: 1, 8, 16, 64>}, {pipeline_mode = #tpu.pipeline_mode<synchronous>, transform_indices = @transform_1, window_bounds = array<i64: 9, 64, 128>}, {pipeline_mode = #tpu.pipeline_mode<synchronous>, transform_indices = @transform_2, window_bounds = array<i64: 9, 128, 128>}, {pipeline_mode = #tpu.pipeline_mode<synchronous>, transform_indices = @transform_3, window_bounds = array<i64: 9, 128, 128>}, {pipeline_mode = #tpu.pipeline_mode<synchronous>, transform_indices = @transform_4, window_bounds = array<i64: 9, 128, 128>}, {pipeline_mode = #tpu.pipeline_mode<synchronous>, transform_indices = @transform_5, window_bounds = array<i64: 2, 128>}, {pipeline_mode = #tpu.pipeline_mode<synchronous>, transform_indices = @transform_6, window_bounds = array<i64: 2, 128>}, {pipeline_mode = #tpu.pipeline_mode<synchronous>, transform_indices = @transform_7, window_bounds = array<i64: 2, 128>}, {pipeline_mode = #tpu.pipeline_mode<synchronous>, transform_indices = @transform_8, window_bounds = array<i64: 2, 128>}, {transform_indices = @transform_9, window_bounds = array<i64: 1, 128, 128>}]} {
    %cst = arith.constant 0.000000e+00 : f32
    %0 = vector.broadcast %cst : f32 to vector<1x18x64xf32>
    %c0 = arith.constant 0 : index
    %c0_0 = arith.constant 0 : index
    %c0_1 = arith.constant 0 : index
    %1 = vector.load %arg11[%c0, %c0_0, %c0_1] : memref<10x18x64xf32, #tpu.memory_space<vmem>>, vector<1x18x64xf32>
    tpu.vector_store %arg11[%c0, %c0_0, %c0_1], %0 {strides = array<i32>} : memref<10x18x64xf32, #tpu.memory_space<vmem>>, vector<1x18x64xf32>,
    %cst_2 = arith.constant 0.000000e+00 : f32
    %2 = vector.broadcast %cst_2 : f32 to vector<1x18x64xf32>
    %c9 = arith.constant 9 : index
    %c0_3 = arith.constant 0 : index
    %c0_4 = arith.constant 0 : index
    %3 = vector.load %arg11[%c9, %c0_3, %c0_4] : memref<10x18x64xf32, #tpu.memory_space<vmem>>, vector<1x18x64xf32>
    tpu.vector_store %arg11[%c9, %c0_3, %c0_4], %2 {strides = array<i32>} : memref<10x18x64xf32, #tpu.memory_space<vmem>>, vector<1x18x64xf32>,
    %cst_5 = arith.constant 0.000000e+00 : f32
    %4 = vector.broadcast %cst_5 : f32 to vector<8x1x64xf32>
    %c1 = arith.constant 1 : index
    %c0_6 = arith.constant 0 : index
    %c0_7 = arith.constant 0 : index
    %5 = vector.load %arg11[%c1, %c0_6, %c0_7] : memref<10x18x64xf32, #tpu.memory_space<vmem>>, vector<8x1x64xf32>
    tpu.vector_store %arg11[%c1, %c0_6, %c0_7], %4 {strides = array<i32>} : memref<10x18x64xf32, #tpu.memory_space<vmem>>, vector<8x1x64xf32>,
    %cst_8 = arith.constant 0.000000e+00 : f32
    %6 = vector.broadcast %cst_8 : f32 to vector<8x1x64xf32>
    %c1_9 = arith.constant 1 : index
    %c17 = arith.constant 17 : index
    %c0_10 = arith.constant 0 : index
    %7 = vector.load %arg11[%c1_9, %c17, %c0_10] : memref<10x18x64xf32, #tpu.memory_space<vmem>>, vector<8x1x64xf32>
    tpu.vector_store %arg11[%c1_9, %c17, %c0_10], %6 {strides = array<i32>} : memref<10x18x64xf32, #tpu.memory_space<vmem>>, vector<8x1x64xf32>,
    %cst_11 = arith.constant 0.000000e+00 : f32
    %8 = vector.broadcast %cst_11 : f32 to vector<1x18x128xf32>
    %c0_12 = arith.constant 0 : index
    %c0_13 = arith.constant 0 : index
    %c0_14 = arith.constant 0 : index
    %9 = vector.load %arg12[%c0_12, %c0_13, %c0_14] : memref<10x18x128xf32, #tpu.memory_space<vmem>>, vector<1x18x128xf32>
    tpu.vector_store %arg12[%c0_12, %c0_13, %c0_14], %8 {strides = array<i32>} : memref<10x18x128xf32, #tpu.memory_space<vmem>>, vector<1x18x128xf32>,
    %cst_15 = arith.constant 0.000000e+00 : f32
    %10 = vector.broadcast %cst_15 : f32 to vector<1x18x128xf32>
    %c9_16 = arith.constant 9 : index
    %c0_17 = arith.constant 0 : index
    %c0_18 = arith.constant 0 : index
    %11 = vector.load %arg12[%c9_16, %c0_17, %c0_18] : memref<10x18x128xf32, #tpu.memory_space<vmem>>, vector<1x18x128xf32>
    tpu.vector_store %arg12[%c9_16, %c0_17, %c0_18], %10 {strides = array<i32>} : memref<10x18x128xf32, #tpu.memory_space<vmem>>, vector<1x18x128xf32>,
    %cst_19 = arith.constant 0.000000e+00 : f32
    %12 = vector.broadcast %cst_19 : f32 to vector<8x1x128xf32>
    %c1_20 = arith.constant 1 : index
    %c0_21 = arith.constant 0 : index
    %c0_22 = arith.constant 0 : index
    %13 = vector.load %arg12[%c1_20, %c0_21, %c0_22] : memref<10x18x128xf32, #tpu.memory_space<vmem>>, vector<8x1x128xf32>
    tpu.vector_store %arg12[%c1_20, %c0_21, %c0_22], %12 {strides = array<i32>} : memref<10x18x128xf32, #tpu.memory_space<vmem>>, vector<8x1x128xf32>,
    %cst_23 = arith.constant 0.000000e+00 : f32
    %14 = vector.broadcast %cst_23 : f32 to vector<8x1x128xf32>
    %c1_24 = arith.constant 1 : index
    %c17_25 = arith.constant 17 : index
    %c0_26 = arith.constant 0 : index
    %15 = vector.load %arg12[%c1_24, %c17_25, %c0_26] : memref<10x18x128xf32, #tpu.memory_space<vmem>>, vector<8x1x128xf32>
    tpu.vector_store %arg12[%c1_24, %c17_25, %c0_26], %14 {strides = array<i32>} : memref<10x18x128xf32, #tpu.memory_space<vmem>>, vector<8x1x128xf32>,
    %cst_27 = arith.constant 0.000000e+00 : f32
    %16 = vector.broadcast %cst_27 : f32 to vector<1x18x128xf32>
    %c0_28 = arith.constant 0 : index
    %c0_29 = arith.constant 0 : index
    %c0_30 = arith.constant 0 : index
    %17 = vector.load %arg13[%c0_28, %c0_29, %c0_30] : memref<10x18x128xf32, #tpu.memory_space<vmem>>, vector<1x18x128xf32>
    tpu.vector_store %arg13[%c0_28, %c0_29, %c0_30], %16 {strides = array<i32>} : memref<10x18x128xf32, #tpu.memory_space<vmem>>, vector<1x18x128xf32>,
    %cst_31 = arith.constant 0.000000e+00 : f32
    %18 = vector.broadcast %cst_31 : f32 to vector<1x18x128xf32>
    %c9_32 = arith.constant 9 : index
    %c0_33 = arith.constant 0 : index
    %c0_34 = arith.constant 0 : index
    %19 = vector.load %arg13[%c9_32, %c0_33, %c0_34] : memref<10x18x128xf32, #tpu.memory_space<vmem>>, vector<1x18x128xf32>
    tpu.vector_store %arg13[%c9_32, %c0_33, %c0_34], %18 {strides = array<i32>} : memref<10x18x128xf32, #tpu.memory_space<vmem>>, vector<1x18x128xf32>,
    %cst_35 = arith.constant 0.000000e+00 : f32
    %20 = vector.broadcast %cst_35 : f32 to vector<8x1x128xf32>
    %c1_36 = arith.constant 1 : index
    %c0_37 = arith.constant 0 : index
    %c0_38 = arith.constant 0 : index
    %21 = vector.load %arg13[%c1_36, %c0_37, %c0_38] : memref<10x18x128xf32, #tpu.memory_space<vmem>>, vector<8x1x128xf32>
    tpu.vector_store %arg13[%c1_36, %c0_37, %c0_38], %20 {strides = array<i32>} : memref<10x18x128xf32, #tpu.memory_space<vmem>>, vector<8x1x128xf32>,
    %cst_39 = arith.constant 0.000000e+00 : f32
    %22 = vector.broadcast %cst_39 : f32 to vector<8x1x128xf32>
    %c1_40 = arith.constant 1 : index
    %c17_41 = arith.constant 17 : index
    %c0_42 = arith.constant 0 : index
    %23 = vector.load %arg13[%c1_40, %c17_41, %c0_42] : memref<10x18x128xf32, #tpu.memory_space<vmem>>, vector<8x1x128xf32>
    tpu.vector_store %arg13[%c1_40, %c17_41, %c0_42], %22 {strides = array<i32>} : memref<10x18x128xf32, #tpu.memory_space<vmem>>, vector<8x1x128xf32>,
    %c0_43 = arith.constant 0 : index
    %c0_44 = arith.constant 0 : index
    %c0_45 = arith.constant 0 : index
    %c0_46 = arith.constant 0 : index
    %24 = vector.load %arg1[%c0_43, %c0_44, %c0_45, %c0_46] : memref<1x8x16x64xf32, #tpu.memory_space<vmem>>, vector<1x8x16x64xf32>
    %25 = vector.shape_cast %24 : vector<1x8x16x64xf32> to vector<8x16x64xf32>
    %c1_47 = arith.constant 1 : index
    %c1_48 = arith.constant 1 : index
    %c0_49 = arith.constant 0 : index
    %26 = vector.load %arg11[%c1_47, %c1_48, %c0_49] : memref<10x18x64xf32, #tpu.memory_space<vmem>>, vector<8x16x64xf32>
    tpu.vector_store %arg11[%c1_47, %c1_48, %c0_49], %25 {strides = array<i32>} : memref<10x18x64xf32, #tpu.memory_space<vmem>>, vector<8x16x64xf32>,
    %cst_50 = arith.constant 0.000000e+00 : f32
    %27 = vector.broadcast %cst_50 : f32 to vector<128x128xf32>
    %c0_51 = arith.constant 0 : index
    %c0_52 = arith.constant 0 : index
    %c0_53 = arith.constant 0 : index
    %28 = vector.load %arg11[%c0_51, %c0_52, %c0_53] : memref<10x18x64xf32, #tpu.memory_space<vmem>>, vector<10x16x64xf32>
    %29 = vector.extract_strided_slice %28 {offsets = [0, 0, 0], sizes = [8, 16, 64], strides = [1, 1, 1]} : vector<10x16x64xf32> to vector<8x16x64xf32>
    %30 = vector.shape_cast %29 : vector<8x16x64xf32> to vector<128x64xf32>
    %c0_54 = arith.constant 0 : index
    %c0_55 = arith.constant 0 : index
    %c0_56 = arith.constant 0 : index
    %31 = vector.load %arg2[%c0_54, %c0_55, %c0_56] : memref<9x64x128xf32, #tpu.memory_space<vmem>>, vector<1x64x128xf32>
    %32 = vector.shape_cast %31 : vector<1x64x128xf32> to vector<64x128xf32>
    %cst_57 = arith.constant dense<0.000000e+00> : vector<128x128xf32>
    %33 = tpu.matmul %30, %32, %cst_57 {dimension_numbers = #tpu.dot_dimension_numbers<[1], [0], [0], [1], [0, 0, 1, 1], [], []>} : vector<128x64xf32>, vector<64x128xf32>, vector<128x128xf32> -> vector<128x128xf32>
    %34 = arith.addf %27, %33 : vector<128x128xf32>
    %35 = vector.extract_strided_slice %28 {offsets = [1, 0, 0], sizes = [8, 16, 64], strides = [1, 1, 1]} : vector<10x16x64xf32> to vector<8x16x64xf32>
    %36 = vector.shape_cast %35 : vector<8x16x64xf32> to vector<128x64xf32>
    %c3 = arith.constant 3 : index
    %c0_58 = arith.constant 0 : index
    %c0_59 = arith.constant 0 : index
    %37 = vector.load %arg2[%c3, %c0_58, %c0_59] : memref<9x64x128xf32, #tpu.memory_space<vmem>>, vector<1x64x128xf32>
    %38 = vector.shape_cast %37 : vector<1x64x128xf32> to vector<64x128xf32>
    %cst_60 = arith.constant dense<0.000000e+00> : vector<128x128xf32>
    %39 = tpu.matmul %36, %38, %cst_60 {dimension_numbers = #tpu.dot_dimension_numbers<[1], [0], [0], [1], [0, 0, 1, 1], [], []>} : vector<128x64xf32>, vector<64x128xf32>, vector<128x128xf32> -> vector<128x128xf32>
    %40 = arith.addf %34, %39 : vector<128x128xf32>
    %41 = vector.extract_strided_slice %28 {offsets = [2, 0, 0], sizes = [8, 16, 64], strides = [1, 1, 1]} : vector<10x16x64xf32> to vector<8x16x64xf32>
    %42 = vector.shape_cast %41 : vector<8x16x64xf32> to vector<128x64xf32>
    %c6 = arith.constant 6 : index
    %c0_61 = arith.constant 0 : index
    %c0_62 = arith.constant 0 : index
    %43 = vector.load %arg2[%c6, %c0_61, %c0_62] : memref<9x64x128xf32, #tpu.memory_space<vmem>>, vector<1x64x128xf32>
    %44 = vector.shape_cast %43 : vector<1x64x128xf32> to vector<64x128xf32>
    %cst_63 = arith.constant dense<0.000000e+00> : vector<128x128xf32>
    %45 = tpu.matmul %42, %44, %cst_63 {dimension_numbers = #tpu.dot_dimension_numbers<[1], [0], [0], [1], [0, 0, 1, 1], [], []>} : vector<128x64xf32>, vector<64x128xf32>, vector<128x128xf32> -> vector<128x128xf32>
    %46 = arith.addf %40, %45 : vector<128x128xf32>
    %c0_64 = arith.constant 0 : index
    %c1_65 = arith.constant 1 : index
    %c0_66 = arith.constant 0 : index
    %47 = vector.load %arg11[%c0_64, %c1_65, %c0_66] : memref<10x18x64xf32, #tpu.memory_space<vmem>>, vector<10x16x64xf32>
    %48 = vector.extract_strided_slice %47 {offsets = [0, 0, 0], sizes = [8, 16, 64], strides = [1, 1, 1]} : vector<10x16x64xf32> to vector<8x16x64xf32>
    %49 = vector.shape_cast %48 : vector<8x16x64xf32> to vector<128x64xf32>
    %c1_67 = arith.constant 1 : index
    %c0_68 = arith.constant 0 : index
    %c0_69 = arith.constant 0 : index
    %50 = vector.load %arg2[%c1_67, %c0_68, %c0_69] : memref<9x64x128xf32, #tpu.memory_space<vmem>>, vector<1x64x128xf32>
    %51 = vector.shape_cast %50 : vector<1x64x128xf32> to vector<64x128xf32>
    %cst_70 = arith.constant dense<0.000000e+00> : vector<128x128xf32>
    %52 = tpu.matmul %49, %51, %cst_70 {dimension_numbers = #tpu.dot_dimension_numbers<[1], [0], [0], [1], [0, 0, 1, 1], [], []>} : vector<128x64xf32>, vector<64x128xf32>, vector<128x128xf32> -> vector<128x128xf32>
    %53 = arith.addf %46, %52 : vector<128x128xf32>
    %54 = vector.extract_strided_slice %47 {offsets = [1, 0, 0], sizes = [8, 16, 64], strides = [1, 1, 1]} : vector<10x16x64xf32> to vector<8x16x64xf32>
    %55 = vector.shape_cast %54 : vector<8x16x64xf32> to vector<128x64xf32>
    %c4 = arith.constant 4 : index
    %c0_71 = arith.constant 0 : index
    %c0_72 = arith.constant 0 : index
    %56 = vector.load %arg2[%c4, %c0_71, %c0_72] : memref<9x64x128xf32, #tpu.memory_space<vmem>>, vector<1x64x128xf32>
    %57 = vector.shape_cast %56 : vector<1x64x128xf32> to vector<64x128xf32>
    %cst_73 = arith.constant dense<0.000000e+00> : vector<128x128xf32>
    %58 = tpu.matmul %55, %57, %cst_73 {dimension_numbers = #tpu.dot_dimension_numbers<[1], [0], [0], [1], [0, 0, 1, 1], [], []>} : vector<128x64xf32>, vector<64x128xf32>, vector<128x128xf32> -> vector<128x128xf32>
    %59 = arith.addf %53, %58 : vector<128x128xf32>
    %60 = vector.extract_strided_slice %47 {offsets = [2, 0, 0], sizes = [8, 16, 64], strides = [1, 1, 1]} : vector<10x16x64xf32> to vector<8x16x64xf32>
    %61 = vector.shape_cast %60 : vector<8x16x64xf32> to vector<128x64xf32>
    %c7 = arith.constant 7 : index
    %c0_74 = arith.constant 0 : index
    %c0_75 = arith.constant 0 : index
    %62 = vector.load %arg2[%c7, %c0_74, %c0_75] : memref<9x64x128xf32, #tpu.memory_space<vmem>>, vector<1x64x128xf32>
    %63 = vector.shape_cast %62 : vector<1x64x128xf32> to vector<64x128xf32>
    %cst_76 = arith.constant dense<0.000000e+00> : vector<128x128xf32>
    %64 = tpu.matmul %61, %63, %cst_76 {dimension_numbers = #tpu.dot_dimension_numbers<[1], [0], [0], [1], [0, 0, 1, 1], [], []>} : vector<128x64xf32>, vector<64x128xf32>, vector<128x128xf32> -> vector<128x128xf32>
    %65 = arith.addf %59, %64 : vector<128x128xf32>
    %c0_77 = arith.constant 0 : index
    %c2 = arith.constant 2 : index
    %c0_78 = arith.constant 0 : index
    %66 = vector.load %arg11[%c0_77, %c2, %c0_78] : memref<10x18x64xf32, #tpu.memory_space<vmem>>, vector<10x16x64xf32>
    %67 = vector.extract_strided_slice %66 {offsets = [0, 0, 0], sizes = [8, 16, 64], strides = [1, 1, 1]} : vector<10x16x64xf32> to vector<8x16x64xf32>
    %68 = vector.shape_cast %67 : vector<8x16x64xf32> to vector<128x64xf32>
    %c2_79 = arith.constant 2 : index
    %c0_80 = arith.constant 0 : index
    %c0_81 = arith.constant 0 : index
    %69 = vector.load %arg2[%c2_79, %c0_80, %c0_81] : memref<9x64x128xf32, #tpu.memory_space<vmem>>, vector<1x64x128xf32>
    %70 = vector.shape_cast %69 : vector<1x64x128xf32> to vector<64x128xf32>
    %cst_82 = arith.constant dense<0.000000e+00> : vector<128x128xf32>
    %71 = tpu.matmul %68, %70, %cst_82 {dimension_numbers = #tpu.dot_dimension_numbers<[1], [0], [0], [1], [0, 0, 1, 1], [], []>} : vector<128x64xf32>, vector<64x128xf32>, vector<128x128xf32> -> vector<128x128xf32>
    %72 = arith.addf %65, %71 : vector<128x128xf32>
    %73 = vector.extract_strided_slice %66 {offsets = [1, 0, 0], sizes = [8, 16, 64], strides = [1, 1, 1]} : vector<10x16x64xf32> to vector<8x16x64xf32>
    %74 = vector.shape_cast %73 : vector<8x16x64xf32> to vector<128x64xf32>
    %c5 = arith.constant 5 : index
    %c0_83 = arith.constant 0 : index
    %c0_84 = arith.constant 0 : index
    %75 = vector.load %arg2[%c5, %c0_83, %c0_84] : memref<9x64x128xf32, #tpu.memory_space<vmem>>, vector<1x64x128xf32>
    %76 = vector.shape_cast %75 : vector<1x64x128xf32> to vector<64x128xf32>
    %cst_85 = arith.constant dense<0.000000e+00> : vector<128x128xf32>
    %77 = tpu.matmul %74, %76, %cst_85 {dimension_numbers = #tpu.dot_dimension_numbers<[1], [0], [0], [1], [0, 0, 1, 1], [], []>} : vector<128x64xf32>, vector<64x128xf32>, vector<128x128xf32> -> vector<128x128xf32>
    %78 = arith.addf %72, %77 : vector<128x128xf32>
    %79 = vector.extract_strided_slice %66 {offsets = [2, 0, 0], sizes = [8, 16, 64], strides = [1, 1, 1]} : vector<10x16x64xf32> to vector<8x16x64xf32>
    %80 = vector.shape_cast %79 : vector<8x16x64xf32> to vector<128x64xf32>
    %c8 = arith.constant 8 : index
    %c0_86 = arith.constant 0 : index
    %c0_87 = arith.constant 0 : index
    %81 = vector.load %arg2[%c8, %c0_86, %c0_87] : memref<9x64x128xf32, #tpu.memory_space<vmem>>, vector<1x64x128xf32>
    %82 = vector.shape_cast %81 : vector<1x64x128xf32> to vector<64x128xf32>
    %cst_88 = arith.constant dense<0.000000e+00> : vector<128x128xf32>
    %83 = tpu.matmul %80, %82, %cst_88 {dimension_numbers = #tpu.dot_dimension_numbers<[1], [0], [0], [1], [0, 0, 1, 1], [], []>} : vector<128x64xf32>, vector<64x128xf32>, vector<128x128xf32> -> vector<128x128xf32>
    %84 = arith.addf %78, %83 : vector<128x128xf32>
    %c0_89 = arith.constant 0 : index
    %c0_90 = arith.constant 0 : index
    %85 = vector.load %arg6[%c0_89, %c0_90] : memref<2x128xf32, #tpu.memory_space<vmem>>, vector<1x128xf32>
    %86 = vector.broadcast %85 : vector<1x128xf32> to vector<128x128xf32>
    %87 = arith.mulf %84, %86 : vector<128x128xf32>
    %c1_91 = arith.constant 1 : index
    %c0_92 = arith.constant 0 : index
    %88 = vector.load %arg6[%c1_91, %c0_92] : memref<2x128xf32, #tpu.memory_space<vmem>>, vector<1x128xf32>
    %89 = vector.broadcast %88 : vector<1x128xf32> to vector<128x128xf32>
    %90 = arith.addf %87, %89 : vector<128x128xf32>
    %cst_93 = arith.constant 3.000000e+01 : f32
    %91 = vector.broadcast %cst_93 : f32 to vector<128x128xf32>
    %92 = arith.minimumf %90, %91 : vector<128x128xf32>
    %93 = math.exp %92 : vector<128x128xf32>
    %cst_94 = arith.constant 2.000000e+00 : f32
    %94 = vector.broadcast %cst_94 : f32 to vector<128x128xf32>
    %95 = arith.addf %93, %94 : vector<128x128xf32>
    %96 = arith.mulf %93, %95 : vector<128x128xf32>
    %cst_95 = arith.constant 2.000000e+00 : f32
    %97 = vector.broadcast %cst_95 : f32 to vector<128x128xf32>
    %98 = arith.addf %96, %97 : vector<128x128xf32>
    %99 = arith.divf %96, %98 : vector<128x128xf32>
    %100 = arith.mulf %90, %99 : vector<128x128xf32>
    %101 = vector.shape_cast %100 : vector<128x128xf32> to vector<8x16x128xf32>
    %c1_96 = arith.constant 1 : index
    %c1_97 = arith.constant 1 : index
    %c0_98 = arith.constant 0 : index
    %102 = vector.load %arg12[%c1_96, %c1_97, %c0_98] : memref<10x18x128xf32, #tpu.memory_space<vmem>>, vector<8x16x128xf32>
    tpu.vector_store %arg12[%c1_96, %c1_97, %c0_98], %101 {strides = array<i32>} : memref<10x18x128xf32, #tpu.memory_space<vmem>>, vector<8x16x128xf32>,
    %cst_99 = arith.constant 0.000000e+00 : f32
    %103 = vector.broadcast %cst_99 : f32 to vector<128x128xf32>
    %c0_100 = arith.constant 0 : index
    %c0_101 = arith.constant 0 : index
    %c0_102 = arith.constant 0 : index
    %104 = vector.load %arg12[%c0_100, %c0_101, %c0_102] : memref<10x18x128xf32, #tpu.memory_space<vmem>>, vector<10x16x128xf32>
    %105 = vector.extract_strided_slice %104 {offsets = [0, 0, 0], sizes = [8, 16, 128], strides = [1, 1, 1]} : vector<10x16x128xf32> to vector<8x16x128xf32>
    %106 = vector.shape_cast %105 : vector<8x16x128xf32> to vector<128x128xf32>
    %c0_103 = arith.constant 0 : index
    %c0_104 = arith.constant 0 : index
    %c0_105 = arith.constant 0 : index
    %107 = vector.load %arg3[%c0_103, %c0_104, %c0_105] : memref<9x128x128xf32, #tpu.memory_space<vmem>>, vector<1x128x128xf32>
    %108 = vector.shape_cast %107 : vector<1x128x128xf32> to vector<128x128xf32>
    %cst_106 = arith.constant dense<0.000000e+00> : vector<128x128xf32>
    %109 = tpu.matmul %106, %108, %cst_106 {dimension_numbers = #tpu.dot_dimension_numbers<[1], [0], [0], [1], [0, 0, 1, 1], [], []>} : vector<128x128xf32>, vector<128x128xf32>, vector<128x128xf32> -> vector<128x128xf32>
    %110 = arith.addf %103, %109 : vector<128x128xf32>
    %111 = vector.extract_strided_slice %104 {offsets = [1, 0, 0], sizes = [8, 16, 128], strides = [1, 1, 1]} : vector<10x16x128xf32> to vector<8x16x128xf32>
    %112 = vector.shape_cast %111 : vector<8x16x128xf32> to vector<128x128xf32>
    %c3_107 = arith.constant 3 : index
    %c0_108 = arith.constant 0 : index
    %c0_109 = arith.constant 0 : index
    %113 = vector.load %arg3[%c3_107, %c0_108, %c0_109] : memref<9x128x128xf32, #tpu.memory_space<vmem>>, vector<1x128x128xf32>
    %114 = vector.shape_cast %113 : vector<1x128x128xf32> to vector<128x128xf32>
    %cst_110 = arith.constant dense<0.000000e+00> : vector<128x128xf32>
    %115 = tpu.matmul %112, %114, %cst_110 {dimension_numbers = #tpu.dot_dimension_numbers<[1], [0], [0], [1], [0, 0, 1, 1], [], []>} : vector<128x128xf32>, vector<128x128xf32>, vector<128x128xf32> -> vector<128x128xf32>
    %116 = arith.addf %110, %115 : vector<128x128xf32>
    %117 = vector.extract_strided_slice %104 {offsets = [2, 0, 0], sizes = [8, 16, 128], strides = [1, 1, 1]} : vector<10x16x128xf32> to vector<8x16x128xf32>
    %118 = vector.shape_cast %117 : vector<8x16x128xf32> to vector<128x128xf32>
    %c6_111 = arith.constant 6 : index
    %c0_112 = arith.constant 0 : index
    %c0_113 = arith.constant 0 : index
    %119 = vector.load %arg3[%c6_111, %c0_112, %c0_113] : memref<9x128x128xf32, #tpu.memory_space<vmem>>, vector<1x128x128xf32>
    %120 = vector.shape_cast %119 : vector<1x128x128xf32> to vector<128x128xf32>
    %cst_114 = arith.constant dense<0.000000e+00> : vector<128x128xf32>
    %121 = tpu.matmul %118, %120, %cst_114 {dimension_numbers = #tpu.dot_dimension_numbers<[1], [0], [0], [1], [0, 0, 1, 1], [], []>} : vector<128x128xf32>, vector<128x128xf32>, vector<128x128xf32> -> vector<128x128xf32>
    %122 = arith.addf %116, %121 : vector<128x128xf32>
    %c0_115 = arith.constant 0 : index
    %c1_116 = arith.constant 1 : index
    %c0_117 = arith.constant 0 : index
    %123 = vector.load %arg12[%c0_115, %c1_116, %c0_117] : memref<10x18x128xf32, #tpu.memory_space<vmem>>, vector<10x16x128xf32>
    %124 = vector.extract_strided_slice %123 {offsets = [0, 0, 0], sizes = [8, 16, 128], strides = [1, 1, 1]} : vector<10x16x128xf32> to vector<8x16x128xf32>
    %125 = vector.shape_cast %124 : vector<8x16x128xf32> to vector<128x128xf32>
    %c1_118 = arith.constant 1 : index
    %c0_119 = arith.constant 0 : index
    %c0_120 = arith.constant 0 : index
    %126 = vector.load %arg3[%c1_118, %c0_119, %c0_120] : memref<9x128x128xf32, #tpu.memory_space<vmem>>, vector<1x128x128xf32>
    %127 = vector.shape_cast %126 : vector<1x128x128xf32> to vector<128x128xf32>
    %cst_121 = arith.constant dense<0.000000e+00> : vector<128x128xf32>
    %128 = tpu.matmul %125, %127, %cst_121 {dimension_numbers = #tpu.dot_dimension_numbers<[1], [0], [0], [1], [0, 0, 1, 1], [], []>} : vector<128x128xf32>, vector<128x128xf32>, vector<128x128xf32> -> vector<128x128xf32>
    %129 = arith.addf %122, %128 : vector<128x128xf32>
    %130 = vector.extract_strided_slice %123 {offsets = [1, 0, 0], sizes = [8, 16, 128], strides = [1, 1, 1]} : vector<10x16x128xf32> to vector<8x16x128xf32>
    %131 = vector.shape_cast %130 : vector<8x16x128xf32> to vector<128x128xf32>
    %c4_122 = arith.constant 4 : index
    %c0_123 = arith.constant 0 : index
    %c0_124 = arith.constant 0 : index
    %132 = vector.load %arg3[%c4_122, %c0_123, %c0_124] : memref<9x128x128xf32, #tpu.memory_space<vmem>>, vector<1x128x128xf32>
    %133 = vector.shape_cast %132 : vector<1x128x128xf32> to vector<128x128xf32>
    %cst_125 = arith.constant dense<0.000000e+00> : vector<128x128xf32>
    %134 = tpu.matmul %131, %133, %cst_125 {dimension_numbers = #tpu.dot_dimension_numbers<[1], [0], [0], [1], [0, 0, 1, 1], [], []>} : vector<128x128xf32>, vector<128x128xf32>, vector<128x128xf32> -> vector<128x128xf32>
    %135 = arith.addf %129, %134 : vector<128x128xf32>
    %136 = vector.extract_strided_slice %123 {offsets = [2, 0, 0], sizes = [8, 16, 128], strides = [1, 1, 1]} : vector<10x16x128xf32> to vector<8x16x128xf32>
    %137 = vector.shape_cast %136 : vector<8x16x128xf32> to vector<128x128xf32>
    %c7_126 = arith.constant 7 : index
    %c0_127 = arith.constant 0 : index
    %c0_128 = arith.constant 0 : index
    %138 = vector.load %arg3[%c7_126, %c0_127, %c0_128] : memref<9x128x128xf32, #tpu.memory_space<vmem>>, vector<1x128x128xf32>
    %139 = vector.shape_cast %138 : vector<1x128x128xf32> to vector<128x128xf32>
    %cst_129 = arith.constant dense<0.000000e+00> : vector<128x128xf32>
    %140 = tpu.matmul %137, %139, %cst_129 {dimension_numbers = #tpu.dot_dimension_numbers<[1], [0], [0], [1], [0, 0, 1, 1], [], []>} : vector<128x128xf32>, vector<128x128xf32>, vector<128x128xf32> -> vector<128x128xf32>
    %141 = arith.addf %135, %140 : vector<128x128xf32>
    %c0_130 = arith.constant 0 : index
    %c2_131 = arith.constant 2 : index
    %c0_132 = arith.constant 0 : index
    %142 = vector.load %arg12[%c0_130, %c2_131, %c0_132] : memref<10x18x128xf32, #tpu.memory_space<vmem>>, vector<10x16x128xf32>
    %143 = vector.extract_strided_slice %142 {offsets = [0, 0, 0], sizes = [8, 16, 128], strides = [1, 1, 1]} : vector<10x16x128xf32> to vector<8x16x128xf32>
    %144 = vector.shape_cast %143 : vector<8x16x128xf32> to vector<128x128xf32>
    %c2_133 = arith.constant 2 : index
    %c0_134 = arith.constant 0 : index
    %c0_135 = arith.constant 0 : index
    %145 = vector.load %arg3[%c2_133, %c0_134, %c0_135] : memref<9x128x128xf32, #tpu.memory_space<vmem>>, vector<1x128x128xf32>
    %146 = vector.shape_cast %145 : vector<1x128x128xf32> to vector<128x128xf32>
    %cst_136 = arith.constant dense<0.000000e+00> : vector<128x128xf32>
    %147 = tpu.matmul %144, %146, %cst_136 {dimension_numbers = #tpu.dot_dimension_numbers<[1], [0], [0], [1], [0, 0, 1, 1], [], []>} : vector<128x128xf32>, vector<128x128xf32>, vector<128x128xf32> -> vector<128x128xf32>
    %148 = arith.addf %141, %147 : vector<128x128xf32>
    %149 = vector.extract_strided_slice %142 {offsets = [1, 0, 0], sizes = [8, 16, 128], strides = [1, 1, 1]} : vector<10x16x128xf32> to vector<8x16x128xf32>
    %150 = vector.shape_cast %149 : vector<8x16x128xf32> to vector<128x128xf32>
    %c5_137 = arith.constant 5 : index
    %c0_138 = arith.constant 0 : index
    %c0_139 = arith.constant 0 : index
    %151 = vector.load %arg3[%c5_137, %c0_138, %c0_139] : memref<9x128x128xf32, #tpu.memory_space<vmem>>, vector<1x128x128xf32>
    %152 = vector.shape_cast %151 : vector<1x128x128xf32> to vector<128x128xf32>
    %cst_140 = arith.constant dense<0.000000e+00> : vector<128x128xf32>
    %153 = tpu.matmul %150, %152, %cst_140 {dimension_numbers = #tpu.dot_dimension_numbers<[1], [0], [0], [1], [0, 0, 1, 1], [], []>} : vector<128x128xf32>, vector<128x128xf32>, vector<128x128xf32> -> vector<128x128xf32>
    %154 = arith.addf %148, %153 : vector<128x128xf32>
    %155 = vector.extract_strided_slice %142 {offsets = [2, 0, 0], sizes = [8, 16, 128], strides = [1, 1, 1]} : vector<10x16x128xf32> to vector<8x16x128xf32>
    %156 = vector.shape_cast %155 : vector<8x16x128xf32> to vector<128x128xf32>
    %c8_141 = arith.constant 8 : index
    %c0_142 = arith.constant 0 : index
    %c0_143 = arith.constant 0 : index
    %157 = vector.load %arg3[%c8_141, %c0_142, %c0_143] : memref<9x128x128xf32, #tpu.memory_space<vmem>>, vector<1x128x128xf32>
    %158 = vector.shape_cast %157 : vector<1x128x128xf32> to vector<128x128xf32>
    %cst_144 = arith.constant dense<0.000000e+00> : vector<128x128xf32>
    %159 = tpu.matmul %156, %158, %cst_144 {dimension_numbers = #tpu.dot_dimension_numbers<[1], [0], [0], [1], [0, 0, 1, 1], [], []>} : vector<128x128xf32>, vector<128x128xf32>, vector<128x128xf32> -> vector<128x128xf32>
    %160 = arith.addf %154, %159 : vector<128x128xf32>
    %c0_145 = arith.constant 0 : index
    %c0_146 = arith.constant 0 : index
    %161 = vector.load %arg7[%c0_145, %c0_146] : memref<2x128xf32, #tpu.memory_space<vmem>>, vector<1x128xf32>
    %162 = vector.broadcast %161 : vector<1x128xf32> to vector<128x128xf32>
    %163 = arith.mulf %160, %162 : vector<128x128xf32>
    %c1_147 = arith.constant 1 : index
    %c0_148 = arith.constant 0 : index
    %164 = vector.load %arg7[%c1_147, %c0_148] : memref<2x128xf32, #tpu.memory_space<vmem>>, vector<1x128xf32>
    %165 = vector.broadcast %164 : vector<1x128xf32> to vector<128x128xf32>
    %166 = arith.addf %163, %165 : vector<128x128xf32>
    %cst_149 = arith.constant 3.000000e+01 : f32
    %167 = vector.broadcast %cst_149 : f32 to vector<128x128xf32>
    %168 = arith.minimumf %166, %167 : vector<128x128xf32>
    %169 = math.exp %168 : vector<128x128xf32>
    %cst_150 = arith.constant 2.000000e+00 : f32
    %170 = vector.broadcast %cst_150 : f32 to vector<128x128xf32>
    %171 = arith.addf %169, %170 : vector<128x128xf32>
    %172 = arith.mulf %169, %171 : vector<128x128xf32>
    %cst_151 = arith.constant 2.000000e+00 : f32
    %173 = vector.broadcast %cst_151 : f32 to vector<128x128xf32>
    %174 = arith.addf %172, %173 : vector<128x128xf32>
    %175 = arith.divf %172, %174 : vector<128x128xf32>
    %176 = arith.mulf %166, %175 : vector<128x128xf32>
    %177 = vector.shape_cast %176 : vector<128x128xf32> to vector<8x16x128xf32>
    %c1_152 = arith.constant 1 : index
    %c1_153 = arith.constant 1 : index
    %c0_154 = arith.constant 0 : index
    %178 = vector.load %arg13[%c1_152, %c1_153, %c0_154] : memref<10x18x128xf32, #tpu.memory_space<vmem>>, vector<8x16x128xf32>
    tpu.vector_store %arg13[%c1_152, %c1_153, %c0_154], %177 {strides = array<i32>} : memref<10x18x128xf32, #tpu.memory_space<vmem>>, vector<8x16x128xf32>,
    %cst_155 = arith.constant 0.000000e+00 : f32
    %179 = vector.broadcast %cst_155 : f32 to vector<128x128xf32>
    %c0_156 = arith.constant 0 : index
    %c0_157 = arith.constant 0 : index
    %c0_158 = arith.constant 0 : index
    %180 = vector.load %arg13[%c0_156, %c0_157, %c0_158] : memref<10x18x128xf32, #tpu.memory_space<vmem>>, vector<10x16x128xf32>
    %181 = vector.extract_strided_slice %180 {offsets = [0, 0, 0], sizes = [8, 16, 128], strides = [1, 1, 1]} : vector<10x16x128xf32> to vector<8x16x128xf32>
    %182 = vector.shape_cast %181 : vector<8x16x128xf32> to vector<128x128xf32>
    %c0_159 = arith.constant 0 : index
    %c0_160 = arith.constant 0 : index
    %c0_161 = arith.constant 0 : index
    %183 = vector.load %arg4[%c0_159, %c0_160, %c0_161] : memref<9x128x128xf32, #tpu.memory_space<vmem>>, vector<1x128x128xf32>
    %184 = vector.shape_cast %183 : vector<1x128x128xf32> to vector<128x128xf32>
    %cst_162 = arith.constant dense<0.000000e+00> : vector<128x128xf32>
    %185 = tpu.matmul %182, %184, %cst_162 {dimension_numbers = #tpu.dot_dimension_numbers<[1], [0], [0], [1], [0, 0, 1, 1], [], []>} : vector<128x128xf32>, vector<128x128xf32>, vector<128x128xf32> -> vector<128x128xf32>
    %186 = arith.addf %179, %185 : vector<128x128xf32>
    %187 = vector.extract_strided_slice %180 {offsets = [1, 0, 0], sizes = [8, 16, 128], strides = [1, 1, 1]} : vector<10x16x128xf32> to vector<8x16x128xf32>
    %188 = vector.shape_cast %187 : vector<8x16x128xf32> to vector<128x128xf32>
    %c3_163 = arith.constant 3 : index
    %c0_164 = arith.constant 0 : index
    %c0_165 = arith.constant 0 : index
    %189 = vector.load %arg4[%c3_163, %c0_164, %c0_165] : memref<9x128x128xf32, #tpu.memory_space<vmem>>, vector<1x128x128xf32>
    %190 = vector.shape_cast %189 : vector<1x128x128xf32> to vector<128x128xf32>
    %cst_166 = arith.constant dense<0.000000e+00> : vector<128x128xf32>
    %191 = tpu.matmul %188, %190, %cst_166 {dimension_numbers = #tpu.dot_dimension_numbers<[1], [0], [0], [1], [0, 0, 1, 1], [], []>} : vector<128x128xf32>, vector<128x128xf32>, vector<128x128xf32> -> vector<128x128xf32>
    %192 = arith.addf %186, %191 : vector<128x128xf32>
    %193 = vector.extract_strided_slice %180 {offsets = [2, 0, 0], sizes = [8, 16, 128], strides = [1, 1, 1]} : vector<10x16x128xf32> to vector<8x16x128xf32>
    %194 = vector.shape_cast %193 : vector<8x16x128xf32> to vector<128x128xf32>
    %c6_167 = arith.constant 6 : index
    %c0_168 = arith.constant 0 : index
    %c0_169 = arith.constant 0 : index
    %195 = vector.load %arg4[%c6_167, %c0_168, %c0_169] : memref<9x128x128xf32, #tpu.memory_space<vmem>>, vector<1x128x128xf32>
    %196 = vector.shape_cast %195 : vector<1x128x128xf32> to vector<128x128xf32>
    %cst_170 = arith.constant dense<0.000000e+00> : vector<128x128xf32>
    %197 = tpu.matmul %194, %196, %cst_170 {dimension_numbers = #tpu.dot_dimension_numbers<[1], [0], [0], [1], [0, 0, 1, 1], [], []>} : vector<128x128xf32>, vector<128x128xf32>, vector<128x128xf32> -> vector<128x128xf32>
    %198 = arith.addf %192, %197 : vector<128x128xf32>
    %c0_171 = arith.constant 0 : index
    %c1_172 = arith.constant 1 : index
    %c0_173 = arith.constant 0 : index
    %199 = vector.load %arg13[%c0_171, %c1_172, %c0_173] : memref<10x18x128xf32, #tpu.memory_space<vmem>>, vector<10x16x128xf32>
    %200 = vector.extract_strided_slice %199 {offsets = [0, 0, 0], sizes = [8, 16, 128], strides = [1, 1, 1]} : vector<10x16x128xf32> to vector<8x16x128xf32>
    %201 = vector.shape_cast %200 : vector<8x16x128xf32> to vector<128x128xf32>
    %c1_174 = arith.constant 1 : index
    %c0_175 = arith.constant 0 : index
    %c0_176 = arith.constant 0 : index
    %202 = vector.load %arg4[%c1_174, %c0_175, %c0_176] : memref<9x128x128xf32, #tpu.memory_space<vmem>>, vector<1x128x128xf32>
    %203 = vector.shape_cast %202 : vector<1x128x128xf32> to vector<128x128xf32>
    %cst_177 = arith.constant dense<0.000000e+00> : vector<128x128xf32>
    %204 = tpu.matmul %201, %203, %cst_177 {dimension_numbers = #tpu.dot_dimension_numbers<[1], [0], [0], [1], [0, 0, 1, 1], [], []>} : vector<128x128xf32>, vector<128x128xf32>, vector<128x128xf32> -> vector<128x128xf32>
    %205 = arith.addf %198, %204 : vector<128x128xf32>
    %206 = vector.extract_strided_slice %199 {offsets = [1, 0, 0], sizes = [8, 16, 128], strides = [1, 1, 1]} : vector<10x16x128xf32> to vector<8x16x128xf32>
    %207 = vector.shape_cast %206 : vector<8x16x128xf32> to vector<128x128xf32>
    %c4_178 = arith.constant 4 : index
    %c0_179 = arith.constant 0 : index
    %c0_180 = arith.constant 0 : index
    %208 = vector.load %arg4[%c4_178, %c0_179, %c0_180] : memref<9x128x128xf32, #tpu.memory_space<vmem>>, vector<1x128x128xf32>
    %209 = vector.shape_cast %208 : vector<1x128x128xf32> to vector<128x128xf32>
    %cst_181 = arith.constant dense<0.000000e+00> : vector<128x128xf32>
    %210 = tpu.matmul %207, %209, %cst_181 {dimension_numbers = #tpu.dot_dimension_numbers<[1], [0], [0], [1], [0, 0, 1, 1], [], []>} : vector<128x128xf32>, vector<128x128xf32>, vector<128x128xf32> -> vector<128x128xf32>
    %211 = arith.addf %205, %210 : vector<128x128xf32>
    %212 = vector.extract_strided_slice %199 {offsets = [2, 0, 0], sizes = [8, 16, 128], strides = [1, 1, 1]} : vector<10x16x128xf32> to vector<8x16x128xf32>
    %213 = vector.shape_cast %212 : vector<8x16x128xf32> to vector<128x128xf32>
    %c7_182 = arith.constant 7 : index
    %c0_183 = arith.constant 0 : index
    %c0_184 = arith.constant 0 : index
    %214 = vector.load %arg4[%c7_182, %c0_183, %c0_184] : memref<9x128x128xf32, #tpu.memory_space<vmem>>, vector<1x128x128xf32>
    %215 = vector.shape_cast %214 : vector<1x128x128xf32> to vector<128x128xf32>
    %cst_185 = arith.constant dense<0.000000e+00> : vector<128x128xf32>
    %216 = tpu.matmul %213, %215, %cst_185 {dimension_numbers = #tpu.dot_dimension_numbers<[1], [0], [0], [1], [0, 0, 1, 1], [], []>} : vector<128x128xf32>, vector<128x128xf32>, vector<128x128xf32> -> vector<128x128xf32>
    %217 = arith.addf %211, %216 : vector<128x128xf32>
    %c0_186 = arith.constant 0 : index
    %c2_187 = arith.constant 2 : index
    %c0_188 = arith.constant 0 : index
    %218 = vector.load %arg13[%c0_186, %c2_187, %c0_188] : memref<10x18x128xf32, #tpu.memory_space<vmem>>, vector<10x16x128xf32>
    %219 = vector.extract_strided_slice %218 {offsets = [0, 0, 0], sizes = [8, 16, 128], strides = [1, 1, 1]} : vector<10x16x128xf32> to vector<8x16x128xf32>
    %220 = vector.shape_cast %219 : vector<8x16x128xf32> to vector<128x128xf32>
    %c2_189 = arith.constant 2 : index
    %c0_190 = arith.constant 0 : index
    %c0_191 = arith.constant 0 : index
    %221 = vector.load %arg4[%c2_189, %c0_190, %c0_191] : memref<9x128x128xf32, #tpu.memory_space<vmem>>, vector<1x128x128xf32>
    %222 = vector.shape_cast %221 : vector<1x128x128xf32> to vector<128x128xf32>
    %cst_192 = arith.constant dense<0.000000e+00> : vector<128x128xf32>
    %223 = tpu.matmul %220, %222, %cst_192 {dimension_numbers = #tpu.dot_dimension_numbers<[1], [0], [0], [1], [0, 0, 1, 1], [], []>} : vector<128x128xf32>, vector<128x128xf32>, vector<128x128xf32> -> vector<128x128xf32>
    %224 = arith.addf %217, %223 : vector<128x128xf32>
    %225 = vector.extract_strided_slice %218 {offsets = [1, 0, 0], sizes = [8, 16, 128], strides = [1, 1, 1]} : vector<10x16x128xf32> to vector<8x16x128xf32>
    %226 = vector.shape_cast %225 : vector<8x16x128xf32> to vector<128x128xf32>
    %c5_193 = arith.constant 5 : index
    %c0_194 = arith.constant 0 : index
    %c0_195 = arith.constant 0 : index
    %227 = vector.load %arg4[%c5_193, %c0_194, %c0_195] : memref<9x128x128xf32, #tpu.memory_space<vmem>>, vector<1x128x128xf32>
    %228 = vector.shape_cast %227 : vector<1x128x128xf32> to vector<128x128xf32>
    %cst_196 = arith.constant dense<0.000000e+00> : vector<128x128xf32>
    %229 = tpu.matmul %226, %228, %cst_196 {dimension_numbers = #tpu.dot_dimension_numbers<[1], [0], [0], [1], [0, 0, 1, 1], [], []>} : vector<128x128xf32>, vector<128x128xf32>, vector<128x128xf32> -> vector<128x128xf32>
    %230 = arith.addf %224, %229 : vector<128x128xf32>
    %231 = vector.extract_strided_slice %218 {offsets = [2, 0, 0], sizes = [8, 16, 128], strides = [1, 1, 1]} : vector<10x16x128xf32> to vector<8x16x128xf32>
    %232 = vector.shape_cast %231 : vector<8x16x128xf32> to vector<128x128xf32>
    %c8_197 = arith.constant 8 : index
    %c0_198 = arith.constant 0 : index
    %c0_199 = arith.constant 0 : index
    %233 = vector.load %arg4[%c8_197, %c0_198, %c0_199] : memref<9x128x128xf32, #tpu.memory_space<vmem>>, vector<1x128x128xf32>
    %234 = vector.shape_cast %233 : vector<1x128x128xf32> to vector<128x128xf32>
    %cst_200 = arith.constant dense<0.000000e+00> : vector<128x128xf32>
    %235 = tpu.matmul %232, %234, %cst_200 {dimension_numbers = #tpu.dot_dimension_numbers<[1], [0], [0], [1], [0, 0, 1, 1], [], []>} : vector<128x128xf32>, vector<128x128xf32>, vector<128x128xf32> -> vector<128x128xf32>
    %236 = arith.addf %230, %235 : vector<128x128xf32>
    %c0_201 = arith.constant 0 : index
    %c0_202 = arith.constant 0 : index
    %237 = vector.load %arg8[%c0_201, %c0_202] : memref<2x128xf32, #tpu.memory_space<vmem>>, vector<1x128xf32>
    %238 = vector.broadcast %237 : vector<1x128xf32> to vector<128x128xf32>
    %239 = arith.mulf %236, %238 : vector<128x128xf32>
    %c1_203 = arith.constant 1 : index
    %c0_204 = arith.constant 0 : index
    %240 = vector.load %arg8[%c1_203, %c0_204] : memref<2x128xf32, #tpu.memory_space<vmem>>, vector<1x128xf32>
    %241 = vector.broadcast %240 : vector<1x128xf32> to vector<128x128xf32>
    %242 = arith.addf %239, %241 : vector<128x128xf32>
    %cst_205 = arith.constant 3.000000e+01 : f32
    %243 = vector.broadcast %cst_205 : f32 to vector<128x128xf32>
    %244 = arith.minimumf %242, %243 : vector<128x128xf32>
    %245 = math.exp %244 : vector<128x128xf32>
    %cst_206 = arith.constant 2.000000e+00 : f32
    %246 = vector.broadcast %cst_206 : f32 to vector<128x128xf32>
    %247 = arith.addf %245, %246 : vector<128x128xf32>
    %248 = arith.mulf %245, %247 : vector<128x128xf32>
    %cst_207 = arith.constant 2.000000e+00 : f32
    %249 = vector.broadcast %cst_207 : f32 to vector<128x128xf32>
    %250 = arith.addf %248, %249 : vector<128x128xf32>
    %251 = arith.divf %248, %250 : vector<128x128xf32>
    %252 = arith.mulf %242, %251 : vector<128x128xf32>
    %253 = vector.shape_cast %252 : vector<128x128xf32> to vector<8x16x128xf32>
    %c1_208 = arith.constant 1 : index
    %c1_209 = arith.constant 1 : index
    %c0_210 = arith.constant 0 : index
    %254 = vector.load %arg12[%c1_208, %c1_209, %c0_210] : memref<10x18x128xf32, #tpu.memory_space<vmem>>, vector<8x16x128xf32>
    tpu.vector_store %arg12[%c1_208, %c1_209, %c0_210], %253 {strides = array<i32>} : memref<10x18x128xf32, #tpu.memory_space<vmem>>, vector<8x16x128xf32>,
    %cst_211 = arith.constant 0.000000e+00 : f32
    %255 = vector.broadcast %cst_211 : f32 to vector<128x128xf32>
    %c0_212 = arith.constant 0 : index
    %c0_213 = arith.constant 0 : index
    %c0_214 = arith.constant 0 : index
    %256 = vector.load %arg12[%c0_212, %c0_213, %c0_214] : memref<10x18x128xf32, #tpu.memory_space<vmem>>, vector<10x16x128xf32>
    %257 = vector.extract_strided_slice %256 {offsets = [0, 0, 0], sizes = [8, 16, 128], strides = [1, 1, 1]} : vector<10x16x128xf32> to vector<8x16x128xf32>
    %258 = vector.shape_cast %257 : vector<8x16x128xf32> to vector<128x128xf32>
    %c0_215 = arith.constant 0 : index
    %c0_216 = arith.constant 0 : index
    %c0_217 = arith.constant 0 : index
    %259 = vector.load %arg5[%c0_215, %c0_216, %c0_217] : memref<9x128x128xf32, #tpu.memory_space<vmem>>, vector<1x128x128xf32>
    %260 = vector.shape_cast %259 : vector<1x128x128xf32> to vector<128x128xf32>
    %cst_218 = arith.constant dense<0.000000e+00> : vector<128x128xf32>
    %261 = tpu.matmul %258, %260, %cst_218 {dimension_numbers = #tpu.dot_dimension_numbers<[1], [0], [0], [1], [0, 0, 1, 1], [], []>} : vector<128x128xf32>, vector<128x128xf32>, vector<128x128xf32> -> vector<128x128xf32>
    %262 = arith.addf %255, %261 : vector<128x128xf32>
    %263 = vector.extract_strided_slice %256 {offsets = [1, 0, 0], sizes = [8, 16, 128], strides = [1, 1, 1]} : vector<10x16x128xf32> to vector<8x16x128xf32>
    %264 = vector.shape_cast %263 : vector<8x16x128xf32> to vector<128x128xf32>
    %c3_219 = arith.constant 3 : index
    %c0_220 = arith.constant 0 : index
    %c0_221 = arith.constant 0 : index
    %265 = vector.load %arg5[%c3_219, %c0_220, %c0_221] : memref<9x128x128xf32, #tpu.memory_space<vmem>>, vector<1x128x128xf32>
    %266 = vector.shape_cast %265 : vector<1x128x128xf32> to vector<128x128xf32>
    %cst_222 = arith.constant dense<0.000000e+00> : vector<128x128xf32>
    %267 = tpu.matmul %264, %266, %cst_222 {dimension_numbers = #tpu.dot_dimension_numbers<[1], [0], [0], [1], [0, 0, 1, 1], [], []>} : vector<128x128xf32>, vector<128x128xf32>, vector<128x128xf32> -> vector<128x128xf32>
    %268 = arith.addf %262, %267 : vector<128x128xf32>
    %269 = vector.extract_strided_slice %256 {offsets = [2, 0, 0], sizes = [8, 16, 128], strides = [1, 1, 1]} : vector<10x16x128xf32> to vector<8x16x128xf32>
    %270 = vector.shape_cast %269 : vector<8x16x128xf32> to vector<128x128xf32>
    %c6_223 = arith.constant 6 : index
    %c0_224 = arith.constant 0 : index
    %c0_225 = arith.constant 0 : index
    %271 = vector.load %arg5[%c6_223, %c0_224, %c0_225] : memref<9x128x128xf32, #tpu.memory_space<vmem>>, vector<1x128x128xf32>
    %272 = vector.shape_cast %271 : vector<1x128x128xf32> to vector<128x128xf32>
    %cst_226 = arith.constant dense<0.000000e+00> : vector<128x128xf32>
    %273 = tpu.matmul %270, %272, %cst_226 {dimension_numbers = #tpu.dot_dimension_numbers<[1], [0], [0], [1], [0, 0, 1, 1], [], []>} : vector<128x128xf32>, vector<128x128xf32>, vector<128x128xf32> -> vector<128x128xf32>
    %274 = arith.addf %268, %273 : vector<128x128xf32>
    %c0_227 = arith.constant 0 : index
    %c1_228 = arith.constant 1 : index
    %c0_229 = arith.constant 0 : index
    %275 = vector.load %arg12[%c0_227, %c1_228, %c0_229] : memref<10x18x128xf32, #tpu.memory_space<vmem>>, vector<10x16x128xf32>
    %276 = vector.extract_strided_slice %275 {offsets = [0, 0, 0], sizes = [8, 16, 128], strides = [1, 1, 1]} : vector<10x16x128xf32> to vector<8x16x128xf32>
    %277 = vector.shape_cast %276 : vector<8x16x128xf32> to vector<128x128xf32>
    %c1_230 = arith.constant 1 : index
    %c0_231 = arith.constant 0 : index
    %c0_232 = arith.constant 0 : index
    %278 = vector.load %arg5[%c1_230, %c0_231, %c0_232] : memref<9x128x128xf32, #tpu.memory_space<vmem>>, vector<1x128x128xf32>
    %279 = vector.shape_cast %278 : vector<1x128x128xf32> to vector<128x128xf32>
    %cst_233 = arith.constant dense<0.000000e+00> : vector<128x128xf32>
    %280 = tpu.matmul %277, %279, %cst_233 {dimension_numbers = #tpu.dot_dimension_numbers<[1], [0], [0], [1], [0, 0, 1, 1], [], []>} : vector<128x128xf32>, vector<128x128xf32>, vector<128x128xf32> -> vector<128x128xf32>
    %281 = arith.addf %274, %280 : vector<128x128xf32>
    %282 = vector.extract_strided_slice %275 {offsets = [1, 0, 0], sizes = [8, 16, 128], strides = [1, 1, 1]} : vector<10x16x128xf32> to vector<8x16x128xf32>
    %283 = vector.shape_cast %282 : vector<8x16x128xf32> to vector<128x128xf32>
    %c4_234 = arith.constant 4 : index
    %c0_235 = arith.constant 0 : index
    %c0_236 = arith.constant 0 : index
    %284 = vector.load %arg5[%c4_234, %c0_235, %c0_236] : memref<9x128x128xf32, #tpu.memory_space<vmem>>, vector<1x128x128xf32>
    %285 = vector.shape_cast %284 : vector<1x128x128xf32> to vector<128x128xf32>
    %cst_237 = arith.constant dense<0.000000e+00> : vector<128x128xf32>
    %286 = tpu.matmul %283, %285, %cst_237 {dimension_numbers = #tpu.dot_dimension_numbers<[1], [0], [0], [1], [0, 0, 1, 1], [], []>} : vector<128x128xf32>, vector<128x128xf32>, vector<128x128xf32> -> vector<128x128xf32>
    %287 = arith.addf %281, %286 : vector<128x128xf32>
    %288 = vector.extract_strided_slice %275 {offsets = [2, 0, 0], sizes = [8, 16, 128], strides = [1, 1, 1]} : vector<10x16x128xf32> to vector<8x16x128xf32>
    %289 = vector.shape_cast %288 : vector<8x16x128xf32> to vector<128x128xf32>
    %c7_238 = arith.constant 7 : index
    %c0_239 = arith.constant 0 : index
    %c0_240 = arith.constant 0 : index
    %290 = vector.load %arg5[%c7_238, %c0_239, %c0_240] : memref<9x128x128xf32, #tpu.memory_space<vmem>>, vector<1x128x128xf32>
    %291 = vector.shape_cast %290 : vector<1x128x128xf32> to vector<128x128xf32>
    %cst_241 = arith.constant dense<0.000000e+00> : vector<128x128xf32>
    %292 = tpu.matmul %289, %291, %cst_241 {dimension_numbers = #tpu.dot_dimension_numbers<[1], [0], [0], [1], [0, 0, 1, 1], [], []>} : vector<128x128xf32>, vector<128x128xf32>, vector<128x128xf32> -> vector<128x128xf32>
    %293 = arith.addf %287, %292 : vector<128x128xf32>
    %c0_242 = arith.constant 0 : index
    %c2_243 = arith.constant 2 : index
    %c0_244 = arith.constant 0 : index
    %294 = vector.load %arg12[%c0_242, %c2_243, %c0_244] : memref<10x18x128xf32, #tpu.memory_space<vmem>>, vector<10x16x128xf32>
    %295 = vector.extract_strided_slice %294 {offsets = [0, 0, 0], sizes = [8, 16, 128], strides = [1, 1, 1]} : vector<10x16x128xf32> to vector<8x16x128xf32>
    %296 = vector.shape_cast %295 : vector<8x16x128xf32> to vector<128x128xf32>
    %c2_245 = arith.constant 2 : index
    %c0_246 = arith.constant 0 : index
    %c0_247 = arith.constant 0 : index
    %297 = vector.load %arg5[%c2_245, %c0_246, %c0_247] : memref<9x128x128xf32, #tpu.memory_space<vmem>>, vector<1x128x128xf32>
    %298 = vector.shape_cast %297 : vector<1x128x128xf32> to vector<128x128xf32>
    %cst_248 = arith.constant dense<0.000000e+00> : vector<128x128xf32>
    %299 = tpu.matmul %296, %298, %cst_248 {dimension_numbers = #tpu.dot_dimension_numbers<[1], [0], [0], [1], [0, 0, 1, 1], [], []>} : vector<128x128xf32>, vector<128x128xf32>, vector<128x128xf32> -> vector<128x128xf32>
    %300 = arith.addf %293, %299 : vector<128x128xf32>
    %301 = vector.extract_strided_slice %294 {offsets = [1, 0, 0], sizes = [8, 16, 128], strides = [1, 1, 1]} : vector<10x16x128xf32> to vector<8x16x128xf32>
    %302 = vector.shape_cast %301 : vector<8x16x128xf32> to vector<128x128xf32>
    %c5_249 = arith.constant 5 : index
    %c0_250 = arith.constant 0 : index
    %c0_251 = arith.constant 0 : index
    %303 = vector.load %arg5[%c5_249, %c0_250, %c0_251] : memref<9x128x128xf32, #tpu.memory_space<vmem>>, vector<1x128x128xf32>
    %304 = vector.shape_cast %303 : vector<1x128x128xf32> to vector<128x128xf32>
    %cst_252 = arith.constant dense<0.000000e+00> : vector<128x128xf32>
    %305 = tpu.matmul %302, %304, %cst_252 {dimension_numbers = #tpu.dot_dimension_numbers<[1], [0], [0], [1], [0, 0, 1, 1], [], []>} : vector<128x128xf32>, vector<128x128xf32>, vector<128x128xf32> -> vector<128x128xf32>
    %306 = arith.addf %300, %305 : vector<128x128xf32>
    %307 = vector.extract_strided_slice %294 {offsets = [2, 0, 0], sizes = [8, 16, 128], strides = [1, 1, 1]} : vector<10x16x128xf32> to vector<8x16x128xf32>
    %308 = vector.shape_cast %307 : vector<8x16x128xf32> to vector<128x128xf32>
    %c8_253 = arith.constant 8 : index
    %c0_254 = arith.constant 0 : index
    %c0_255 = arith.constant 0 : index
    %309 = vector.load %arg5[%c8_253, %c0_254, %c0_255] : memref<9x128x128xf32, #tpu.memory_space<vmem>>, vector<1x128x128xf32>
    %310 = vector.shape_cast %309 : vector<1x128x128xf32> to vector<128x128xf32>
    %cst_256 = arith.constant dense<0.000000e+00> : vector<128x128xf32>
    %311 = tpu.matmul %308, %310, %cst_256 {dimension_numbers = #tpu.dot_dimension_numbers<[1], [0], [0], [1], [0, 0, 1, 1], [], []>} : vector<128x128xf32>, vector<128x128xf32>, vector<128x128xf32> -> vector<128x128xf32>
    %312 = arith.addf %306, %311 : vector<128x128xf32>
    %c0_257 = arith.constant 0 : index
    %c0_258 = arith.constant 0 : index
    %313 = vector.load %arg9[%c0_257, %c0_258] : memref<2x128xf32, #tpu.memory_space<vmem>>, vector<1x128xf32>
    %314 = vector.broadcast %313 : vector<1x128xf32> to vector<128x128xf32>
    %315 = arith.mulf %312, %314 : vector<128x128xf32>
    %c1_259 = arith.constant 1 : index
    %c0_260 = arith.constant 0 : index
    %316 = vector.load %arg9[%c1_259, %c0_260] : memref<2x128xf32, #tpu.memory_space<vmem>>, vector<1x128xf32>
    %317 = vector.broadcast %316 : vector<1x128xf32> to vector<128x128xf32>
    %318 = arith.addf %315, %317 : vector<128x128xf32>
    %319 = arith.addf %318, %176 : vector<128x128xf32>
    %c0_261 = arith.constant 0 : index
    %c0_262 = arith.constant 0 : index
    %c0_263 = arith.constant 0 : index
    %320 = vector.load %arg10[%c0_261, %c0_262, %c0_263] : memref<1x128x128xf32, #tpu.memory_space<vmem>>, vector<1x128x128xf32>
    %321 = vector.shape_cast %320 : vector<1x128x128xf32> to vector<128x128xf32>
    %322 = vector.shape_cast %319 : vector<128x128xf32> to vector<1x128x128xf32>
    tpu.vector_store %arg10[%c0_261, %c0_262, %c0_263], %322 {strides = array<i32>} : memref<1x128x128xf32, #tpu.memory_space<vmem>>, vector<1x128x128xf32>,
    return
  }
  func.func @transform_0(%arg0: i32) -> (i32, i32, i32, i32) {
    %c0_i32 = arith.constant 0 : i32
    %c0_i32_0 = arith.constant 0 : i32
    %c0_i32_1 = arith.constant 0 : i32
    %c0_i32_2 = arith.constant 0 : i32
    return %arg0, %c0_i32, %c0_i32_0, %c0_i32_1 : i32, i32, i32, i32
  }
  func.func @transform_1(%arg0: i32) -> (i32, i32, i32) {
    %c0_i32 = arith.constant 0 : i32
    %c0_i32_0 = arith.constant 0 : i32
    %c0_i32_1 = arith.constant 0 : i32
    %c0_i32_2 = arith.constant 0 : i32
    return %c0_i32, %c0_i32_0, %c0_i32_1 : i32, i32, i32
  }
  func.func @transform_2(%arg0: i32) -> (i32, i32, i32) {
    %c0_i32 = arith.constant 0 : i32
    %c0_i32_0 = arith.constant 0 : i32
    %c0_i32_1 = arith.constant 0 : i32
    %c0_i32_2 = arith.constant 0 : i32
    return %c0_i32, %c0_i32_0, %c0_i32_1 : i32, i32, i32
  }
  func.func @transform_3(%arg0: i32) -> (i32, i32, i32) {
    %c0_i32 = arith.constant 0 : i32
    %c0_i32_0 = arith.constant 0 : i32
    %c0_i32_1 = arith.constant 0 : i32
    %c0_i32_2 = arith.constant 0 : i32
    return %c0_i32, %c0_i32_0, %c0_i32_1 : i32, i32, i32
  }
  func.func @transform_4(%arg0: i32) -> (i32, i32, i32) {
    %c0_i32 = arith.constant 0 : i32
    %c0_i32_0 = arith.constant 0 : i32
    %c0_i32_1 = arith.constant 0 : i32
    %c0_i32_2 = arith.constant 0 : i32
    return %c0_i32, %c0_i32_0, %c0_i32_1 : i32, i32, i32
  }
  func.func @transform_5(%arg0: i32) -> (i32, i32) {
    %c0_i32 = arith.constant 0 : i32
    %c0_i32_0 = arith.constant 0 : i32
    %c0_i32_1 = arith.constant 0 : i32
    return %c0_i32, %c0_i32_0 : i32, i32
  }
  func.func @transform_6(%arg0: i32) -> (i32, i32) {
    %c0_i32 = arith.constant 0 : i32
    %c0_i32_0 = arith.constant 0 : i32
    %c0_i32_1 = arith.constant 0 : i32
    return %c0_i32, %c0_i32_0 : i32, i32
  }
  func.func @transform_7(%arg0: i32) -> (i32, i32) {
    %c0_i32 = arith.constant 0 : i32
    %c0_i32_0 = arith.constant 0 : i32
    %c0_i32_1 = arith.constant 0 : i32
    return %c0_i32, %c0_i32_0 : i32, i32
  }
  func.func @transform_8(%arg0: i32) -> (i32, i32) {
    %c0_i32 = arith.constant 0 : i32
    %c0_i32_0 = arith.constant 0 : i32
    %c0_i32_1 = arith.constant 0 : i32
    return %c0_i32, %c0_i32_0 : i32, i32
  }
  func.func @transform_9(%arg0: i32) -> (i32, i32, i32) {
    %c0_i32 = arith.constant 0 : i32
    %c0_i32_0 = arith.constant 0 : i32
    %c0_i32_1 = arith.constant 0 : i32
    return %arg0, %c0_i32, %c0_i32_0 : i32, i32, i32
  }
}

</mosaic_0001>

<bundles_post_ra>
// kernel: tpu_custom_call.1
= control target key start
LH: loop header
LB: loop body
LE: loop exit
PB: predicated region body
PF: predicated region fallthrough
CT: control target
= control target key end

     0   :  { %s15227_s0 = inlined_call_operand.hbm [shape: f32[2,8,16,64], index: 0, kind: input, shape index: {}]   ;;  %s15228_s1 = inlined_call_operand.hbm [shape: f32[9,64,128], index: 1, kind: input, shape index: {}]   ;;  %s15229_s2 = inlined_call_operand.hbm [shape: f32[9,128,128], index: 2, kind: input, shape index: {}]   ;;  %s15230_s3 = inlined_call_operand.hbm [shape: f32[9,128,128], index: 3, kind: input, shape index: {}]   ;;  %s15231_s4 = inlined_call_operand.hbm [shape: f32[9,128,128], index: 4, kind: input, shape index: {}]   ;;  %s15232_s5 = inlined_call_operand.vmem [shape: f32[2,128], index: 5, kind: input, shape index: {}]   ;;  %s15233_s6 = inlined_call_operand.vmem [shape: f32[2,128], index: 6, kind: input, shape index: {}]   ;;  %s15234_s7 = inlined_call_operand.vmem [shape: f32[2,128], index: 7, kind: input, shape index: {}]   ;;  %s15235_s8 = inlined_call_operand.vmem [shape: f32[2,128], index: 8, kind: input, shape index: {}]   ;;  %s15236_s9 = inlined_call_operand.hbm [shape: f32[2,128,128], index: 9, kind: output, shape index: {}]  }
   0x1   :  { %15243 = sst [smem:[#allocation21_spill]] %s15236_s9 }
   0x2   :  { %14 = vsyncpa [#allocation6], 0 }
   0x3   :  { %16 = vsyncpa [#allocation6 + $0x1], 0 }
   0x4   :  { %17 = vsyncpa [#allocation9], 0 }
   0x5   :  { %18 = vsyncpa [#allocation12], 0 }
   0x6   :  { %19 = vsyncpa [#allocation7], 0 }
   0x7   :  { %21 = vsyncpa [#allocation7 + $0x1], 0  ;;  %s13191_s30 = smov 0   ;;  %s13193_s10 = smov 0  }
   0x8   :  { %s13195_s11 = smov 0   ;;  %s13197_s12 = smov 0  }
   0x9 LB: > { %15244 = sst [smem:[#allocation19_spill]] %s13116_s30  ;;  %s13212_s13 = sadd.s32 4294967295, %s13128_s12   ;;  %s13128_s12 = sphi %s13197_s12, %s15268_s12   ;;  %s13124_s11 = sphi %s13195_s11, %s15267_s11   ;;  %s13120_s10 = sphi %s13193_s10, %s15266_s10   ;;  %s13116_s30 = sphi %s13191_s30, %s15265_s30  }
   0xa   : > { %s7945_s14 = sadd.s32 4294967294, %s13128_s12   ;;  %p47_p0 = scmp.ne.s32.totalorder %s13120_s10, %s13116_s30 }
   0xb   : > { %p15237_p1 = scmp.eq.s32.totalorder %s13212_s13, 0  ;;  %p245_p3 = scmp.eq.s32.totalorder %s7945_s14, 1 }
   0xc   : > { %p7946_p5 = scmp.ge.s32.totalorder %s13128_s12, 1  ;;  %p252_p7 = scmp.lt.s32.totalorder %s13128_s12, 3 }
   0xd   : > { %p13221_p4 = por %p15237_p1, %p47_p0  ;;  %p13226_p6 = por %p245_p3, %p47_p0 }
   0xe   : > { %p13231_p8 = pnand %p7946_p5, %p252_p7  ;;  %s13130_s18 = smov [#allocation8]  }
   0xf   : > { %s15245_s15 = scalar_select %p13221_p4, 1, 0 }
  0x10   : > { %s15246_s16 = scalar_select %p13226_p6, 1, 0 }
  0x11   : > { %s15248_s17 = scalar_select %p13231_p8, 1, 0 }
  0x12   : > { %15247 = sst [smem:[#allocation20_spill]] %s15246_s16  ;;  %s264_s19 = sshll.u32 %s13130_s18, 4  ;;  %s13235_s19 = int_to_ptr.vmem [resolvable:$true] %s264_s19 }
  0x13   : > { %p12629_p9 = pneg %p13231_p8  ;;  %s13131_s21 = smov [#allocation11]  }
  0x14   : > { %s290_s22 = sshll.u32 %s13131_s21, 4  ;;  %s13132_s23 = smov [#allocation10]   ;;  %s13246_s22 = int_to_ptr.vmem [resolvable:$true] %s290_s22 }
  0x15   : > { %p13242_p11 = pnand %p12629_p9, %p15237_p1  ;;  %s13248_s24 = sshll.u32 %s13132_s23, 4  ;;  %s278_s24 = int_to_ptr.vmem [resolvable:$true] %s13248_s24 }
  0x16   : > { %s12912_s27 = scalar_lea.hbm %s15228_s1, 9216 }
  0x17   : > { %p12913_p12 = scmp.ne.s32.totalorder %s15228_s1, %s12912_s27  ;;  %p13258_p13 = pneg %p13242_p11 }
  0x18   : > { %p12919_p5 = scmp.lt.u32.totalorder %s12912_s27, %s15228_s1 }
  0x19   : > { %p12915_p0 = pnand %p13258_p13, %p12913_p12 }
  0x1b   : > { %p12916_p3 = pneg %p12915_p0 }
  0x1d   : > { %p12921_p7 = pnand %p12919_p5, %p12916_p3 }
  0x1f   : > { %12924 = shalt.err (!%p12921_p7)
}
  0x20   : > { %s12925_s23 = scalar_lea.vmem %s13235_s19, 9216  ;;  %p12933_p2 = scmp.lt.s32.totalorder %s13235_s19, %s13235_s19 }
  0x21   : > { %p12926_p9 = scmp.ne.s32.totalorder %s13235_s19, %s12925_s23  ;;  %p12934_p6 = scmp.lt.s32.totalorder %s12925_s23, %s12925_s23 }
  0x23   : > { %p12928_p10 = pnand %p12926_p9, %p13258_p13  ;;  %p12935_p12 = por %p12934_p6, %p12933_p2 }
  0x25   : > { %p12929_p1 = pneg %p12928_p10 }
  0x27   : > { %p12936_p0 = pnand %p12935_p12, %p12929_p1 }
  0x29   : > { %12939 = shalt.err (!%p12936_p0)
}
  0x2a   : > { %s13133_s25 = smov 128   ;;  %s13134_s26 = smov 8  }
  0x2b   : > { %12632 = dma.hbm_to_vmem [thread:$0]  (!%p13242_p11), %s15228_s1, 9216, %s13235_s19, [#allocation9], %s13133_s25, %s13133_s25, %s13134_s26  }
  0x2c   : > { %s12940_s21 = scalar_lea.hbm %s15230_s3, 18432 }
  0x2d   : > { %p12941_p1 = scmp.ne.s32.totalorder %s15230_s3, %s12940_s21  ;;  %p12947_p10 = scmp.lt.u32.totalorder %s12940_s21, %s15230_s3 }
  0x2f   : > { %p12943_p2 = pnand %p12941_p1, %p13258_p13 }
  0x31   : > { %p12944_p6 = pneg %p12943_p2 }
  0x33   : > { %p12949_p3 = pnand %p12947_p10, %p12944_p6 }
  0x35   : > { %12952 = shalt.err (!%p12949_p3)
}
  0x36   : > { %s12953_s19 = scalar_lea.vmem %s13246_s22, 18432  ;;  %p12961_p12 = scmp.lt.s32.totalorder %s13246_s22, %s13246_s22 }
  0x37   : > { %p12954_p5 = scmp.ne.s32.totalorder %s13246_s22, %s12953_s19  ;;  %p12962_p0 = scmp.lt.s32.totalorder %s12953_s19, %s12953_s19 }
  0x39   : > { %p12956_p7 = pnand %p12954_p5, %p13258_p13  ;;  %p12963_p1 = por %p12962_p0, %p12961_p12 }
  0x3b   : > { %p12957_p9 = pneg %p12956_p7 }
  0x3d   : > { %p12964_p2 = pnand %p12963_p1, %p12957_p9 }
  0x3f   : > { %12967 = shalt.err (!%p12964_p2)
}
  0x40   : > { %12638 = dma.hbm_to_vmem [thread:$0]  (!%p13242_p11), %s15230_s3, 18432, %s13246_s22, [#allocation12], %s13133_s25, %s13133_s25, %s13134_s26  }
  0x41   : > { %s12968_s28 = scalar_lea.hbm %s15229_s2, 18432 }
  0x42   : > { %p12969_p6 = scmp.ne.s32.totalorder %s15229_s2, %s12968_s28  ;;  %p12975_p5 = scmp.lt.u32.totalorder %s12968_s28, %s15229_s2 }
  0x44   : > { %p12971_p10 = pnand %p12969_p6, %p13258_p13 }
  0x46   : > { %p12972_p3 = pneg %p12971_p10 }
  0x48   : > { %p12977_p7 = pnand %p12975_p5, %p12972_p3 }
  0x4a   : > { %12980 = shalt.err (!%p12977_p7)
}
  0x4b   : > { %s12981_s19 = scalar_lea.vmem %s278_s24, 18432  ;;  %p12989_p1 = scmp.lt.s32.totalorder %s278_s24, %s278_s24 }
  0x4c   : > { %p12982_p9 = scmp.ne.s32.totalorder %s278_s24, %s12981_s19  ;;  %p12990_p2 = scmp.lt.s32.totalorder %s12981_s19, %s12981_s19 }
  0x4e   : > { %p12984_p12 = pnand %p12982_p9, %p13258_p13  ;;  %p12991_p4 = por %p12990_p2, %p12989_p1 }
  0x50   : > { %p12985_p0 = pneg %p12984_p12 }
  0x52   : > { %p12992_p8 = pnand %p12991_p4, %p12985_p0 }
  0x54   : > { %12995 = shalt.err (!%p12992_p8)
}
  0x55   : > { %12635 = dma.hbm_to_vmem [thread:$0]  (!%p13242_p11), %s15229_s2, 18432, %s278_s24, [#allocation9], %s13133_s25, %s13133_s25, %s13134_s26  }
  0x56   : > { %s13135_s30 = smov [#allocation13]   ;;  %s12996_s29 = scalar_lea.hbm %s15231_s4, 18432 }
  0x57   : > { %s303_s16 = sshll.u32 %s13135_s30, 4  ;;  %p12997_p4 = scmp.ne.s32.totalorder %s15231_s4, %s12996_s29  ;;  %s304_s16 = int_to_ptr.vmem [resolvable:$true] %s303_s16 }
  0x58   : > { %p13003_p10 = scmp.lt.u32.totalorder %s12996_s29, %s15231_s4 }
  0x59   : > { %p12999_p8 = pnand %p12997_p4, %p13258_p13 }
  0x5b   : > { %p13000_p6 = pneg %p12999_p8 }
  0x5d   : > { %p13005_p3 = pnand %p13003_p10, %p13000_p6 }
  0x5f   : > { %13008 = shalt.err (!%p13005_p3)
}
  0x60   : > { %s13009_s24 = scalar_lea.vmem %s304_s16, 18432  ;;  %p13017_p12 = scmp.lt.s32.totalorder %s304_s16, %s304_s16 }
  0x61   : > { %p13010_p5 = scmp.ne.s32.totalorder %s304_s16, %s13009_s24  ;;  %p13018_p0 = scmp.lt.s32.totalorder %s13009_s24, %s13009_s24 }
  0x63   : > { %p13012_p7 = pnand %p13010_p5, %p13258_p13  ;;  %p13019_p1 = por %p13018_p0, %p13017_p12 }
  0x65   : > { %p13013_p9 = pneg %p13012_p7 }
  0x67   : > { %p13020_p2 = pnand %p13019_p1, %p13013_p9 }
  0x69   : > { %13023 = shalt.err (!%p13020_p2)
}
  0x6a   : > { %12641 = dma.hbm_to_vmem [thread:$0]  (!%p13242_p11), %s15231_s4, 18432, %s304_s16, [#allocation12], %s13133_s25, %s13133_s25, %s13134_s26  }
  0x6b   : > { %s13352_s14 = sadd.s32 1, %s13128_s12   ;;  %s34_s20 = sadd.s32 1, %s13124_s11 }
  0x6c   : > { %s31_s30 = ssub.s32 %s13128_s12, %s13352_s14  ;;  %p41_p13 = scmp.ne.s32.totalorder %s13124_s11, %s13120_s10 }
  0x6d   : > { %p32_p4 = scmp.eq.s32.totalorder %s31_s30, 0  ;;  %p42_p8 = scmp.eq.s32.totalorder %s13128_s12, 0 }
  0x6e   : > { %p15251_p6 = scmp.eq.s32.totalorder %s13212_s13, 1  ;;  %p12654_p3 = scmp.lt.s32.totalorder %s13128_s12, 2 }
  0x6f   : > { %s13368_s28 = scalar_select %p32_p4, %s13124_s11, %s34_s20  }
  0x70   : > { %p13362_p10 = por %p15251_p6, %p41_p13  ;;  %p43_p5 = por %p42_p8, %p41_p13 }
  0x71   : > { %s329_s29 = sand.u32 1, %s13124_s11   ;;  %s8119_s16 = sshll.u32 %s13128_s12, 11 }
  0x72   : > { %s7952_s18 = sshll.u32 %s329_s29, 7  ;;  %s13375_s19 = scalar_lea.hbm %s15227_s0, %s8119_s16 }
  0x73   : > { %s333_s24 = scalar_lea.vmem [#allocation5], %s7952_s18  ;;  %p13379_p11 = pnand %p12654_p3, %p43_p5 }
  0x74   : > { %s340_s22 = sshll.u32 %s333_s24, 4  ;;  %s13383_s20 = scalar_lea.sflag [#allocation6], %s329_s29  ;;  %s13377_s22 = int_to_ptr.vmem [resolvable:$true] %s340_s22 }
  0x75   : > { %s13024_s30 = scalar_lea.hbm %s13375_s19, 2048  ;;  %p13026_p9 = pneg %p13379_p11 }
  0x76   : > { %p13025_p7 = scmp.ne.s32.totalorder %s13375_s19, %s13024_s30  ;;  %s13029_s21 = scalar_lea.hbm %s15227_s0, 4096 }
  0x77   : > { %p13030_p1 = scmp.lt.u32.totalorder %s13375_s19, %s15227_s0  ;;  %p13031_p2 = scmp.lt.u32.totalorder %s13029_s21, %s13024_s30 }
  0x78   : > { %p13027_p12 = pnand %p13026_p9, %p13025_p7  ;;  %p13033_p4 = scmp.lt.u32.totalorder %s13024_s30, %s13375_s19 }
  0x79   : > { %p13032_p13 = por %p13031_p2, %p13030_p1 }
  0x7a   : > { %p13028_p0 = pneg %p13027_p12 }
  0x7b   : > { %p13034_p8 = por %p13033_p4, %p13032_p13 }
  0x7d   : > { %p13035_p6 = pnand %p13034_p8, %p13028_p0 }
  0x7f   : > { %13038 = shalt.err (!%p13035_p6)
}
  0x80   : > { %s13039_s29 = scalar_lea.vmem %s13377_s22, 2048  ;;  %s13136_s18 = smov [#allocation5]  }
  0x81   : > { %p13040_p3 = scmp.ne.s32.totalorder %s13377_s22, %s13039_s29  ;;  %s13044_s16 = sshll.u32 %s13136_s18, 4  ;;  %s13045_s16 = int_to_ptr.vmem [resolvable:$false] %s13044_s16 }
  0x82   : > { %s13046_s23 = scalar_lea.vmem %s13045_s16, 4096  ;;  %p13047_p12 = scmp.lt.s32.totalorder %s13377_s22, %s13045_s16 }
  0x83   : > { %p13042_p5 = pnand %p13040_p3, %p13026_p9  ;;  %p13048_p1 = scmp.lt.s32.totalorder %s13046_s23, %s13039_s29 }
  0x85   : > { %p13043_p7 = pneg %p13042_p5  ;;  %p13049_p2 = por %p13048_p1, %p13047_p12 }
  0x87   : > { %p13050_p13 = pnand %p13049_p2, %p13043_p7 }
  0x89   : > { %13053 = shalt.err (!%p13050_p13)
}
  0x8a   : > { %12645 = dma.hbm_to_vmem [thread:$0]  (!%p13379_p11), %s13375_s19, 2048, %s13377_s22, %s13383_s20, %s13133_s25, %s13133_s25, %s13134_s26  }
  0x8b   : > { %p15254_p9 = scmp.ne.s32.totalorder %s15248_s17, 0 }
  0x8c   : > { %s13417_s30 = sand.u32 (!%p15254_p9), 1, %s13120_s10   ;;  %p15255_p0 = scmp.ne.s32.totalorder (!%p15254_p9), %s15245_s15, 0 }
  0x8d   : > { %352 = sbr.rel (%p15254_p9) target bundleno = 2272 (0x8e0), region = 56  ;;  %s7956_s21 = sshll.u32 (!%p15254_p9), %s13417_s30, 7 }
  0x8e   : > { %s355_s24 = scalar_lea.sflag (!%p15254_p9), [#allocation6], %s13417_s30  ;;  %s13423_s9 = scalar_lea.vmem (!%p15254_p9), [#allocation5], %s7956_s21 }
  0x94   : > { %13099 = dma.done.wait (%p15255_p0), %s355_s24, 2048  }
  0x95   : > { %13101 = vsyncadd (%p15255_p0), %s355_s24, 4294965248  ;;  %p15256_p11 = scmp.eq.s32.totalorder %s13212_s13, 0 }
  0x97   : > { %13103 = dma.done.wait (%p15256_p11), [#allocation9], 27648   ;;  %p15257_p4 = pmov %p15256_p11 }
  0x99   : > { %13105 = vsyncadd (%p15257_p4), [#allocation9], 4294939648  ;;  %p15258_p8 = pmov %p15257_p4 }
  0x9a   : > { %p15259_p6 = pmov %p15257_p4 }
  0x9b   : > { %13107 = dma.done.wait (%p15258_p8), [#allocation12], 36864  }
  0x9c   : > { %13109 = vsyncadd (%p15259_p6), [#allocation12], 4294930432  ;;  %vm409_vm0 = vcmask 523264   ;;  %vm419_vm1 = vcmask 516096   ;;  %vm412_vm2 = vcmask 517120   ;;  %v13137_v0 = vmov 0.0  }
  0x9d   : > { %420 = vst.msk [vmem:[#allocation2 + $0x18] sm:$0x1] %vm419_vm1, %v13137_v0  ;;  %421 = vst.msk [vmem:[#allocation2 + $0x30] sm:$0x1] %vm419_vm1, %v13137_v0  ;;  %v545_v1 = vld [vmem:[#allocation8 + $0xc0] sm:$0xff]  ;;  %v546_v2 = vld [vmem:[#allocation8 + $0xc8] sm:$0xff] }
  0x9e   : > { %410 = vst.msk [vmem:[#allocation2] sm:$0xff] %vm409_vm0, %v13137_v0  ;;  %411 = vst.msk [vmem:[#allocation2 + $0x8] sm:$0xff] %vm409_vm0, %v13137_v0  ;;  %v547_v3 = vld [vmem:[#allocation8 + $0xd0] sm:$0xff]  ;;  %v11073_v4 = vpack.c.bf16 %v546_v2, %v545_v1  ;;  %v548_v5 = vld [vmem:[#allocation8 + $0xd8] sm:$0xff]  ;;  %s15132_s26 = scalar_lea.vmem [#allocation14], %s7956_s21  ;;  %s8120_s21 = sshll.u32 %s13212_s13, 11 }
  0x9f   : > { %415 = vst.msk [vmem:[#allocation2 + $0xd8] sm:$0xff] %vm409_vm0, %v13137_v0  ;;  %416 = vst.msk [vmem:[#allocation2 + $0xe0] sm:$0xff] %vm409_vm0, %v13137_v0  ;;  %v11077_v6 = vpack.c.bf16 %v548_v5, %v547_v3  ;;  %v549_v7 = vld [vmem:[#allocation8 + $0xe0] sm:$0xff]  ;;  %v550_v8 = vld [vmem:[#allocation8 + $0xe8] sm:$0xff]  ;;  %s7834_s19 = sshll.u32 %s15132_s26, 4  ;;  %s15260_s29 = sld [smem:[#allocation21_spill]]  ;;  %s15181_s19 = int_to_ptr.vmem [resolvable:$true] %s7834_s19 }
  0xa0   : > { %422 = vst.msk [vmem:[#allocation2 + $0x48] sm:$0x1] %vm419_vm1, %v13137_v0  ;;  %423 = vst.msk [vmem:[#allocation2 + $0x60] sm:$0x1] %vm419_vm1, %v13137_v0  ;;  %v484_v9 = vld [vmem:[%s13423_s9] sm:$0xff]  ;;  %11074 = vmatprep.subr.bf16.mxu0 %v11073_v4  ;;  %v485_v10 = vld [vmem:[%s13423_s9 + $0x8] sm:$0xff]  ;;  %v11081_v14 = vpack.c.bf16 %v550_v8, %v549_v7 }
  0xa1   : > { %424 = vst.msk [vmem:[#allocation2 + $0x78] sm:$0x1] %vm419_vm1, %v13137_v0  ;;  %425 = vst.msk [vmem:[#allocation2 + $0x90] sm:$0x1] %vm419_vm1, %v13137_v0  ;;  %11076 = vmatpush3.bf16.msra.mxu0 %v11073_v4  ;;  %v486_v11 = vld [vmem:[%s13423_s9 + $0x10] sm:$0xff]  ;;  %v487_v12 = vld [vmem:[%s13423_s9 + $0x18] sm:$0xff] }
  0xa2   : > { %426 = vst.msk [vmem:[#allocation2 + $0xa8] sm:$0x1] %vm419_vm1, %v13137_v0  ;;  %427 = vst.msk [vmem:[#allocation2 + $0xc0] sm:$0x1] %vm419_vm1, %v13137_v0  ;;  %v488_v13 = vld [vmem:[%s13423_s9 + $0x20] sm:$0xff]  ;;  %11078 = vmatprep.subr.bf16.mxu0 %v11077_v6  ;;  %v551_v15 = vld [vmem:[#allocation8 + $0xf0] sm:$0xff] }
  0xa3   : > { %428 = vst.msk [vmem:[#allocation2 + $0x29] sm:$0x1] %vm419_vm1, %v13137_v0  ;;  %429 = vst.msk [vmem:[#allocation2 + $0x41] sm:$0x1] %vm419_vm1, %v13137_v0  ;;  %v552_v16 = vld [vmem:[#allocation8 + $0xf8] sm:$0xff]  ;;  %v489_v17 = vld [vmem:[%s13423_s9 + $0x28] sm:$0xff] }
  0xa4   : > { %430 = vst.msk [vmem:[#allocation2 + $0x59] sm:$0x1] %vm419_vm1, %v13137_v0  ;;  %431 = vst.msk [vmem:[#allocation2 + $0x71] sm:$0x1] %vm419_vm1, %v13137_v0  ;;  %v490_v18 = vld [vmem:[%s13423_s9 + $0x30] sm:$0xff]  ;;  %v491_v19 = vld [vmem:[%s13423_s9 + $0x38] sm:$0xff]  ;;  %v11085_v25 = vpack.c.bf16 %v552_v16, %v551_v15 }
  0xa5   : > { %432 = vst.msk [vmem:[#allocation2 + $0x89] sm:$0x1] %vm419_vm1, %v13137_v0  ;;  %433 = vst.msk [vmem:[#allocation2 + $0xa1] sm:$0x1] %vm419_vm1, %v13137_v0  ;;  %v492_v20 = vld [vmem:[%s13423_s9 + $0x40] sm:$0xff]  ;;  %v493_v21 = vld [vmem:[%s13423_s9 + $0x48] sm:$0xff]  ;;  %11080 = vmatpush3.bf16.msra.mxu0 %v11077_v6  ;;  %s15179_s18 = scalar_lea.hbm %s15260_s29, %s8120_s21 }
  0xa6   : > { %434 = vst.msk [vmem:[#allocation2 + $0xb9] sm:$0x1] %vm419_vm1, %v13137_v0  ;;  %435 = vst.msk [vmem:[#allocation2 + $0xd1] sm:$0x1] %vm419_vm1, %v13137_v0  ;;  %v494_v22 = vld [vmem:[%s13423_s9 + $0x50] sm:$0xff]  ;;  %v495_v23 = vld [vmem:[%s13423_s9 + $0x58] sm:$0xff]  ;;  %11082 = vmatprep.subr.bf16.mxu0 %v11081_v14 }
  0xa7   : > { %436 = vst [vmem:[#allocation3] sm:$0xff] %v13137_v0  ;;  %437 = vst [vmem:[#allocation3 + $0x8] sm:$0xff] %v13137_v0  ;;  %v496_v24 = vld [vmem:[%s13423_s9 + $0x60] sm:$0xff]  ;;  %v537_v27 = vld [vmem:[#allocation8 + $0x8] sm:$0xff]  ;;  %s7821_s13 = scalar_lea.sflag [#allocation7], %s13417_s30  ;;  %s13054_s16 = scalar_lea.vmem %s15181_s19, 2048 }
  0xa8   : > { %438 = vst [vmem:[#allocation3 + $0x10] sm:$0x3] %v13137_v0  ;;  %440 = vst [vmem:[#allocation3 + $0xd8] sm:$0xff] %v13137_v0  ;;  %v536_v26 = vld [vmem:[#allocation8] sm:$0xff]  ;;  %v497_v28 = vld [vmem:[%s13423_s9 + $0x68] sm:$0xff]  ;;  %p13055_p3 = scmp.ne.s32.totalorder %s15181_s19, %s13054_s16  ;;  %s13138_s23 = smov [#allocation14]  }
  0xa9   : > { %441 = vst [vmem:[#allocation3 + $0xe0] sm:$0xff] %v13137_v0  ;;  %442 = vst [vmem:[#allocation3 + $0xe8] sm:$0x3] %v13137_v0  ;;  %v498_v30 = vld [vmem:[%s13423_s9 + $0x70] sm:$0xff]  ;;  %v499_v31 = vld [vmem:[%s13423_s9 + $0x78] sm:$0xff]  ;;  %11084 = vmatpush3.bf16.msra.mxu0 %v11081_v14  ;;  %v11089_v32 = vpack.c.bf16 %v537_v27, %v536_v26  ;;  %s13058_s24 = sshll.u32 %s13138_s23, 4  ;;  %s13059_s24 = int_to_ptr.vmem [resolvable:$false] %s13058_s24 }
  0xaa   : > { %444 = vst [vmem:[#allocation3 + $0x18] sm:$0x1] %v13137_v0  ;;  %445 = vst [vmem:[#allocation3 + $0x30] sm:$0x1] %v13137_v0  ;;  %11086 = vmatprep.subr.bf16.mxu0 %v11085_v25  ;;  %v538_v33 = vld [vmem:[#allocation8 + $0x10] sm:$0xff]  ;;  %v539_v34 = vld [vmem:[#allocation8 + $0x18] sm:$0xff]  ;;  %p13056_p5 = pnand %p13055_p3, %p13362_p10  ;;  %p13061_p12 = scmp.lt.s32.totalorder %s15181_s19, %s13059_s24 }
  0xab   : > { %446 = vst [vmem:[#allocation3 + $0x48] sm:$0x1] %v13137_v0  ;;  %447 = vst [vmem:[#allocation3 + $0x60] sm:$0x1] %v13137_v0  ;;  %v11093_v37 = vpack.c.bf16 %v539_v34, %v538_v33  ;;  %v540_v38 = vld [vmem:[#allocation8 + $0x20] sm:$0xff]  ;;  %v541_v39 = vld [vmem:[#allocation8 + $0x28] sm:$0xff] }
  0xac   : > { %448 = vst [vmem:[#allocation3 + $0x78] sm:$0x1] %v13137_v0  ;;  %449 = vst [vmem:[#allocation3 + $0x90] sm:$0x1] %v13137_v0  ;;  %v11097_v42 = vpack.c.bf16 %v541_v39, %v540_v38  ;;  %v542_v43 = vld [vmem:[#allocation8 + $0x30] sm:$0xff]  ;;  %v543_v44 = vld [vmem:[#allocation8 + $0x38] sm:$0xff]  ;;  %p13057_p7 = pneg %p13056_p5 }
  0xad   : > { %450 = vst [vmem:[#allocation3 + $0xa8] sm:$0x1] %v13137_v0  ;;  %451 = vst [vmem:[#allocation3 + $0xc0] sm:$0x1] %v13137_v0  ;;  %11088 = vmatpush3.bf16.msra.mxu0 %v11085_v25  ;;  %v11101_v47 = vpack.c.bf16 %v543_v44, %v542_v43  ;;  %v898_v48 = vld [vmem:[#allocation8 + $0x180] sm:$0xff]  ;;  %v899_v49 = vld [vmem:[#allocation8 + $0x188] sm:$0xff] }
  0xae   : > { %452 = vst [vmem:[#allocation3 + $0x29] sm:$0x1] %v13137_v0  ;;  %453 = vst [vmem:[#allocation3 + $0x41] sm:$0x1] %v13137_v0  ;;  %11090 = vmatprep.subr.bf16.mxu0 %v11089_v32  ;;  %v11105_v52 = vpack.c.bf16 %v899_v49, %v898_v48  ;;  %v516_v60 = vld [vmem:[#allocation2] sm:$0xff]  ;;  %v901_v62 = vld [vmem:[#allocation8 + $0x198] sm:$0xff] }
  0xaf   : > { %454 = vst [vmem:[#allocation3 + $0x59] sm:$0x1] %v13137_v0  ;;  %455 = vst [vmem:[#allocation3 + $0x71] sm:$0x1] %v13137_v0  ;;  %v900_v61 = vld [vmem:[#allocation8 + $0x190] sm:$0xff]  ;;  %v517_v63 = vld [vmem:[#allocation2 + $0x8] sm:$0xff] }
  0xb0   : > { %456 = vst [vmem:[#allocation3 + $0x89] sm:$0x1] %v13137_v0  ;;  %457 = vst [vmem:[#allocation3 + $0xa1] sm:$0x1] %v13137_v0  ;;  %v902_v1 = vld [vmem:[#allocation8 + $0x1a0] sm:$0xff]  ;;  %v903_v2 = vld [vmem:[#allocation8 + $0x1a8] sm:$0xff] }
  0xb1   : > { %458 = vst [vmem:[#allocation3 + $0xb9] sm:$0x1] %v13137_v0  ;;  %459 = vst [vmem:[#allocation3 + $0xd1] sm:$0x1] %v13137_v0  ;;  %v11113_v3 = vpack.c.bf16 %v903_v2, %v902_v1  ;;  %v904_v4 = vld [vmem:[#allocation8 + $0x1b0] sm:$0xff]  ;;  %v905_v5 = vld [vmem:[#allocation8 + $0x1b8] sm:$0xff] }
  0xb2   : > { %460 = vst [vmem:[#allocation4] sm:$0xff] %v13137_v0  ;;  %461 = vst [vmem:[#allocation4 + $0x8] sm:$0xff] %v13137_v0  ;;  %v11117_v6 = vpack.c.bf16 %v905_v5, %v904_v4  ;;  %v1094_v7 = vld [vmem:[#allocation8 + $0x40] sm:$0xff]  ;;  %v1095_v8 = vld [vmem:[#allocation8 + $0x48] sm:$0xff]  ;;  %s13060_s9 = scalar_lea.vmem %s13059_s24, 4096 }
  0xb3   : > { %462 = vst [vmem:[#allocation4 + $0x10] sm:$0x3] %v13137_v0  ;;  %464 = vst [vmem:[#allocation4 + $0xd8] sm:$0xff] %v13137_v0  ;;  %v1099_v14 = vld [vmem:[#allocation8 + $0x68] sm:$0xff]  ;;  %v1100_v16 = vld [vmem:[#allocation8 + $0x70] sm:$0xff]  ;;  %p13062_p1 = scmp.lt.s32.totalorder %s13060_s9, %s13054_s16 }
  0xb4   : > { %465 = vst [vmem:[#allocation4 + $0xe0] sm:$0xff] %v13137_v0  ;;  %466 = vst [vmem:[#allocation4 + $0xe8] sm:$0x3] %v13137_v0  ;;  %v1314_v25 = vld [vmem:[#allocation8 + $0x110] sm:$0xff]  ;;  %v1315_v26 = vld [vmem:[#allocation8 + $0x118] sm:$0xff] }
  0xb5   : > { %468 = vst [vmem:[#allocation4 + $0x18] sm:$0x1] %v13137_v0  ;;  %469 = vst [vmem:[#allocation4 + $0x30] sm:$0x1] %v13137_v0  ;;  %v1686_v2 = vld [vmem:[#allocation8 + $0x90] sm:$0xff]  ;;  %v1688_v5 = vld [vmem:[#allocation8 + $0xa0] sm:$0xff]  ;;  %p13063_p2 = por %p13062_p1, %p13061_p12 }
  0xb6   : > { %470 = vst [vmem:[#allocation4 + $0x48] sm:$0x1] %v13137_v0  ;;  %471 = vst [vmem:[#allocation4 + $0x60] sm:$0x1] %v13137_v0 }
  0xb7   : > { %472 = vst [vmem:[#allocation4 + $0x78] sm:$0x1] %v13137_v0  ;;  %473 = vst [vmem:[#allocation4 + $0x90] sm:$0x1] %v13137_v0  ;;  %p13064_p13 = pnand %p13063_p2, %p13057_p7 }
  0xb8   : > { %474 = vst [vmem:[#allocation4 + $0xa8] sm:$0x1] %v13137_v0  ;;  %475 = vst [vmem:[#allocation4 + $0xc0] sm:$0x1] %v13137_v0 }
  0xb9   : > { %476 = vst [vmem:[#allocation4 + $0x29] sm:$0x1] %v13137_v0  ;;  %477 = vst [vmem:[#allocation4 + $0x41] sm:$0x1] %v13137_v0 }
  0xba   : > { %478 = vst [vmem:[#allocation4 + $0x59] sm:$0x1] %v13137_v0  ;;  %479 = vst [vmem:[#allocation4 + $0x71] sm:$0x1] %v13137_v0 }
  0xbb   : > { %480 = vst [vmem:[#allocation4 + $0x89] sm:$0x1] %v13137_v0  ;;  %481 = vst [vmem:[#allocation4 + $0xa1] sm:$0x1] %v13137_v0 }
  0xbc   : > { %482 = vst [vmem:[#allocation4 + $0xb9] sm:$0x1] %v13137_v0  ;;  %483 = vst [vmem:[#allocation4 + $0xd1] sm:$0x1] %v13137_v0 }
  0xbd   : > { %413 = vst.msk [vmem:[#allocation2 + $0x10] sm:$0x3] %vm412_vm2, %v13137_v0  ;;  %417 = vst.msk [vmem:[#allocation2 + $0xe8] sm:$0x3] %vm412_vm2, %v13137_v0  ;;  %v11109_v0 = vpack.c.bf16 %v901_v62, %v900_v61  ;;  %v1684_v61 = vld [vmem:[#allocation8 + $0x80] sm:$0xff]  ;;  %v1685_v62 = vld [vmem:[#allocation8 + $0x88] sm:$0xff] }
  0xbe   : > { %500 = vst.msk [vmem:[#allocation2 + $0x19] sm:$0xff] %vm409_vm0, %v484_v9  ;;  %501 = vst.msk [vmem:[#allocation2 + $0x21] sm:$0xff] %vm409_vm0, %v485_v10  ;;  %v11121_v9 = vpack.c.bf16 %v1095_v8, %v1094_v7  ;;  %v1096_v10 = vld [vmem:[#allocation8 + $0x50] sm:$0xff] }
  0xbf   : > { %502 = vst.msk [vmem:[#allocation2 + $0x31] sm:$0xff] %vm409_vm0, %v486_v11  ;;  %503 = vst.msk [vmem:[#allocation2 + $0x39] sm:$0xff] %vm409_vm0, %v487_v12  ;;  %v1097_v11 = vld [vmem:[#allocation8 + $0x58] sm:$0xff]  ;;  %v1690_v8 = vld [vmem:[#allocation8 + $0xb0] sm:$0xff] }
  0xc0   : > { %504 = vst.msk [vmem:[#allocation2 + $0x49] sm:$0xff] %vm409_vm0, %v488_v13  ;;  %505 = vst.msk [vmem:[#allocation2 + $0x51] sm:$0xff] %vm409_vm0, %v489_v17  ;;  %v11125_v12 = vpack.c.bf16 %v1097_v11, %v1096_v10  ;;  %v1098_v13 = vld [vmem:[#allocation8 + $0x60] sm:$0xff]  ;;  %v1101_v17 = vld [vmem:[#allocation8 + $0x78] sm:$0xff] }
  0xc1   : > { %506 = vst.msk [vmem:[#allocation2 + $0x61] sm:$0xff] %vm409_vm0, %v490_v18  ;;  %507 = vst.msk [vmem:[#allocation2 + $0x69] sm:$0xff] %vm409_vm0, %v491_v19  ;;  %v11129_v15 = vpack.c.bf16 %v1099_v14, %v1098_v13  ;;  %v11133_v18 = vpack.c.bf16 %v1101_v17, %v1100_v16  ;;  %v1312_v19 = vld [vmem:[#allocation8 + $0x100] sm:$0xff]  ;;  %v1091_v14 = vld [vmem:[#allocation2 + $0xd9] sm:$0xff] }
  0xc2   : > { %508 = vst.msk [vmem:[#allocation2 + $0x79] sm:$0xff] %vm409_vm0, %v492_v20  ;;  %509 = vst.msk [vmem:[#allocation2 + $0x81] sm:$0xff] %vm409_vm0, %v493_v21  ;;  %v1313_v20 = vld [vmem:[#allocation8 + $0x108] sm:$0xff]  ;;  %v1902_v11 = vld [vmem:[#allocation8 + $0x140] sm:$0xff] }
  0xc3   : > { %510 = vst.msk [vmem:[#allocation2 + $0x91] sm:$0xff] %vm409_vm0, %v494_v22  ;;  %511 = vst.msk [vmem:[#allocation2 + $0x99] sm:$0xff] %vm409_vm0, %v495_v23  ;;  %v11137_v21 = vpack.c.bf16 %v1313_v20, %v1312_v19  ;;  %v534_v22 = vld [vmem:[#allocation2 + $0xd8] sm:$0xff]  ;;  %v535_v23 = vld [vmem:[#allocation2 + $0xe0] sm:$0xff] }
  0xc4   : > { %512 = vst.msk [vmem:[#allocation2 + $0xa9] sm:$0xff] %vm409_vm0, %v496_v24  ;;  %513 = vst.msk [vmem:[#allocation2 + $0xb1] sm:$0xff] %vm409_vm0, %v497_v28  ;;  %v1073_v24 = vld [vmem:[#allocation2 + $0x1] sm:$0xff]  ;;  %v1074_v27 = vld [vmem:[#allocation2 + $0x9] sm:$0xff] }
  0xc5   : > { %v13552_v29 = vld [vmem:[#allocation2 + $0x18] sm:$0xff]  ;;  %514 = vst.msk [vmem:[#allocation2 + $0xc1] sm:$0xff] %vm409_vm0, %v498_v30  ;;  %515 = vst.msk [vmem:[#allocation2 + $0xc9] sm:$0xff] %vm409_vm0, %v499_v31  ;;  %v13561_v35 = vld [vmem:[#allocation2 + $0x20] sm:$0xff] }
  0xc6   : > { %9217 = vmatprep.mubr.msk.f32.mxu0 %vm409_vm0, %v13552_v29  ;;  %v13563_v36 = vld [vmem:[#allocation2 + $0x30] sm:$0xff]  ;;  %v13569_v40 = vld [vmem:[#allocation2 + $0x38] sm:$0xff]  ;;  %v1663_v16 = vld [vmem:[#allocation2 + $0x2] sm:$0xff] }
  0xc7   : > { %9218 = vmatmul.mubr.msk.f32.vlgmr.msra.gmra.mrb[0].mxu0 %vm409_vm0, %v13561_v35  ;;  %v13571_v41 = vld [vmem:[#allocation2 + $0x48] sm:$0xff]  ;;  %v13577_v45 = vld [vmem:[#allocation2 + $0x50] sm:$0xff]  ;;  %v1075_v28 = vld [vmem:[#allocation2 + $0x19] sm:$0xff] }
  0xc8   : > { %11092 = vmatpush3.bf16.msra.mxu0 %v11089_v32  ;;  %9220 = vmatprep.mubr.msk.f32.mxu0 %vm409_vm0, %v13563_v36  ;;  %v13579_v46 = vld [vmem:[#allocation2 + $0x60] sm:$0xff]  ;;  %v13585_v50 = vld [vmem:[#allocation2 + $0x68] sm:$0xff]  ;;  %v1316_v30 = vld [vmem:[#allocation8 + $0x120] sm:$0xff] }
  0xc9   : > { %11094 = vmatprep.subr.bf16.mxu0 %v11093_v37  ;;  %v13587_v51 = vld [vmem:[#allocation2 + $0x78] sm:$0xff]  ;;  %v13593_v53 = vld [vmem:[#allocation2 + $0x80] sm:$0xff]  ;;  %v13691_v38 = vld [vmem:[#allocation2 + $0x49] sm:$0xff] }
  0xca   : > { %v13595_v54 = vld [vmem:[#allocation2 + $0x90] sm:$0xff]  ;;  %v13601_v55 = vld [vmem:[#allocation2 + $0x98] sm:$0xff]  ;;  %v1076_v32 = vld [vmem:[#allocation2 + $0x21] sm:$0xff] }
  0xcb   : > { %9221 = vmatmul.mubr.msk.f32.gmra.mrb[2].mxu0 %vm409_vm0, %v13569_v40  ;;  %v13603_v56 = vld [vmem:[#allocation2 + $0xa8] sm:$0xff]  ;;  %v13609_v57 = vld [vmem:[#allocation2 + $0xb0] sm:$0xff]  ;;  %v1317_v31 = vld [vmem:[#allocation8 + $0x128] sm:$0xff] }
  0xcc   : > { %9223 = vmatprep.mubr.msk.f32.mxu0 %vm409_vm0, %v13571_v41  ;;  %11096 = vmatpush3.bf16.msra.mxu0 %v11093_v37  ;;  %v13611_v58 = vld [vmem:[#allocation2 + $0xc0] sm:$0xff]  ;;  %v13617_v59 = vld [vmem:[#allocation2 + $0xc8] sm:$0xff]  ;;  %v13684_v33 = vld [vmem:[#allocation2 + $0x31] sm:$0xff]  ;;  %v11145_v34 = vpack.c.bf16 %v1317_v31, %v1316_v30 }
  0xcd   : > { %11098 = vmatprep.subr.bf16.mxu0 %v11097_v42  ;;  %v13689_v37 = vld [vmem:[#allocation2 + $0x39] sm:$0xff]  ;;  %v13699_v43 = vld [vmem:[#allocation2 + $0x61] sm:$0xff]  ;;  %v13715_v48 = vld [vmem:[#allocation2 + $0x91] sm:$0xff] }
  0xce   : > { %v13721_v49 = vld [vmem:[#allocation2 + $0x99] sm:$0xff]  ;;  %v1090_v1 = vld [vmem:[#allocation2 + $0xc9] sm:$0xff] }
  0xcf   : > { %9224 = vmatmul.mubr.msk.f32.gmra.mrb[4].mxu0 %vm409_vm0, %v13577_v45  ;;  %v1904_v17 = vld [vmem:[#allocation8 + $0x150] sm:$0xff]  ;;  %v1664_v19 = vld [vmem:[#allocation2 + $0xa] sm:$0xff] }
  0xd0   : > { %9226 = vmatprep.mubr.msk.f32.mxu0 %vm409_vm0, %v13579_v46  ;;  %11100 = vmatpush3.bf16.msra.mxu0 %v11097_v42  ;;  %v13697_v42 = vld [vmem:[#allocation2 + $0x51] sm:$0xff]  ;;  %v1665_v20 = vld [vmem:[#allocation2 + $0x1a] sm:$0xff] }
  0xd1   : > { %11102 = vmatprep.subr.bf16.mxu0 %v11101_v47  ;;  %v13799_v30 = vld [vmem:[#allocation2 + $0x4a] sm:$0xff] }
  0xd3   : > { %9227 = vmatmul.mubr.msk.f32.gmra.mrb[6].mxu0 %vm409_vm0, %v13585_v50 }
  0xd4   : > { %9229 = vmatprep.mubr.msk.f32.mxu0 %vm409_vm0, %v13587_v51  ;;  %11104 = vmatpush3.bf16.msra.mxu0 %v11101_v47  ;;  %v13713_v47 = vld [vmem:[#allocation2 + $0x81] sm:$0xff] }
  0xd5   : > { %11106 = vmatprep.subr.bf16.mxu0 %v11105_v52 }
  0xd7   : > { %9230 = vmatmul.mubr.msk.f32.gmra.mrb[8].mxu0 %vm409_vm0, %v13593_v53 }
  0xd8   : > { %9232 = vmatprep.mubr.msk.f32.mxu0 %vm409_vm0, %v13595_v54 }
  0xdb   : > { %9233 = vmatmul.mubr.msk.f32.gmra.mrb[10].mxu0 %vm409_vm0, %v13601_v55 }
  0xdc   : > { %9235 = vmatprep.mubr.msk.f32.mxu0 %vm409_vm0, %v13603_v56 }
  0xdf   : > { %9236 = vmatmul.mubr.msk.f32.gmra.mrb[12].mxu0 %vm409_vm0, %v13609_v57 }
  0xe0   : > { %9238 = vmatprep.mubr.msk.f32.mxu0 %vm409_vm0, %v13611_v58 }
  0xe3   : > { %9239 = vmatmul.mubr.msk.f32.gmra.mrb[14].mxu0 %vm409_vm0, %v13617_v59 }
  0xe4   : > { %9257 = vmatprep.mubr.msk.f32.mxu0 %vm409_vm0, %v516_v60 }
  0xe7   : > { %9258 = vmatmul.mubr.msk.f32.vlgmr.msra.gmra.mrb[0].mxu0 %vm409_vm0, %v517_v63  ;;  %v11169_v63 = vpack.c.bf16 %v1685_v62, %v1684_v61  ;;  %v2495_v61 = vld [vmem:[#allocation10 + $0x198] sm:$0xff] }
  0xe8   : > { %11108 = vmatpush3.bf16.msra.mxu0 %v11105_v52  ;;  %9260 = vmatprep.mubr.msk.f32.mxu0 %vm409_vm0, %v13552_v29  ;;  %v11141_v29 = vpack.c.bf16 %v1315_v26, %v1314_v25  ;;  %v1490_v52 = vld [vmem:[#allocation8 + $0x1d0] sm:$0xff]  ;;  %v13792_v25 = vld [vmem:[#allocation2 + $0x32] sm:$0xff] }
  0xe9   : > { %11110 = vmatprep.subr.bf16.mxu0 %v11109_v0 }
  0xeb   : > { %9261 = vmatmul.mubr.msk.f32.gmra.mrb[2].mxu0 %vm409_vm0, %v13561_v35  ;;  %v1318_v35 = vld [vmem:[#allocation8 + $0x130] sm:$0xff] }
  0xec   : > { %9263 = vmatprep.mubr.msk.f32.mxu0 %vm409_vm0, %v13563_v36  ;;  %11112 = vmatpush3.bf16.msra.mxu0 %v11109_v0  ;;  %v1089_v0 = vld [vmem:[#allocation2 + $0xc1] sm:$0xff] }
  0xed   : > { %11114 = vmatprep.subr.bf16.mxu0 %v11113_v3 }
  0xef   : > { %9264 = vmatmul.mubr.msk.f32.gmra.mrb[4].mxu0 %vm409_vm0, %v13569_v40 }
  0xf0   : > { %9266 = vmatprep.mubr.msk.f32.mxu0 %vm409_vm0, %v13571_v41  ;;  %11116 = vmatpush3.bf16.msra.mxu0 %v11113_v3  ;;  %v1687_v3 = vld [vmem:[#allocation8 + $0x98] sm:$0xff] }
  0xf1   : > { %11118 = vmatprep.subr.bf16.mxu0 %v11117_v6  ;;  %v11173_v4 = vpack.c.bf16 %v1687_v3, %v1686_v2  ;;  %v2498_v2 = vld [vmem:[#allocation10 + $0x1b0] sm:$0xff]  ;;  %v2499_v3 = vld [vmem:[#allocation10 + $0x1b8] sm:$0xff] }
  0xf3   : > { %9267 = vmatmul.mubr.msk.f32.gmra.mrb[6].mxu0 %vm409_vm0, %v13577_v45 }
  0xf4   : > { %9269 = vmatprep.mubr.msk.f32.mxu0 %vm409_vm0, %v13579_v46  ;;  %11120 = vmatpush3.bf16.msra.mxu0 %v11117_v6  ;;  %v1689_v6 = vld [vmem:[#allocation8 + $0xa8] sm:$0xff] }
  0xf5   : > { %11122 = vmatprep.subr.bf16.mxu0 %v11121_v9  ;;  %v11177_v7 = vpack.c.bf16 %v1689_v6, %v1688_v5  ;;  %v2500_v5 = vld [vmem:[#allocation10 + $0x1c0] sm:$0xff]  ;;  %v2501_v6 = vld [vmem:[#allocation10 + $0x1c8] sm:$0xff] }
  0xf7   : > { %9270 = vmatmul.mubr.msk.f32.gmra.mrb[8].mxu0 %vm409_vm0, %v13585_v50 }
  0xf8   : > { %9272 = vmatprep.mubr.msk.f32.mxu0 %vm409_vm0, %v13587_v51 }
  0xfb   : > { %9273 = vmatmul.mubr.msk.f32.gmra.mrb[10].mxu0 %vm409_vm0, %v13593_v53 }
  0xfc   : > { %9275 = vmatprep.mubr.msk.f32.mxu0 %vm409_vm0, %v13595_v54 }
  0xff   : > { %9276 = vmatmul.mubr.msk.f32.gmra.mrb[12].mxu0 %vm409_vm0, %v13601_v55 }
 0x100   : > { %9278 = vmatprep.mubr.msk.f32.mxu0 %vm409_vm0, %v13603_v56 }
 0x103   : > { %9279 = vmatmul.mubr.msk.f32.gmra.mrb[14].mxu0 %vm409_vm0, %v13609_v57 }
 0x104   : > { %9297 = vmatprep.mubr.msk.f32.mxu0 %vm409_vm0, %v13563_v36  ;;  %v1319_v36 = vld [vmem:[#allocation8 + $0x138] sm:$0xff] }
 0x105   : > { %v11149_v39 = vpack.c.bf16 %v1319_v36, %v1318_v35  ;;  %v1671_v35 = vld [vmem:[#allocation2 + $0x62] sm:$0xff] }
 0x107   : > { %9298 = vmatmul.mubr.msk.f32.vlgmr.msra.gmra.mrb[0].mxu0 %vm409_vm0, %v13569_v40  ;;  %v1488_v40 = vld [vmem:[#allocation8 + $0x1c0] sm:$0xff] }
 0x108   : > { %11124 = vmatpush3.bf16.msra.mxu0 %v11121_v9  ;;  %9300 = vmatprep.mubr.msk.f32.mxu0 %vm409_vm0, %v13571_v41  ;;  %v1489_v41 = vld [vmem:[#allocation8 + $0x1c8] sm:$0xff]  ;;  %v1691_v9 = vld [vmem:[#allocation8 + $0xb8] sm:$0xff] }
 0x109   : > { %11126 = vmatprep.subr.bf16.mxu0 %v11125_v12  ;;  %v11153_v44 = vpack.c.bf16 %v1489_v41, %v1488_v40  ;;  %v11181_v10 = vpack.c.bf16 %v1691_v9, %v1690_v8  ;;  %v1675_v40 = vld [vmem:[#allocation2 + $0x92] sm:$0xff]  ;;  %v1676_v41 = vld [vmem:[#allocation2 + $0x9a] sm:$0xff]  ;;  %v2503_v9 = vld [vmem:[#allocation10 + $0x1d8] sm:$0xff] }
 0x10a   : > { %v2502_v8 = vld [vmem:[#allocation10 + $0x1d0] sm:$0xff] }
 0x10b   : > { %9301 = vmatmul.mubr.msk.f32.gmra.mrb[2].mxu0 %vm409_vm0, %v13577_v45  ;;  %v13705_v45 = vld [vmem:[#allocation2 + $0x69] sm:$0xff] }
 0x10c   : > { %9303 = vmatprep.mubr.msk.f32.mxu0 %vm409_vm0, %v13579_v46  ;;  %11128 = vmatpush3.bf16.msra.mxu0 %v11125_v12  ;;  %v13707_v46 = vld [vmem:[#allocation2 + $0x79] sm:$0xff] }
 0x10d   : > { %11130 = vmatprep.subr.bf16.mxu0 %v11129_v15  ;;  %v1903_v12 = vld [vmem:[#allocation8 + $0x148] sm:$0xff] }
 0x10e   : > { %v11185_v13 = vpack.c.bf16 %v1903_v12, %v1902_v11  ;;  %v2504_v11 = vld [vmem:[#allocation10 + $0x1e0] sm:$0xff]  ;;  %v2505_v12 = vld [vmem:[#allocation10 + $0x1e8] sm:$0xff] }
 0x10f   : > { %9304 = vmatmul.mubr.msk.f32.gmra.mrb[4].mxu0 %vm409_vm0, %v13585_v50  ;;  %v13723_v50 = vld [vmem:[#allocation2 + $0xa9] sm:$0xff] }
 0x110   : > { %9306 = vmatprep.mubr.msk.f32.mxu0 %vm409_vm0, %v13587_v51  ;;  %11132 = vmatpush3.bf16.msra.mxu0 %v11129_v15  ;;  %v13729_v51 = vld [vmem:[#allocation2 + $0xb1] sm:$0xff]  ;;  %v1092_v15 = vld [vmem:[#allocation2 + $0xe1] sm:$0xff] }
 0x111   : > { %11134 = vmatprep.subr.bf16.mxu0 %v11133_v18 }
 0x113   : > { %9307 = vmatmul.mubr.msk.f32.gmra.mrb[6].mxu0 %vm409_vm0, %v13593_v53  ;;  %v1491_v53 = vld [vmem:[#allocation8 + $0x1d8] sm:$0xff] }
 0x114   : > { %9309 = vmatprep.mubr.msk.f32.mxu0 %vm409_vm0, %v13595_v54  ;;  %11136 = vmatpush3.bf16.msra.mxu0 %v11133_v18  ;;  %v11157_v54 = vpack.c.bf16 %v1491_v53, %v1490_v52  ;;  %v1905_v18 = vld [vmem:[#allocation8 + $0x158] sm:$0xff] }
 0x115   : > { %11138 = vmatprep.subr.bf16.mxu0 %v11137_v21  ;;  %v1679_v53 = vld [vmem:[#allocation2 + $0xc2] sm:$0xff] }
 0x117   : > { %9310 = vmatmul.mubr.msk.f32.gmra.mrb[8].mxu0 %vm409_vm0, %v13601_v55  ;;  %v1492_v55 = vld [vmem:[#allocation8 + $0x1e0] sm:$0xff] }
 0x118   : > { %9312 = vmatprep.mubr.msk.f32.mxu0 %vm409_vm0, %v13603_v56  ;;  %v1493_v56 = vld [vmem:[#allocation8 + $0x1e8] sm:$0xff] }
 0x11b   : > { %9313 = vmatmul.mubr.msk.f32.gmra.mrb[10].mxu0 %vm409_vm0, %v13609_v57  ;;  %v11161_v57 = vpack.c.bf16 %v1493_v56, %v1492_v55  ;;  %v1681_v55 = vld [vmem:[#allocation2 + $0xda] sm:$0xff]  ;;  %v1682_v56 = vld [vmem:[#allocation2 + $0xe2] sm:$0xff] }
 0x11c   : > { %9315 = vmatprep.mubr.msk.f32.mxu0 %vm409_vm0, %v13611_v58  ;;  %v1494_v58 = vld [vmem:[#allocation8 + $0x1f0] sm:$0xff] }
 0x11f   : > { %9316 = vmatmul.mubr.msk.f32.gmra.mrb[12].mxu0 %vm409_vm0, %v13617_v59  ;;  %v1495_v59 = vld [vmem:[#allocation8 + $0x1f8] sm:$0xff] }
 0x120   : > { %9318 = vmatprep.mubr.msk.f32.mxu0 %vm409_vm0, %v534_v22  ;;  %v11165_v60 = vpack.c.bf16 %v1495_v59, %v1494_v58  ;;  %v1906_v22 = vld [vmem:[#allocation8 + $0x160] sm:$0xff]  ;;  %v2493_v58 = vld [vmem:[#allocation10 + $0x188] sm:$0xff] }
 0x123   : > { %9319 = vmatmul.mubr.msk.f32.gmra.mrb[14].mxu0 %vm409_vm0, %v535_v23  ;;  %v1907_v23 = vld [vmem:[#allocation8 + $0x168] sm:$0xff] }
 0x124   : > { %9337 = vmatprep.mubr.msk.f32.mxu0 %vm409_vm0, %v1073_v24  ;;  %v1666_v24 = vld [vmem:[#allocation2 + $0x22] sm:$0xff]  ;;  %v11193_v26 = vpack.c.bf16 %v1907_v23, %v1906_v22  ;;  %v13863_v22 = vld [vmem:[%s15232_s5 + $0x1] ss:$0 sm:$0xff] }
 0x127   : > { %9338 = vmatmul.mubr.msk.f32.vlgmr.msra.gmra.mrb[0].mxu0 %vm409_vm0, %v1074_v27  ;;  %v1908_v27 = vld [vmem:[#allocation8 + $0x170] sm:$0xff] }
 0x128   : > { %11140 = vmatpush3.bf16.msra.mxu0 %v11137_v21  ;;  %9340 = vmatprep.mubr.msk.f32.mxu0 %vm409_vm0, %v1075_v28  ;;  %v11189_v21 = vpack.c.bf16 %v1905_v18, %v1904_v17  ;;  %v2475_v17 = vld [vmem:[#allocation10] sm:$0xff]  ;;  %v2476_v18 = vld [vmem:[#allocation10 + $0x8] sm:$0xff] }
 0x129   : > { %11142 = vmatprep.subr.bf16.mxu0 %v11141_v29 }
 0x12b   : > { %9341 = vmatmul.mubr.msk.f32.gmra.mrb[2].mxu0 %vm409_vm0, %v1076_v32 }
 0x12c   : > { %9343 = vmatprep.mubr.msk.f32.mxu0 %vm409_vm0, %v13684_v33  ;;  %11144 = vmatpush3.bf16.msra.mxu0 %v11141_v29  ;;  %v13797_v29 = vld [vmem:[#allocation2 + $0x3a] sm:$0xff] }
 0x12d   : > { %11146 = vmatprep.subr.bf16.mxu0 %v11145_v34 }
 0x12f   : > { %9344 = vmatmul.mubr.msk.f32.gmra.mrb[4].mxu0 %vm409_vm0, %v13689_v37 }
 0x130   : > { %9346 = vmatprep.mubr.msk.f32.mxu0 %vm409_vm0, %v13691_v38  ;;  %11148 = vmatpush3.bf16.msra.mxu0 %v11145_v34  ;;  %v1670_v34 = vld [vmem:[#allocation2 + $0x52] sm:$0xff] }
 0x131   : > { %11150 = vmatprep.subr.bf16.mxu0 %v11149_v39 }
 0x133   : > { %9347 = vmatmul.mubr.msk.f32.gmra.mrb[6].mxu0 %vm409_vm0, %v13697_v42 }
 0x134   : > { %9349 = vmatprep.mubr.msk.f32.mxu0 %vm409_vm0, %v13699_v43  ;;  %11152 = vmatpush3.bf16.msra.mxu0 %v11149_v39  ;;  %v1674_v39 = vld [vmem:[#allocation2 + $0x82] sm:$0xff] }
 0x135   : > { %11154 = vmatprep.subr.bf16.mxu0 %v11153_v44 }
 0x137   : > { %9350 = vmatmul.mubr.msk.f32.gmra.mrb[8].mxu0 %vm409_vm0, %v13705_v45 }
 0x138   : > { %9352 = vmatprep.mubr.msk.f32.mxu0 %vm409_vm0, %v13707_v46 }
 0x13b   : > { %9353 = vmatmul.mubr.msk.f32.gmra.mrb[10].mxu0 %vm409_vm0, %v13713_v47 }
 0x13c   : > { %9355 = vmatprep.mubr.msk.f32.mxu0 %vm409_vm0, %v13715_v48 }
 0x13f   : > { %9356 = vmatmul.mubr.msk.f32.gmra.mrb[12].mxu0 %vm409_vm0, %v13721_v49 }
 0x140   : > { %9358 = vmatprep.mubr.msk.f32.mxu0 %vm409_vm0, %v13723_v50 }
 0x143   : > { %9359 = vmatmul.mubr.msk.f32.gmra.mrb[14].mxu0 %vm409_vm0, %v13729_v51 }
 0x144   : > { %9377 = vmatprep.mubr.msk.f32.mxu0 %vm409_vm0, %v1075_v28  ;;  %v1909_v28 = vld [vmem:[#allocation8 + $0x178] sm:$0xff] }
 0x145   : > { %v11197_v31 = vpack.c.bf16 %v1909_v28, %v1908_v27 }
 0x147   : > { %9378 = vmatmul.mubr.msk.f32.vlgmr.msra.gmra.mrb[0].mxu0 %vm409_vm0, %v1076_v32  ;;  %v2078_v32 = vld [vmem:[#allocation8 + $0x200] sm:$0xff] }
 0x148   : > { %11156 = vmatpush3.bf16.msra.mxu0 %v11153_v44  ;;  %9380 = vmatprep.mubr.msk.f32.mxu0 %vm409_vm0, %v13684_v33  ;;  %v2080_v44 = vld [vmem:[#allocation8 + $0x210] sm:$0xff] }
 0x149   : > { %11158 = vmatprep.subr.bf16.mxu0 %v11157_v54 }
 0x14b   : > { %9381 = vmatmul.mubr.msk.f32.gmra.mrb[2].mxu0 %vm409_vm0, %v13689_v37 }
 0x14c   : > { %9383 = vmatprep.mubr.msk.f32.mxu0 %vm409_vm0, %v13691_v38  ;;  %11160 = vmatpush3.bf16.msra.mxu0 %v11157_v54  ;;  %v1680_v54 = vld [vmem:[#allocation2 + $0xca] sm:$0xff] }
 0x14d   : > { %11162 = vmatprep.subr.bf16.mxu0 %v11161_v57 }
 0x14f   : > { %9384 = vmatmul.mubr.msk.f32.gmra.mrb[4].mxu0 %vm409_vm0, %v13697_v42 }
 0x150   : > { %9386 = vmatprep.mubr.msk.f32.mxu0 %vm409_vm0, %v13699_v43  ;;  %11164 = vmatpush3.bf16.msra.mxu0 %v11161_v57  ;;  %v2492_v57 = vld [vmem:[#allocation10 + $0x180] sm:$0xff] }
 0x151   : > { %11166 = vmatprep.subr.bf16.mxu0 %v11165_v60  ;;  %v11217_v59 = vpack.c.bf16 %v2493_v58, %v2492_v57 }
 0x153   : > { %9387 = vmatmul.mubr.msk.f32.gmra.mrb[6].mxu0 %vm409_vm0, %v13705_v45  ;;  %11218 = vmatprep.subr.bf16.mxu1 %v11217_v59 }
 0x154   : > { %9389 = vmatprep.mubr.msk.f32.mxu0 %vm409_vm0, %v13707_v46  ;;  %11168 = vmatpush3.bf16.msra.mxu0 %v11165_v60  ;;  %v2494_v60 = vld [vmem:[#allocation10 + $0x190] sm:$0xff] }
 0x155   : > { %11170 = vmatprep.subr.bf16.mxu0 %v11169_v63  ;;  %11220 = vmatpush3.bf16.msra.mxu1 %v11217_v59  ;;  %v11221_v62 = vpack.c.bf16 %v2495_v61, %v2494_v60 }
 0x157   : > { %9390 = vmatmul.mubr.msk.f32.gmra.mrb[8].mxu0 %vm409_vm0, %v13713_v47  ;;  %11222 = vmatprep.subr.bf16.mxu1 %v11221_v62 }
 0x158   : > { %9392 = vmatprep.mubr.msk.f32.mxu0 %vm409_vm0, %v13715_v48 }
 0x159   : > { %11224 = vmatpush3.bf16.msra.mxu1 %v11221_v62 }
 0x15b   : > { %9393 = vmatmul.mubr.msk.f32.gmra.mrb[10].mxu0 %vm409_vm0, %v13721_v49 }
 0x15c   : > { %9395 = vmatprep.mubr.msk.f32.mxu0 %vm409_vm0, %v13723_v50 }
 0x15f   : > { %9396 = vmatmul.mubr.msk.f32.gmra.mrb[12].mxu0 %vm409_vm0, %v13729_v51 }
 0x160   : > { %9398 = vmatprep.mubr.msk.f32.mxu0 %vm409_vm0, %v1089_v0 }
 0x163   : > { %9399 = vmatmul.mubr.msk.f32.gmra.mrb[14].mxu0 %vm409_vm0, %v1090_v1 }
 0x164   : > { %9417 = vmatprep.mubr.msk.f32.mxu0 %vm409_vm0, %v13684_v33  ;;  %v2079_v33 = vld [vmem:[#allocation8 + $0x208] sm:$0xff] }
 0x165   : > { %v11201_v36 = vpack.c.bf16 %v2079_v33, %v2078_v32 }
 0x167   : > { %9418 = vmatmul.mubr.msk.f32.vlgmr.msra.gmra.mrb[0].mxu0 %vm409_vm0, %v13689_v37  ;;  %v1672_v37 = vld [vmem:[#allocation2 + $0x6a] sm:$0xff] }
 0x168   : > { %11172 = vmatpush3.bf16.msra.mxu0 %v11169_v63  ;;  %9420 = vmatprep.mubr.msk.f32.mxu0 %vm409_vm0, %v13691_v38  ;;  %v1673_v38 = vld [vmem:[#allocation2 + $0x7a] sm:$0xff]  ;;  %v2496_v63 = vld [vmem:[#allocation10 + $0x1a0] sm:$0xff] }
 0x169   : > { %11174 = vmatprep.subr.bf16.mxu0 %v11173_v4 }
 0x16b   : > { %9421 = vmatmul.mubr.msk.f32.gmra.mrb[2].mxu0 %vm409_vm0, %v13697_v42  ;;  %v1677_v42 = vld [vmem:[#allocation2 + $0xaa] sm:$0xff] }
 0x16c   : > { %9423 = vmatprep.mubr.msk.f32.mxu0 %vm409_vm0, %v13699_v43  ;;  %11176 = vmatpush3.bf16.msra.mxu0 %v11173_v4  ;;  %v1678_v43 = vld [vmem:[#allocation2 + $0xb2] sm:$0xff]  ;;  %v11229_v4 = vpack.c.bf16 %v2499_v3, %v2498_v2 }
 0x16d   : > { %11178 = vmatprep.subr.bf16.mxu0 %v11177_v7 }
 0x16f   : > { %9424 = vmatmul.mubr.msk.f32.gmra.mrb[4].mxu0 %vm409_vm0, %v13705_v45  ;;  %v2081_v45 = vld [vmem:[#allocation8 + $0x218] sm:$0xff] }
 0x170   : > { %9426 = vmatprep.mubr.msk.f32.mxu0 %vm409_vm0, %v13707_v46  ;;  %11180 = vmatpush3.bf16.msra.mxu0 %v11177_v7  ;;  %v11205_v46 = vpack.c.bf16 %v2081_v45, %v2080_v44  ;;  %v11233_v7 = vpack.c.bf16 %v2501_v6, %v2500_v5 }
 0x171   : > { %11182 = vmatprep.subr.bf16.mxu0 %v11181_v10 }
 0x173   : > { %9427 = vmatmul.mubr.msk.f32.gmra.mrb[6].mxu0 %vm409_vm0, %v13713_v47  ;;  %v2082_v47 = vld [vmem:[#allocation8 + $0x220] sm:$0xff] }
 0x174   : > { %9429 = vmatprep.mubr.msk.f32.mxu0 %vm409_vm0, %v13715_v48  ;;  %11184 = vmatpush3.bf16.msra.mxu0 %v11181_v10  ;;  %v2083_v48 = vld [vmem:[#allocation8 + $0x228] sm:$0xff]  ;;  %v11237_v10 = vpack.c.bf16 %v2503_v9, %v2502_v8 }
 0x175   : > { %11186 = vmatprep.subr.bf16.mxu0 %v11185_v13 }
 0x177   : > { %9430 = vmatmul.mubr.msk.f32.gmra.mrb[8].mxu0 %vm409_vm0, %v13721_v49  ;;  %v11209_v49 = vpack.c.bf16 %v2083_v48, %v2082_v47 }
 0x178   : > { %9432 = vmatprep.mubr.msk.f32.mxu0 %vm409_vm0, %v13723_v50  ;;  %v2084_v50 = vld [vmem:[#allocation8 + $0x230] sm:$0xff] }
 0x17b   : > { %9433 = vmatmul.mubr.msk.f32.gmra.mrb[10].mxu0 %vm409_vm0, %v13729_v51  ;;  %v2085_v51 = vld [vmem:[#allocation8 + $0x238] sm:$0xff] }
 0x17c   : > { %9435 = vmatprep.mubr.msk.f32.mxu0 %vm409_vm0, %v1089_v0  ;;  %v11213_v52 = vpack.c.bf16 %v2085_v51, %v2084_v50  ;;  %v2497_v0 = vld [vmem:[#allocation10 + $0x1a8] sm:$0xff] }
 0x17f   : > { %9436 = vmatmul.mubr.msk.f32.gmra.mrb[12].mxu0 %vm409_vm0, %v1090_v1  ;;  %v11225_v1 = vpack.c.bf16 %v2497_v0, %v2496_v63 }
 0x180   : > { %9438 = vmatprep.mubr.msk.f32.mxu0 %vm409_vm0, %v1091_v14  ;;  %v2506_v14 = vld [vmem:[#allocation10 + $0x1f0] sm:$0xff] }
 0x181   : > { %11226 = vmatprep.subr.bf16.mxu1 %v11225_v1 }
 0x182   : > { %11228 = vmatpush3.bf16.msra.mxu1 %v11225_v1 }
 0x183   : > { %9439 = vmatmul.mubr.msk.f32.gmra.mrb[14].mxu0 %vm409_vm0, %v1092_v15  ;;  %11230 = vmatprep.subr.bf16.mxu1 %v11229_v4  ;;  %v2507_v15 = vld [vmem:[#allocation10 + $0x1f8] sm:$0xff] }
 0x184   : > { %9457 = vmatprep.mubr.msk.f32.mxu0 %vm409_vm0, %v1663_v16  ;;  %v11245_v16 = vpack.c.bf16 %v2507_v15, %v2506_v14 }
 0x186   : > { %11232 = vmatpush3.bf16.msra.mxu1 %v11229_v4 }
 0x187   : > { %9458 = vmatmul.mubr.msk.f32.vlgmr.msra.gmra.mrb[0].mxu0 %vm409_vm0, %v1664_v19  ;;  %11234 = vmatprep.subr.bf16.mxu1 %v11233_v7  ;;  %v13852_v19 = vpack.c.bf16 %v2476_v18, %v2475_v17 }
 0x188   : > { %11188 = vmatpush3.bf16.msra.mxu0 %v11185_v13  ;;  %9460 = vmatprep.mubr.msk.f32.mxu0 %vm409_vm0, %v1665_v20  ;;  %v11241_v13 = vpack.c.bf16 %v2505_v12, %v2504_v11 }
 0x189   : > { %11190 = vmatprep.subr.bf16.mxu0 %v11189_v21 }
 0x18a   : > { %11236 = vmatpush3.bf16.msra.mxu1 %v11233_v7 }
 0x18b   : > { %9461 = vmatmul.mubr.msk.f32.gmra.mrb[2].mxu0 %vm409_vm0, %v1666_v24  ;;  %11238 = vmatprep.subr.bf16.mxu1 %v11237_v10 }
 0x18c   : > { %9463 = vmatprep.mubr.msk.f32.mxu0 %vm409_vm0, %v13792_v25  ;;  %11192 = vmatpush3.bf16.msra.mxu0 %v11189_v21 }
 0x18d   : > { %11194 = vmatprep.subr.bf16.mxu0 %v11193_v26 }
 0x18e   : > { %11240 = vmatpush3.bf16.msra.mxu1 %v11237_v10 }
 0x18f   : > { %9464 = vmatmul.mubr.msk.f32.gmra.mrb[4].mxu0 %vm409_vm0, %v13797_v29  ;;  %11242 = vmatprep.subr.bf16.mxu1 %v11241_v13 }
 0x190   : > { %9466 = vmatprep.mubr.msk.f32.mxu0 %vm409_vm0, %v13799_v30  ;;  %11196 = vmatpush3.bf16.msra.mxu0 %v11193_v26 }
 0x191   : > { %11198 = vmatprep.subr.bf16.mxu0 %v11197_v31 }
 0x192   : > { %11244 = vmatpush3.bf16.msra.mxu1 %v11241_v13 }
 0x193   : > { %9467 = vmatmul.mubr.msk.f32.gmra.mrb[6].mxu0 %vm409_vm0, %v1670_v34  ;;  %11246 = vmatprep.subr.bf16.mxu1 %v11245_v16 }
 0x194   : > { %9469 = vmatprep.mubr.msk.f32.mxu0 %vm409_vm0, %v1671_v35  ;;  %11200 = vmatpush3.bf16.msra.mxu0 %v11197_v31 }
 0x195   : > { %11202 = vmatprep.subr.bf16.mxu0 %v11201_v36 }
 0x196   : > { %11248 = vmatpush3.bf16.msra.mxu1 %v11245_v16 }
 0x197   : > { %9470 = vmatmul.mubr.msk.f32.gmra.mrb[8].mxu0 %vm409_vm0, %v1672_v37  ;;  %11250 = vmatprep.subr.bf16.mxu1 %v13852_v19 }
 0x198   : > { %9472 = vmatprep.mubr.msk.f32.mxu0 %vm409_vm0, %v1673_v38 }
 0x19b   : > { %9473 = vmatmul.mubr.msk.f32.gmra.mrb[10].mxu0 %vm409_vm0, %v1674_v39 }
 0x19c   : > { %9475 = vmatprep.mubr.msk.f32.mxu0 %vm409_vm0, %v1675_v40 }
 0x19f   : > { %9476 = vmatmul.mubr.msk.f32.gmra.mrb[12].mxu0 %vm409_vm0, %v1676_v41 }
 0x1a0   : > { %9478 = vmatprep.mubr.msk.f32.mxu0 %vm409_vm0, %v1677_v42 }
 0x1a3   : > { %9479 = vmatmul.mubr.msk.f32.gmra.mrb[14].mxu0 %vm409_vm0, %v1678_v43 }
 0x1a4   : > { %9497 = vmatprep.mubr.msk.f32.mxu0 %vm409_vm0, %v1665_v20  ;;  %v13858_v20 = vld [vmem:[%s15232_s5] ss:$0 sm:$0xff] }
 0x1a7   : > { %9498 = vmatmul.mubr.msk.f32.vlgmr.msra.gmra.mrb[0].mxu0 %vm409_vm0, %v1666_v24 }
 0x1a8   : > { %11204 = vmatpush3.bf16.msra.mxu0 %v11201_v36  ;;  %9500 = vmatprep.mubr.msk.f32.mxu0 %vm409_vm0, %v13792_v25 }
 0x1a9   : > { %11206 = vmatprep.subr.bf16.mxu0 %v11205_v46 }
 0x1ab   : > { %9501 = vmatmul.mubr.msk.f32.gmra.mrb[2].mxu0 %vm409_vm0, %v13797_v29 }
 0x1ac   : > { %9503 = vmatprep.mubr.msk.f32.mxu0 %vm409_vm0, %v13799_v30  ;;  %11208 = vmatpush3.bf16.msra.mxu0 %v11205_v46 }
 0x1ad   : > { %11210 = vmatprep.subr.bf16.mxu0 %v11209_v49 }
 0x1af   : > { %9504 = vmatmul.mubr.msk.f32.gmra.mrb[4].mxu0 %vm409_vm0, %v1670_v34 }
 0x1b0   : > { %9506 = vmatprep.mubr.msk.f32.mxu0 %vm409_vm0, %v1671_v35  ;;  %11212 = vmatpush3.bf16.msra.mxu0 %v11209_v49 }
 0x1b1   : > { %11214 = vmatprep.subr.bf16.mxu0 %v11213_v52 }
 0x1b3   : > { %9507 = vmatmul.mubr.msk.f32.gmra.mrb[6].mxu0 %vm409_vm0, %v1672_v37 }
 0x1b4   : > { %9509 = vmatprep.mubr.msk.f32.mxu0 %vm409_vm0, %v1673_v38  ;;  %11216 = vmatpush3.bf16.msra.mxu0 %v11213_v52 }
 0x1b7   : > { %9510 = vmatmul.mubr.msk.f32.gmra.mrb[8].mxu0 %vm409_vm0, %v1674_v39 }
 0x1b8   : > { %9512 = vmatprep.mubr.msk.f32.mxu0 %vm409_vm0, %v1675_v40 }
 0x1bb   : > { %9513 = vmatmul.mubr.msk.f32.gmra.mrb[10].mxu0 %vm409_vm0, %v1676_v41 }
 0x1bc   : > { %9515 = vmatprep.mubr.msk.f32.mxu0 %vm409_vm0, %v1677_v42 }
 0x1bf   : > { %9516 = vmatmul.mubr.msk.f32.gmra.mrb[12].mxu0 %vm409_vm0, %v1678_v43 }
 0x1c0   : > { %9518 = vmatprep.mubr.msk.f32.mxu0 %vm409_vm0, %v1679_v53 }
 0x1c3   : > { %9519 = vmatmul.mubr.msk.f32.gmra.mrb[14].mxu0 %vm409_vm0, %v1680_v54 }
 0x1c4   : > { %9537 = vmatprep.mubr.msk.f32.mxu0 %vm409_vm0, %v13792_v25 }
 0x1c7   : > { %9538 = vmatmul.mubr.msk.f32.vlgmr.msra.gmra.mrb[0].mxu0 %vm409_vm0, %v13797_v29 }
 0x1c8   : > { %9540 = vmatprep.mubr.msk.f32.mxu0 %vm409_vm0, %v13799_v30 }
 0x1cb   : > { %9541 = vmatmul.mubr.msk.f32.gmra.mrb[2].mxu0 %vm409_vm0, %v1670_v34 }
 0x1cc   : > { %9543 = vmatprep.mubr.msk.f32.mxu0 %vm409_vm0, %v1671_v35 }
 0x1cf   : > { %9544 = vmatmul.mubr.msk.f32.gmra.mrb[4].mxu0 %vm409_vm0, %v1672_v37 }
 0x1d0   : > { %9546 = vmatprep.mubr.msk.f32.mxu0 %vm409_vm0, %v1673_v38 }
 0x1d3   : > { %9547 = vmatmul.mubr.msk.f32.gmra.mrb[6].mxu0 %vm409_vm0, %v1674_v39 }
 0x1d4   : > { %9549 = vmatprep.mubr.msk.f32.mxu0 %vm409_vm0, %v1675_v40 }
 0x1d7   : > { %9550 = vmatmul.mubr.msk.f32.gmra.mrb[8].mxu0 %vm409_vm0, %v1676_v41 }
 0x1d8   : > { %9552 = vmatprep.mubr.msk.f32.mxu0 %vm409_vm0, %v1677_v42 }
 0x1db   : > { %9553 = vmatmul.mubr.msk.f32.gmra.mrb[10].mxu0 %vm409_vm0, %v1678_v43 }
 0x1dc   : > { %9555 = vmatprep.mubr.msk.f32.mxu0 %vm409_vm0, %v1679_v53 }
 0x1df   : > { %9556 = vmatmul.mubr.msk.f32.gmra.mrb[12].mxu0 %vm409_vm0, %v1680_v54 }
 0x1e0   : > { %9558 = vmatprep.mubr.msk.f32.mxu0 %vm409_vm0, %v1681_v55 }
 0x1e3   : > { %9559 = vmatmul.mubr.msk.f32.gmra.mrb[14].mxu0 %vm409_vm0, %v1682_v56 }
 0x29a   : > { %v9539_v21 = vpop.f32.mrb[0].mxu0 }
 0x29b   : > { %v2259_v23 = vmul.f32 %v9539_v21, %v13858_v20  ;;  %v2158_v24 = vpop.f32.mrb[1].mxu0 }
 0x29c   : > { %v2258_v25 = vmul.f32 %v13858_v20, %v2158_v24 }
 0x29d   : > { %v13868_v26 = vadd.f32 %v13863_v22, %v2259_v23 }
 0x29e   : > { %v13871_v27 = vadd.f32 %v13863_v22, %v2258_v25  ;;  %v9542_v28 = vpop.f32.mrb[2].mxu0 }
 0x29f   : > { %v2296_v29 = vmin.f32 %v13868_v26, 30.0  ;;  %v2261_v30 = vmul.f32 %v9542_v28, %v13858_v20  ;;  %v2168_v31 = vpop.f32.mrb[3].mxu0 }
 0x2a0   : > { %v2295_v32 = vmin.f32 %v13871_v27, 30.0  ;;  %v2260_v33 = vmul.f32 %v13858_v20, %v2168_v31 }
 0x2a1   : > { %v2313_v34 = vmul.f32 1.442695, %v2296_v29  ;;  %v13878_v35 = vadd.f32 %v13863_v22, %v2261_v30 }
 0x2a2   : > { %v2311_v36 = vmul.f32 1.442695, %v2295_v32  ;;  %v13881_v37 = vadd.f32 %v13863_v22, %v2260_v33  ;;  %v9545_v38 = vpop.f32.mrb[4].mxu0 }
 0x2a3   : > { %12701 = vpow2.f32 %v2313_v34  ;;  %v2298_v39 = vmin.f32 %v13878_v35, 30.0  ;;  %v2263_v40 = vmul.f32 %v9545_v38, %v13858_v20  ;;  %v2178_v41 = vpop.f32.mrb[5].mxu0 }
 0x2a4   : > { %12703 = vpow2.f32 %v2311_v36  ;;  %v2297_v42 = vmin.f32 %v13881_v37, 30.0  ;;  %v2262_v43 = vmul.f32 %v13858_v20, %v2178_v41 }
 0x2a5   : > { %v2317_v44 = vmul.f32 1.442695, %v2298_v39  ;;  %v13888_v45 = vadd.f32 %v13863_v22, %v2263_v40 }
 0x2a6   : > { %v2315_v46 = vmul.f32 1.442695, %v2297_v42  ;;  %v13891_v47 = vadd.f32 %v13863_v22, %v2262_v43  ;;  %v9548_v48 = vpop.f32.mrb[6].mxu0 }
 0x2a7   : > { %12705 = vpow2.f32 %v2317_v44  ;;  %v2300_v49 = vmin.f32 %v13888_v45, 30.0  ;;  %v2265_v50 = vmul.f32 %v9548_v48, %v13858_v20  ;;  %v2188_v51 = vpop.f32.mrb[7].mxu0 }
 0x2a8   : > { %12707 = vpow2.f32 %v2315_v46  ;;  %v2299_v52 = vmin.f32 %v13891_v47, 30.0  ;;  %v2264_v53 = vmul.f32 %v13858_v20, %v2188_v51 }
 0x2a9   : > { %v2321_v54 = vmul.f32 1.442695, %v2300_v49  ;;  %v13898_v55 = vadd.f32 %v13863_v22, %v2265_v50 }
 0x2aa   : > { %v2319_v56 = vmul.f32 1.442695, %v2299_v52  ;;  %v13901_v57 = vadd.f32 %v13863_v22, %v2264_v53  ;;  %v9551_v58 = vpop.f32.mrb[8].mxu0 }
 0x2ab   : > { %12709 = vpow2.f32 %v2321_v54  ;;  %v2302_v59 = vmin.f32 %v13898_v55, 30.0  ;;  %v2267_v60 = vmul.f32 %v9551_v58, %v13858_v20  ;;  %v2198_v61 = vpop.f32.mrb[9].mxu0 }
 0x2ac   : > { %12711 = vpow2.f32 %v2319_v56  ;;  %v2301_v62 = vmin.f32 %v13901_v57, 30.0  ;;  %v2266_v63 = vmul.f32 %v13858_v20, %v2198_v61 }
 0x2ad   : > { %v12702_v0 = vpop.eup %12701  ;;  %v2325_v1 = vmul.f32 1.442695, %v2302_v59  ;;  %v13908_v2 = vadd.f32 %v13863_v22, %v2267_v60 }
 0x2ae   : > { %v12704_v3 = vpop.eup %12703  ;;  %v2344_v4 = vadd.f32 2.0, %v12702_v0  ;;  %v2323_v5 = vmul.f32 1.442695, %v2301_v62  ;;  %v13911_v6 = vadd.f32 %v13863_v22, %v2266_v63  ;;  %v9554_v7 = vpop.f32.mrb[10].mxu0 }
 0x2af   : > { %v2343_v8 = vadd.f32 2.0, %v12704_v3  ;;  %12713 = vpow2.f32 %v2325_v1  ;;  %v2304_v9 = vmin.f32 %v13908_v2, 30.0  ;;  %v2269_v10 = vmul.f32 %v9554_v7, %v13858_v20  ;;  %v2208_v11 = vpop.f32.mrb[11].mxu0 }
 0x2b0   : > { %v13915_v12 = vmul.f32 %v12702_v0, %v2344_v4  ;;  %12715 = vpow2.f32 %v2323_v5  ;;  %v2303_v13 = vmin.f32 %v13911_v6, 30.0  ;;  %v2268_v14 = vmul.f32 %v13858_v20, %v2208_v11 }
 0x2b1   : > { %v12706_v15 = vpop.eup %12705  ;;  %v13919_v16 = vmul.f32 %v12704_v3, %v2343_v8  ;;  %v2329_v17 = vmul.f32 1.442695, %v2304_v9  ;;  %v13922_v18 = vadd.f32 %v13863_v22, %v2269_v10 }
 0x2b2   : > { %v12708_v21 = vpop.eup %12707  ;;  %v2376_v23 = vadd.f32 2.0, %v13915_v12  ;;  %v2346_v24 = vadd.f32 2.0, %v12706_v15  ;;  %v2327_v25 = vmul.f32 1.442695, %v2303_v13  ;;  %v13926_v28 = vadd.f32 %v13863_v22, %v2268_v14  ;;  %v9557_v29 = vpop.f32.mrb[12].mxu0 }
 0x2b3   : > { %v2375_v30 = vadd.f32 2.0, %v13919_v16  ;;  %v2345_v31 = vadd.f32 2.0, %v12708_v21  ;;  %12717 = vpow2.f32 %v2329_v17  ;;  %v2306_v32 = vmin.f32 %v13922_v18, 30.0  ;;  %v2218_v33 = vpop.f32.mrb[13].mxu0 }
 0x2b4   : > { %12719 = vrcp.f32 %v2376_v23  ;;  %v13930_v34 = vmul.f32 %v12706_v15, %v2346_v24  ;;  %v2305_v36 = vmin.f32 %v13926_v28, 30.0  ;;  %v2271_v38 = vmul.f32 %v9557_v29, %v13858_v20 }
 0x2b5   : > { %v12710_v39 = vpop.eup %12709  ;;  %12721 = vrcp.f32 %v2375_v30  ;;  %v13934_v40 = vmul.f32 %v12708_v21, %v2345_v31  ;;  %v2333_v41 = vmul.f32 1.442695, %v2306_v32  ;;  %v2270_v42 = vmul.f32 %v13858_v20, %v2218_v33 }
 0x2b6   : > { %v12712_v43 = vpop.eup %12711  ;;  %v2378_v44 = vadd.f32 2.0, %v13930_v34  ;;  %v2348_v46 = vadd.f32 2.0, %v12710_v39  ;;  %12723 = vpow2.f32 %v2327_v25  ;;  %v2331_v48 = vmul.f32 1.442695, %v2305_v36  ;;  %v9560_v49 = vpop.f32.mrb[14].mxu0 }
 0x2b7   : > { %v2377_v50 = vadd.f32 2.0, %v13934_v40  ;;  %v2347_v51 = vadd.f32 2.0, %v12712_v43  ;;  %12725 = vpow2.f32 %v2333_v41  ;;  %v13940_v52 = vadd.f32 %v13863_v22, %v2271_v38  ;;  %v2228_v53 = vpop.f32.mrb[15].mxu0 }
 0x2b8   : > { %12727 = vrcp.f32 %v2378_v44  ;;  %v13942_v54 = vmul.f32 %v12710_v39, %v2348_v46  ;;  %v13945_v56 = vadd.f32 %v13863_v22, %v2270_v42  ;;  %v2273_v58 = vmul.f32 %v9560_v49, %v13858_v20 }
 0x2b9   : > { %v12714_v59 = vpop.eup %12713  ;;  %12729 = vrcp.f32 %v2377_v50  ;;  %v13948_v60 = vmul.f32 %v12712_v43, %v2347_v51  ;;  %v2308_v61 = vmin.f32 %v13940_v52, 30.0  ;;  %v2272_v62 = vmul.f32 %v13858_v20, %v2228_v53 }
 0x2ba   : > { %v12716_v63 = vpop.eup %12715  ;;  %v2380_v0 = vadd.f32 2.0, %v13942_v54  ;;  %v2350_v1 = vadd.f32 2.0, %v12714_v59  ;;  %12731 = vpow2.f32 %v2331_v48  ;;  %v2307_v3 = vmin.f32 %v13945_v56, 30.0 }
 0x2bb   : > { %v2379_v4 = vadd.f32 2.0, %v13948_v60  ;;  %v2349_v5 = vadd.f32 2.0, %v12716_v63  ;;  %v2337_v7 = vmul.f32 1.442695, %v2308_v61  ;;  %v13956_v8 = vadd.f32 %v13863_v22, %v2273_v58 }
 0x2bc   : > { %12733 = vrcp.f32 %v2380_v0  ;;  %v13958_v9 = vmul.f32 %v12714_v59, %v2350_v1  ;;  %v2335_v10 = vmul.f32 1.442695, %v2307_v3  ;;  %v13961_v20 = vadd.f32 %v13863_v22, %v2272_v62  ;;  %v2478_v0 = vld [vmem:[#allocation10 + $0x18] sm:$0xff] }
 0x2bd   : > { %v12718_v11 = vpop.eup %12717  ;;  %12735 = vrcp.f32 %v2379_v4  ;;  %v13963_v13 = vmul.f32 %v12716_v63, %v2349_v5  ;;  %v2310_v14 = vmin.f32 %v13956_v8, 30.0  ;;  %v2477_v63 = vld [vmem:[#allocation10 + $0x10] sm:$0xff] }
 0x2be   : > { %v12720_v15 = vpop.eup %12719  ;;  %v2382_v17 = vadd.f32 2.0, %v13958_v9  ;;  %v2352_v21 = vadd.f32 2.0, %v12718_v11  ;;  %12737 = vpow2.f32 %v2337_v7  ;;  %v2309_v23 = vmin.f32 %v13961_v20, 30.0 }
 0x2bf   : > { %v12722_v24 = vpop.eup %12721  ;;  %v2394_v25 = vmul.f32 %v12720_v15, %v13915_v12  ;;  %v2381_v29 = vadd.f32 2.0, %v13963_v13  ;;  %12739 = vpow2.f32 %v2335_v10  ;;  %v2341_v22 = vmul.f32 1.442695, %v2310_v14 }
 0x2c0   : > { %v12724_v30 = vpop.eup %12723  ;;  %v2392_v31 = vmul.f32 %v12722_v24, %v13919_v16  ;;  %12741 = vrcp.f32 %v2382_v17  ;;  %v13971_v32 = vmul.f32 %v12718_v11, %v2352_v21  ;;  %v2339_v33 = vmul.f32 1.442695, %v2309_v23  ;;  %v2479_v23 = vld [vmem:[#allocation10 + $0x20] sm:$0xff]  ;;  %v2480_v24 = vld [vmem:[#allocation10 + $0x28] sm:$0xff] }
 0x2c1   : > { %v12726_v36 = vpop.eup %12725  ;;  %v13974_v38 = vmul.f32 %v2394_v25, %v13868_v26  ;;  %12743 = vrcp.f32 %v2381_v29  ;;  %v2351_v39 = vadd.f32 2.0, %v12724_v30  ;;  %v11253_v15 = vpack.c.bf16 %v2478_v0, %v2477_v63 }
 0x2c2   : > { %v12728_v41 = vpop.eup %12727  ;;  %v13977_v12 = vmul.f32 %v2392_v31, %v13871_v27  ;;  %v2384_v42 = vadd.f32 2.0, %v13971_v32  ;;  %v2354_v43 = vadd.f32 2.0, %v12726_v36  ;;  %12745 = vpow2.f32 %v2341_v22 }
 0x2c3   : > { %v12730_v44 = vpop.eup %12729  ;;  %2440 = vst [vmem:[#allocation3 + $0x21] sm:$0xff] %v13974_v38  ;;  %v2398_v16 = vmul.f32 %v12728_v41, %v13930_v34  ;;  %v13982_v46 = vmul.f32 %v12724_v30, %v2351_v39  ;;  %12747 = vpow2.f32 %v2339_v33 }
 0x2c4   : > { %v12732_v26 = vpop.eup %12731  ;;  %2439 = vst [vmem:[#allocation3 + $0x19] sm:$0xff] %v13977_v12  ;;  %v2396_v48 = vmul.f32 %v12730_v44, %v13934_v40  ;;  %12749 = vrcp.f32 %v2384_v42  ;;  %v13986_v27 = vmul.f32 %v12726_v36, %v2354_v43  ;;  %v11257_v42 = vpack.c.bf16 %v2480_v24, %v2479_v23  ;;  %v2482_v43 = vld [vmem:[#allocation10 + $0x38] sm:$0xff] }
 0x2c5   : > { %v13989_v49 = vmul.f32 %v2398_v16, %v13878_v35  ;;  %v2383_v50 = vadd.f32 2.0, %v13982_v46  ;;  %v2353_v51 = vadd.f32 2.0, %v12732_v26 }
 0x2c6   : > { %v12734_v53 = vpop.eup %12733  ;;  %v13993_v34 = vmul.f32 %v2396_v48, %v13881_v37  ;;  %v2386_v58 = vadd.f32 2.0, %v13986_v27 }
 0x2c7   : > { %v12736_v59 = vpop.eup %12735  ;;  %2442 = vst [vmem:[#allocation3 + $0x39] sm:$0xff] %v13989_v49  ;;  %v2402_v40 = vmul.f32 %v12734_v53, %v13942_v54  ;;  %12751 = vrcp.f32 %v2383_v50  ;;  %v13998_v61 = vmul.f32 %v12732_v26, %v2353_v51 }
 0x2c8   : > { %v12738_v62 = vpop.eup %12737  ;;  %2441 = vst [vmem:[#allocation3 + $0x31] sm:$0xff] %v13993_v34  ;;  %v2400_v35 = vmul.f32 %v12736_v59, %v13948_v60  ;;  %12753 = vrcp.f32 %v2386_v58 }
 0x2c9   : > { %v12740_v37 = vpop.eup %12739  ;;  %v14003_v1 = vmul.f32 %v2402_v40, %v13888_v45  ;;  %v2385_v3 = vadd.f32 2.0, %v13998_v61  ;;  %v2356_v4 = vadd.f32 2.0, %v12738_v62  ;;  %v2484_v40 = vld [vmem:[#allocation10 + $0x48] sm:$0xff] }
 0x2ca   : > { %v12742_v5 = vpop.eup %12741  ;;  %v14007_v54 = vmul.f32 %v2400_v35, %v13891_v47  ;;  %v2355_v7 = vadd.f32 2.0, %v12740_v37 }
 0x2cb   : > { %v12744_v10 = vpop.eup %12743  ;;  %2444 = vst [vmem:[#allocation3 + $0x51] sm:$0xff] %v14003_v1  ;;  %v2406_v60 = vmul.f32 %v12742_v5, %v13958_v9  ;;  %12755 = vrcp.f32 %v2385_v3  ;;  %v14011_v11 = vmul.f32 %v12738_v62, %v2356_v4  ;;  %v14013_v14 = vld [vmem:[#allocation3 + $0x18] sm:$0xff]  ;;  %v14015_v45 = vld [vmem:[#allocation3 + $0x20] sm:$0xff] }
 0x2cc   : > { %v12746_v17 = vpop.eup %12745  ;;  %2443 = vst [vmem:[#allocation3 + $0x49] sm:$0xff] %v14007_v54  ;;  %v2404_v47 = vmul.f32 %v12744_v10, %v13963_v13  ;;  %v14019_v21 = vmul.f32 %v12740_v37, %v2355_v7  ;;  %9593 = vmatprep.mubr.f32.mxu1 %v14013_v14  ;;  %v2486_v3 = vld [vmem:[#allocation10 + $0x58] sm:$0xff] }
 0x2cd   : > { %v12748_v9 = vpop.eup %12747  ;;  %v14023_v25 = vmul.f32 %v2406_v60, %v13898_v55  ;;  %v2388_v29 = vadd.f32 2.0, %v14011_v11  ;;  %v2358_v22 = vadd.f32 2.0, %v12746_v17  ;;  %9594 = vmatmul.mubr.f32.vlgmr.msra.gmra.mrb[0].mxu1 %v14015_v45  ;;  %v2487_v60 = vld [vmem:[#allocation10 + $0x60] sm:$0xff] }
 0x2ce   : > { %v12750_v30 = vpop.eup %12749  ;;  %v14028_v31 = vmul.f32 %v2404_v47, %v13901_v57  ;;  %v2387_v13 = vadd.f32 2.0, %v14019_v21  ;;  %v2357_v33 = vadd.f32 2.0, %v12748_v9  ;;  %11252 = vmatpush3.bf16.msra.mxu1 %v13852_v19  ;;  %v2481_v19 = vld [vmem:[#allocation10 + $0x30] sm:$0xff] }
 0x2cf   : > { %2446 = vst [vmem:[#allocation3 + $0x69] sm:$0xff] %v14023_v25  ;;  %v2410_v36 = vmul.f32 %v12750_v30, %v13971_v32  ;;  %12757 = vrcp.f32 %v2388_v29  ;;  %v14034_v55 = vmul.f32 %v12746_v17, %v2358_v22  ;;  %v14036_v39 = vld [vmem:[#allocation3 + $0x30] sm:$0xff]  ;;  %v14038_v41 = vld [vmem:[#allocation3 + $0x38] sm:$0xff]  ;;  %11254 = vmatprep.subr.bf16.mxu1 %v11253_v15 }
 0x2d0   : > { %2445 = vst [vmem:[#allocation3 + $0x61] sm:$0xff] %v14028_v31  ;;  %12759 = vrcp.f32 %v2387_v13  ;;  %v2373_v57 = vmul.f32 %v12748_v9, %v2357_v33  ;;  %9596 = vmatprep.mubr.f32.mxu1 %v14036_v39  ;;  %v2489_v29 = vld [vmem:[#allocation10 + $0x70] sm:$0xff]  ;;  %v2490_v22 = vld [vmem:[#allocation10 + $0x78] sm:$0xff] }
 0x2d1   : > { %v12752_v44 = vpop.eup %12751  ;;  %v14043_v32 = vmul.f32 %v2410_v36, %v13908_v2  ;;  %v2390_v16 = vadd.f32 2.0, %v14034_v55  ;;  %9597 = vmatmul.mubr.f32.gmra.mrb[2].mxu1 %v14038_v41  ;;  %v11261_v2 = vpack.c.bf16 %v2482_v43, %v2481_v19  ;;  %v2799_v36 = vld [vmem:[#allocation10 + $0x300] sm:$0xff] }
 0x2d2   : > { %v12754_v26 = vpop.eup %12753  ;;  %v2408_v48 = vmul.f32 %v12752_v44, %v13982_v46  ;;  %v2389_v50 = vadd.f32 2.0, %v2373_v57  ;;  %11256 = vmatpush3.bf16.msra.mxu1 %v11253_v15  ;;  %v2483_v46 = vld [vmem:[#allocation10 + $0x40] sm:$0xff]  ;;  %v2488_v15 = vld [vmem:[#allocation10 + $0x68] sm:$0xff]  ;;  %v2801_v44 = vld [vmem:[#allocation10 + $0x310] sm:$0xff] }
 0x2d3   : > { %2448 = vst [vmem:[#allocation3 + $0x81] sm:$0xff] %v14043_v32  ;;  %v2414_v51 = vmul.f32 %v12754_v26, %v13986_v27  ;;  %12761 = vrcp.f32 %v2390_v16  ;;  %v14050_v53 = vld [vmem:[#allocation3 + $0x48] sm:$0xff]  ;;  %v14052_v58 = vld [vmem:[#allocation3 + $0x50] sm:$0xff]  ;;  %11258 = vmatprep.subr.bf16.mxu1 %v11257_v42  ;;  %v11265_v0 = vpack.c.bf16 %v2484_v40, %v2483_v46  ;;  %v2802_v16 = vld [vmem:[#allocation10 + $0x318] sm:$0xff] }
 0x2d4   : > { %v14055_v59 = vmul.f32 %v2408_v48, %v13911_v6  ;;  %12763 = vrcp.f32 %v2389_v50  ;;  %9599 = vmatprep.mubr.f32.mxu1 %v14050_v53  ;;  %v14118_v26 = vld [vmem:[#allocation3] sm:$0xff]  ;;  %v11285_v48 = vpack.c.bf16 %v2802_v16, %v2801_v44  ;;  %v2805_v46 = vld [vmem:[#allocation10 + $0x330] sm:$0xff]  ;;  %v2806_v40 = vld [vmem:[#allocation10 + $0x338] sm:$0xff] }
 0x2d5   : > { %v12756_v62 = vpop.eup %12755  ;;  %v14059_v35 = vmul.f32 %v2414_v51, %v13922_v18  ;;  %9600 = vmatmul.mubr.f32.gmra.mrb[4].mxu1 %v14052_v58  ;;  %v2485_v18 = vld [vmem:[#allocation10 + $0x50] sm:$0xff]  ;;  %v2803_v50 = vld [vmem:[#allocation10 + $0x320] sm:$0xff]  ;;  %v2804_v51 = vld [vmem:[#allocation10 + $0x328] sm:$0xff] }
 0x2d6   : > { %2447 = vst [vmem:[#allocation3 + $0x79] sm:$0xff] %v14055_v59  ;;  %v2412_v27 = vmul.f32 %v12756_v62, %v13998_v61  ;;  %11260 = vmatpush3.bf16.msra.mxu1 %v11257_v42  ;;  %v11269_v10 = vpack.c.bf16 %v2486_v3, %v2485_v18  ;;  %v11293_v62 = vpack.c.bf16 %v2806_v40, %v2805_v46  ;;  %v2809_v18 = vld [vmem:[#allocation10 + $0x350] sm:$0xff]  ;;  %v2810_v3 = vld [vmem:[#allocation10 + $0x358] sm:$0xff]  ;;  %v3006_v44 = vld [vmem:[#allocation10 + $0xc8] sm:$0xff] }
 0x2d7   : > { %2450 = vst [vmem:[#allocation3 + $0x99] sm:$0xff] %v14059_v35  ;;  %v14065_v6 = vld [vmem:[#allocation3 + $0x60] sm:$0xff]  ;;  %v14067_v63 = vld [vmem:[#allocation3 + $0x68] sm:$0xff]  ;;  %11262 = vmatprep.subr.bf16.mxu1 %v11261_v2  ;;  %v3008_v16 = vld [vmem:[#allocation10 + $0xd8] sm:$0xff] }
 0x2d8   : > { %v14070_v37 = vmul.f32 %v2412_v27, %v13926_v28  ;;  %9602 = vmatprep.mubr.f32.mxu1 %v14065_v6  ;;  %v2807_v27 = vld [vmem:[#allocation10 + $0x340] sm:$0xff]  ;;  %v3178_v46 = vld [vmem:[#allocation10 + $0x218] sm:$0xff] }
 0x2d9   : > { %v12758_v4 = vpop.eup %12757  ;;  %9603 = vmatmul.mubr.f32.gmra.mrb[6].mxu1 %v14067_v63  ;;  %v3179_v40 = vld [vmem:[#allocation10 + $0x220] sm:$0xff] }
 0x2da   : > { %v12760_v61 = vpop.eup %12759  ;;  %2449 = vst [vmem:[#allocation3 + $0x91] sm:$0xff] %v14070_v37  ;;  %v2418_v5 = vmul.f32 %v12758_v4, %v14011_v11  ;;  %11264 = vmatpush3.bf16.msra.mxu1 %v11261_v2  ;;  %v11289_v2 = vpack.c.bf16 %v2804_v51, %v2803_v50  ;;  %v2811_v4 = vld [vmem:[#allocation10 + $0x360] sm:$0xff]  ;;  %v3012_v50 = vld [vmem:[#allocation10 + $0xf8] sm:$0xff]  ;;  %v3176_v51 = vld [vmem:[#allocation10 + $0x208] sm:$0xff] }
 0x2db   : > { %v2416_v7 = vmul.f32 %v12760_v61, %v14019_v21  ;;  %11266 = vmatprep.subr.bf16.mxu1 %v11265_v0  ;;  %v2812_v61 = vld [vmem:[#allocation10 + $0x368] sm:$0xff] }
 0x2dc   : > { %v14078_v28 = vmul.f32 %v2418_v5, %v13940_v52  ;;  %v11305_v5 = vpack.c.bf16 %v2812_v61, %v2811_v4  ;;  %v3186_v4 = vld [vmem:[#allocation10 + $0x258] sm:$0xff] }
 0x2dd   : > { %v12762_v17 = vpop.eup %12761  ;;  %v14081_v47 = vmul.f32 %v2416_v7, %v13945_v56  ;;  %v14083_v23 = vld [vmem:[#allocation3 + $0x78] sm:$0xff]  ;;  %v14085_v24 = vld [vmem:[#allocation3 + $0x80] sm:$0xff]  ;;  %v11273_v56 = vpack.c.bf16 %v2488_v15, %v2487_v60  ;;  %v2813_v7 = vld [vmem:[#allocation10 + $0x370] sm:$0xff] }
 0x2de   : > { %v12764_v9 = vpop.eup %12763  ;;  %2452 = vst [vmem:[#allocation3 + $0xb1] sm:$0xff] %v14078_v28  ;;  %v2422_v11 = vmul.f32 %v12762_v17, %v14034_v55  ;;  %9605 = vmatprep.mubr.f32.mxu1 %v14083_v23  ;;  %11268 = vmatpush3.bf16.msra.mxu1 %v11265_v0  ;;  %v2800_v55 = vld [vmem:[#allocation10 + $0x308] sm:$0xff]  ;;  %v2997_v15 = vld [vmem:[#allocation10 + $0x80] sm:$0xff] }
 0x2df   : > { %2451 = vst [vmem:[#allocation3 + $0xa9] sm:$0xff] %v14081_v47  ;;  %v2420_v52 = vmul.f32 %v12764_v9, %v2373_v57  ;;  %9606 = vmatmul.mubr.f32.gmra.mrb[8].mxu1 %v14085_v24  ;;  %11270 = vmatprep.subr.bf16.mxu1 %v11269_v10  ;;  %v11281_v57 = vpack.c.bf16 %v2800_v55, %v2799_v36  ;;  %v2808_v0 = vld [vmem:[#allocation10 + $0x348] sm:$0xff]  ;;  %v3003_v36 = vld [vmem:[#allocation10 + $0xb0] sm:$0xff]  ;;  %v3004_v55 = vld [vmem:[#allocation10 + $0xb8] sm:$0xff] }
 0x2e0   : > { %v14093_v21 = vmul.f32 %v2422_v11, %v13956_v8  ;;  %v11277_v8 = vpack.c.bf16 %v2490_v22, %v2489_v29  ;;  %v2998_v17 = vld [vmem:[#allocation10 + $0x88] sm:$0xff]  ;;  %v2999_v11 = vld [vmem:[#allocation10 + $0x90] sm:$0xff]  ;;  %v3001_v29 = vld [vmem:[#allocation10 + $0xa0] sm:$0xff] }
 0x2e1   : > { %v14096_v30 = vmul.f32 %v2420_v52, %v13961_v20  ;;  %v14098_v13 = vld [vmem:[#allocation3 + $0x90] sm:$0xff]  ;;  %v14100_v33 = vld [vmem:[#allocation3 + $0x98] sm:$0xff]  ;;  %v11313_v9 = vpack.c.bf16 %v2998_v17, %v2997_v15  ;;  %v3002_v22 = vld [vmem:[#allocation10 + $0xa8] sm:$0xff] }
 0x2e2   : > { %2454 = vst [vmem:[#allocation3 + $0xc9] sm:$0xff] %v14093_v21  ;;  %9608 = vmatprep.mubr.f32.mxu1 %v14098_v13  ;;  %11272 = vmatpush3.bf16.msra.mxu1 %v11269_v10  ;;  %v2814_v10 = vld [vmem:[#allocation10 + $0x378] sm:$0xff] }
 0x2e3   : > { %2453 = vst [vmem:[#allocation3 + $0xc1] sm:$0xff] %v14096_v30  ;;  %9609 = vmatmul.mubr.f32.gmra.mrb[10].mxu1 %v14100_v33  ;;  %11274 = vmatprep.subr.bf16.mxu1 %v11273_v56  ;;  %v11309_v60 = vpack.c.bf16 %v2814_v10, %v2813_v7  ;;  %v3000_v52 = vld [vmem:[#allocation10 + $0x98] sm:$0xff]  ;;  %v3188_v7 = vld [vmem:[#allocation10 + $0x268] sm:$0xff] }
 0x2e4   : > { %v3190_v15 = vld [vmem:[#allocation10 + $0x278] sm:$0xff] }
 0x2e6   : > { %v14106_v42 = vld [vmem:[#allocation3 + $0xa8] sm:$0xff]  ;;  %v14108_v20 = vld [vmem:[#allocation3 + $0xb0] sm:$0xff]  ;;  %11276 = vmatpush3.bf16.msra.mxu1 %v11273_v56  ;;  %v11317_v56 = vpack.c.bf16 %v3000_v52, %v2999_v11 }
 0x2e7   : > { %9611 = vmatprep.mubr.f32.mxu1 %v14106_v42  ;;  %11278 = vmatprep.subr.bf16.mxu1 %v11277_v8  ;;  %v3354_v11 = vld [vmem:[#allocation10 + $0x388] sm:$0xff] }
 0x2e8   : > { %9612 = vmatmul.mubr.f32.gmra.mrb[12].mxu1 %v14108_v20 }
 0x2ea   : > { %v14112_v19 = vld [vmem:[#allocation3 + $0xc0] sm:$0xff]  ;;  %v14114_v43 = vld [vmem:[#allocation3 + $0xc8] sm:$0xff]  ;;  %11280 = vmatpush3.bf16.msra.mxu1 %v11277_v8  ;;  %v11321_v8 = vpack.c.bf16 %v3002_v22, %v3001_v29  ;;  %v3356_v29 = vld [vmem:[#allocation10 + $0x398] sm:$0xff] }
 0x2eb   : > { %9614 = vmatprep.mubr.f32.mxu1 %v14112_v19  ;;  %11282 = vmatprep.subr.bf16.mxu1 %v11281_v57 }
 0x2ec   : > { %9615 = vmatmul.mubr.f32.gmra.mrb[14].mxu1 %v14114_v43 }
 0x2ed   : > { %9649 = vmatprep.mubr.f32.mxu1 %v14118_v26 }
 0x2f0   : > { %9650 = vmatmul.mubr.f32.vlgmr.msra.gmra.mrb[0].mxu1 %v14118_v26 }
 0x2f1   : > { %9652 = vmatprep.mubr.f32.mxu1 %v14013_v14  ;;  %11284 = vmatpush3.bf16.msra.mxu1 %v11281_v57  ;;  %v11297_v14 = vpack.c.bf16 %v2808_v0, %v2807_v27  ;;  %v3005_v57 = vld [vmem:[#allocation10 + $0xc0] sm:$0xff]  ;;  %v3181_v27 = vld [vmem:[#allocation10 + $0x230] sm:$0xff]  ;;  %v3182_v0 = vld [vmem:[#allocation10 + $0x238] sm:$0xff] }
 0x2f2   : > { %11286 = vmatprep.subr.bf16.mxu1 %v11285_v48 }
 0x2f4   : > { %9653 = vmatmul.mubr.f32.gmra.mrb[2].mxu1 %v14015_v45  ;;  %v11301_v45 = vpack.c.bf16 %v2810_v3, %v2809_v18  ;;  %v3184_v18 = vld [vmem:[#allocation10 + $0x248] sm:$0xff] }
 0x2f5   : > { %9655 = vmatprep.mubr.f32.mxu1 %v14036_v39  ;;  %11288 = vmatpush3.bf16.msra.mxu1 %v11285_v48  ;;  %v3010_v48 = vld [vmem:[#allocation10 + $0xe8] sm:$0xff] }
 0x2f6   : > { %11290 = vmatprep.subr.bf16.mxu1 %v11289_v2 }
 0x2f8   : > { %9656 = vmatmul.mubr.f32.gmra.mrb[4].mxu1 %v14038_v41 }
 0x2f9   : > { %9658 = vmatprep.mubr.f32.mxu1 %v14050_v53  ;;  %11292 = vmatpush3.bf16.msra.mxu1 %v11289_v2  ;;  %v3177_v2 = vld [vmem:[#allocation10 + $0x210] sm:$0xff] }
 0x2fa   : > { %11294 = vmatprep.subr.bf16.mxu1 %v11293_v62 }
 0x2fc   : > { %9659 = vmatmul.mubr.f32.gmra.mrb[6].mxu1 %v14052_v58 }
 0x2fd   : > { %9661 = vmatprep.mubr.f32.mxu1 %v14065_v6  ;;  %11296 = vmatpush3.bf16.msra.mxu1 %v11293_v62  ;;  %v3180_v62 = vld [vmem:[#allocation10 + $0x228] sm:$0xff] }
 0x2fe   : > { %11298 = vmatprep.subr.bf16.mxu1 %v11297_v14 }
 0x300   : > { %9662 = vmatmul.mubr.f32.gmra.mrb[8].mxu1 %v14067_v63 }
 0x301   : > { %9664 = vmatprep.mubr.f32.mxu1 %v14083_v23  ;;  %11300 = vmatpush3.bf16.msra.mxu1 %v11297_v14  ;;  %v3183_v14 = vld [vmem:[#allocation10 + $0x240] sm:$0xff] }
 0x302   : > { %11302 = vmatprep.subr.bf16.mxu1 %v11301_v45  ;;  %v11361_v3 = vpack.c.bf16 %v3184_v18, %v3183_v14  ;;  %v3564_v14 = vld [vmem:[#allocation10 + $0x168] sm:$0xff]  ;;  %v3566_v18 = vld [vmem:[#allocation10 + $0x178] sm:$0xff] }
 0x304   : > { %9665 = vmatmul.mubr.f32.gmra.mrb[10].mxu1 %v14085_v24 }
 0x305   : > { %9667 = vmatprep.mubr.f32.mxu1 %v14098_v13  ;;  %11304 = vmatpush3.bf16.msra.mxu1 %v11301_v45  ;;  %v3185_v45 = vld [vmem:[#allocation10 + $0x250] sm:$0xff] }
 0x306   : > { %11306 = vmatprep.subr.bf16.mxu1 %v11305_v5  ;;  %v11365_v61 = vpack.c.bf16 %v3186_v4, %v3185_v45  ;;  %v3730_v45 = vld [vmem:[#allocation10 + $0x288] sm:$0xff] }
 0x308   : > { %9668 = vmatmul.mubr.f32.gmra.mrb[12].mxu1 %v14100_v33 }
 0x309   : > { %9670 = vmatprep.mubr.f32.mxu1 %v14106_v42  ;;  %11308 = vmatpush3.bf16.msra.mxu1 %v11305_v5  ;;  %v3187_v5 = vld [vmem:[#allocation10 + $0x260] sm:$0xff] }
 0x30a   : > { %11310 = vmatprep.subr.bf16.mxu1 %v11309_v60  ;;  %v11369_v10 = vpack.c.bf16 %v3188_v7, %v3187_v5  ;;  %v3732_v5 = vld [vmem:[#allocation10 + $0x298] sm:$0xff]  ;;  %v3733_v7 = vld [vmem:[#allocation10 + $0x2a0] sm:$0xff] }
 0x30c   : > { %9671 = vmatmul.mubr.f32.gmra.mrb[14].mxu1 %v14108_v20 }
 0x30d   : > { %11312 = vmatpush3.bf16.msra.mxu1 %v11309_v60  ;;  %9705 = vmatprep.mubr.f32.mxu1 %v14036_v39  ;;  %v11325_v39 = vpack.c.bf16 %v3004_v55, %v3003_v36  ;;  %v3189_v60 = vld [vmem:[#allocation10 + $0x270] sm:$0xff]  ;;  %v3358_v36 = vld [vmem:[#allocation10 + $0x3a8] sm:$0xff] }
 0x30e   : > { %11314 = vmatprep.subr.bf16.mxu1 %v11313_v9  ;;  %v11373_v17 = vpack.c.bf16 %v3190_v15, %v3189_v60  ;;  %v14196_v60 = vld [vmem:[#allocation3 + $0x1a] sm:$0xff]  ;;  %v14199_v15 = vld [vmem:[#allocation3 + $0x22] sm:$0xff] }
 0x310   : > { %9706 = vmatmul.mubr.f32.vlgmr.msra.gmra.mrb[0].mxu1 %v14038_v41  ;;  %v11329_v41 = vpack.c.bf16 %v3006_v44, %v3005_v57  ;;  %v3360_v57 = vld [vmem:[#allocation10 + $0x3b8] sm:$0xff]  ;;  %v3361_v44 = vld [vmem:[#allocation10 + $0x3c0] sm:$0xff] }
 0x311   : > { %9708 = vmatprep.mubr.f32.mxu1 %v14050_v53  ;;  %11316 = vmatpush3.bf16.msra.mxu1 %v11313_v9  ;;  %v3007_v53 = vld [vmem:[#allocation10 + $0xd0] sm:$0xff]  ;;  %v3353_v9 = vld [vmem:[#allocation10 + $0x380] sm:$0xff] }
 0x312   : > { %11318 = vmatprep.subr.bf16.mxu1 %v11317_v56  ;;  %v11377_v52 = vpack.c.bf16 %v3354_v11, %v3353_v9  ;;  %v3736_v9 = vld [vmem:[#allocation10 + $0x2b8] sm:$0xff] }
 0x313   : > { %v14202_v11 = vld [vmem:[#allocation3 + $0x32] sm:$0xff] }
 0x314   : > { %9709 = vmatmul.mubr.f32.gmra.mrb[2].mxu1 %v14052_v58  ;;  %v11333_v58 = vpack.c.bf16 %v3008_v16, %v3007_v53  ;;  %v3363_v53 = vld [vmem:[#allocation10 + $0x3d0] sm:$0xff]  ;;  %v3364_v16 = vld [vmem:[#allocation10 + $0x3d8] sm:$0xff] }
 0x315   : > { %9711 = vmatprep.mubr.f32.mxu1 %v14065_v6  ;;  %11320 = vmatpush3.bf16.msra.mxu1 %v11317_v56  ;;  %v3009_v6 = vld [vmem:[#allocation10 + $0xe0] sm:$0xff]  ;;  %v3355_v56 = vld [vmem:[#allocation10 + $0x390] sm:$0xff] }
 0x316   : > { %11322 = vmatprep.subr.bf16.mxu1 %v11321_v8  ;;  %v11381_v22 = vpack.c.bf16 %v3356_v29, %v3355_v56  ;;  %v14205_v56 = vld [vmem:[#allocation3 + $0x3a] sm:$0xff] }
 0x317   : > { %v3737_v29 = vld [vmem:[#allocation10 + $0x2c0] sm:$0xff] }
 0x318   : > { %9712 = vmatmul.mubr.f32.gmra.mrb[4].mxu1 %v14067_v63  ;;  %v11337_v63 = vpack.c.bf16 %v3010_v48, %v3009_v6  ;;  %v3365_v6 = vld [vmem:[#allocation10 + $0x3e0] sm:$0xff]  ;;  %v3366_v48 = vld [vmem:[#allocation10 + $0x3e8] sm:$0xff] }
 0x319   : > { %9714 = vmatprep.mubr.f32.mxu1 %v14083_v23  ;;  %11324 = vmatpush3.bf16.msra.mxu1 %v11321_v8  ;;  %v3011_v23 = vld [vmem:[#allocation10 + $0xf0] sm:$0xff]  ;;  %v3357_v8 = vld [vmem:[#allocation10 + $0x3a0] sm:$0xff] }
 0x31a   : > { %11326 = vmatprep.subr.bf16.mxu1 %v11325_v39  ;;  %v11385_v55 = vpack.c.bf16 %v3358_v36, %v3357_v8  ;;  %v14208_v8 = vld [vmem:[#allocation3 + $0x4a] sm:$0xff] }
 0x31c   : > { %9715 = vmatmul.mubr.f32.gmra.mrb[6].mxu1 %v14085_v24  ;;  %v11341_v24 = vpack.c.bf16 %v3012_v50, %v3011_v23  ;;  %v3367_v23 = vld [vmem:[#allocation10 + $0x3f0] sm:$0xff]  ;;  %v3368_v50 = vld [vmem:[#allocation10 + $0x3f8] sm:$0xff] }
 0x31d   : > { %9717 = vmatprep.mubr.f32.mxu1 %v14098_v13  ;;  %11328 = vmatpush3.bf16.msra.mxu1 %v11325_v39  ;;  %v3175_v13 = vld [vmem:[#allocation10 + $0x200] sm:$0xff]  ;;  %v3359_v39 = vld [vmem:[#allocation10 + $0x3b0] sm:$0xff] }
 0x31e   : > { %11330 = vmatprep.subr.bf16.mxu1 %v11329_v41 }
 0x320   : > { %9718 = vmatmul.mubr.f32.gmra.mrb[8].mxu1 %v14100_v33  ;;  %v2976_v33 = vld [vmem:[#allocation3 + $0x1] sm:$0xff] }
 0x321   : > { %9720 = vmatprep.mubr.f32.mxu1 %v14106_v42  ;;  %11332 = vmatpush3.bf16.msra.mxu1 %v11329_v41  ;;  %v11345_v42 = vpack.c.bf16 %v3176_v51, %v3175_v13  ;;  %v3362_v41 = vld [vmem:[#allocation10 + $0x3c8] sm:$0xff]  ;;  %v3551_v13 = vld [vmem:[#allocation10 + $0x100] sm:$0xff] }
 0x322   : > { %11334 = vmatprep.subr.bf16.mxu1 %v11333_v58  ;;  %v3552_v51 = vld [vmem:[#allocation10 + $0x108] sm:$0xff] }
 0x324   : > { %9721 = vmatmul.mubr.f32.gmra.mrb[10].mxu1 %v14108_v20  ;;  %v2977_v20 = vld [vmem:[#allocation3 + $0x9] sm:$0xff] }
 0x325   : > { %9723 = vmatprep.mubr.f32.mxu1 %v14112_v19  ;;  %11336 = vmatpush3.bf16.msra.mxu1 %v11333_v58  ;;  %v11349_v19 = vpack.c.bf16 %v3178_v46, %v3177_v2  ;;  %v11397_v58 = vpack.c.bf16 %v3364_v16, %v3363_v53  ;;  %v3554_v2 = vld [vmem:[#allocation10 + $0x118] sm:$0xff]  ;;  %v3742_v53 = vld [vmem:[#allocation10 + $0x2e8] sm:$0xff] }
 0x326   : > { %11338 = vmatprep.subr.bf16.mxu1 %v11337_v63  ;;  %v14220_v16 = vld [vmem:[#allocation3 + $0x7a] sm:$0xff] }
 0x328   : > { %9724 = vmatmul.mubr.f32.gmra.mrb[12].mxu1 %v14114_v43  ;;  %v11353_v43 = vpack.c.bf16 %v3180_v62, %v3179_v40  ;;  %v3557_v62 = vld [vmem:[#allocation10 + $0x130] sm:$0xff] }
 0x329   : > { %11340 = vmatpush3.bf16.msra.mxu1 %v11337_v63  ;;  %9726 = vmatprep.mubr.f32.mxu1 %v14118_v26  ;;  %v11401_v63 = vpack.c.bf16 %v3366_v48, %v3365_v6  ;;  %v14223_v6 = vld [vmem:[#allocation3 + $0x82] sm:$0xff]  ;;  %v3743_v48 = vld [vmem:[#allocation10 + $0x2f0] sm:$0xff] }
 0x32a   : > { %11342 = vmatprep.subr.bf16.mxu1 %v11341_v24 }
 0x32c   : > { %9727 = vmatmul.mubr.f32.gmra.mrb[14].mxu1 %v14118_v26  ;;  %v11357_v26 = vpack.c.bf16 %v3182_v0, %v3181_v27  ;;  %v3559_v27 = vld [vmem:[#allocation10 + $0x140] sm:$0xff]  ;;  %v3560_v0 = vld [vmem:[#allocation10 + $0x148] sm:$0xff] }
 0x32d   : > { %11344 = vmatpush3.bf16.msra.mxu1 %v11341_v24  ;;  %9761 = vmatprep.mubr.f32.mxu1 %v2976_v33  ;;  %v11405_v24 = vpack.c.bf16 %v3368_v50, %v3367_v23  ;;  %v11409_v33 = vpack.c.bf16 %v3552_v51, %v3551_v13  ;;  %v14226_v23 = vld [vmem:[#allocation3 + $0x92] sm:$0xff]  ;;  %v3907_v13 = vld [vmem:[#allocation10 + $0x400] sm:$0xff]  ;;  %v3908_v51 = vld [vmem:[#allocation10 + $0x408] sm:$0xff] }
 0x32e   : > { %11346 = vmatprep.subr.bf16.mxu1 %v11345_v42 }
 0x330   : > { %9762 = vmatmul.mubr.f32.vlgmr.msra.gmra.mrb[0].mxu1 %v2977_v20  ;;  %v3555_v20 = vld [vmem:[#allocation10 + $0x120] sm:$0xff] }
 0x331   : > { %9764 = vmatprep.mubr.f32.mxu1 %v13977_v12  ;;  %11348 = vmatpush3.bf16.msra.mxu1 %v11345_v42  ;;  %v3553_v42 = vld [vmem:[#allocation10 + $0x110] sm:$0xff] }
 0x332   : > { %11350 = vmatprep.subr.bf16.mxu1 %v11349_v19  ;;  %v11413_v46 = vpack.c.bf16 %v3554_v2, %v3553_v42  ;;  %v11473_v42 = vpack.c.bf16 %v3908_v51, %v3907_v13  ;;  %v14235_v2 = vld [vmem:[#allocation3 + $0xb2] sm:$0xff] }
 0x334   : > { %9765 = vmatmul.mubr.f32.gmra.mrb[2].mxu1 %v13974_v38 }
 0x335   : > { %9767 = vmatprep.mubr.f32.mxu1 %v13993_v34  ;;  %11352 = vmatpush3.bf16.msra.mxu1 %v11349_v19  ;;  %v3556_v19 = vld [vmem:[#allocation10 + $0x128] sm:$0xff] }
 0x336   : > { %11354 = vmatprep.subr.bf16.mxu1 %v11353_v43  ;;  %v11417_v40 = vpack.c.bf16 %v3556_v19, %v3555_v20  ;;  %v3910_v20 = vld [vmem:[#allocation10 + $0x418] sm:$0xff] }
 0x338   : > { %9768 = vmatmul.mubr.f32.gmra.mrb[4].mxu1 %v13989_v49 }
 0x339   : > { %9770 = vmatprep.mubr.f32.mxu1 %v14007_v54  ;;  %11356 = vmatpush3.bf16.msra.mxu1 %v11353_v43  ;;  %v3558_v43 = vld [vmem:[#allocation10 + $0x138] sm:$0xff] }
 0x33a   : > { %11358 = vmatprep.subr.bf16.mxu1 %v11357_v26 }
 0x33c   : > { %9771 = vmatmul.mubr.f32.gmra.mrb[6].mxu1 %v14003_v1 }
 0x33d   : > { %9773 = vmatprep.mubr.f32.mxu1 %v14028_v31  ;;  %11360 = vmatpush3.bf16.msra.mxu1 %v11357_v26  ;;  %v3562_v26 = vld [vmem:[#allocation10 + $0x158] sm:$0xff] }
 0x33e   : > { %11362 = vmatprep.subr.bf16.mxu1 %v11361_v3 }
 0x340   : > { %9774 = vmatmul.mubr.f32.gmra.mrb[8].mxu1 %v14023_v25 }
 0x341   : > { %9776 = vmatprep.mubr.f32.mxu1 %v14055_v59  ;;  %11364 = vmatpush3.bf16.msra.mxu1 %v11361_v3  ;;  %v3729_v3 = vld [vmem:[#allocation10 + $0x280] sm:$0xff] }
 0x342   : > { %11366 = vmatprep.subr.bf16.mxu1 %v11365_v61  ;;  %v11441_v4 = vpack.c.bf16 %v3730_v45, %v3729_v3  ;;  %v3546_v45 = vld [vmem:[#allocation3 + $0xc2] sm:$0xff] }
 0x344   : > { %9777 = vmatmul.mubr.f32.gmra.mrb[10].mxu1 %v14043_v32 }
 0x345   : > { %9779 = vmatprep.mubr.f32.mxu1 %v14070_v37  ;;  %11368 = vmatpush3.bf16.msra.mxu1 %v11365_v61  ;;  %v3731_v61 = vld [vmem:[#allocation10 + $0x290] sm:$0xff] }
 0x346   : > { %11370 = vmatprep.subr.bf16.mxu1 %v11369_v10 }
 0x348   : > { %9780 = vmatmul.mubr.f32.gmra.mrb[12].mxu1 %v14059_v35 }
 0x349   : > { %9782 = vmatprep.mubr.f32.mxu1 %v14081_v47  ;;  %11372 = vmatpush3.bf16.msra.mxu1 %v11369_v10  ;;  %v3734_v10 = vld [vmem:[#allocation10 + $0x2a8] sm:$0xff] }
 0x34a   : > { %11374 = vmatprep.subr.bf16.mxu1 %v11373_v17 }
 0x34c   : > { %9783 = vmatmul.mubr.f32.gmra.mrb[14].mxu1 %v14078_v28 }
 0x34d   : > { %11376 = vmatpush3.bf16.msra.mxu1 %v11373_v17  ;;  %9817 = vmatprep.mubr.f32.mxu1 %v13977_v12  ;;  %v11389_v12 = vpack.c.bf16 %v3360_v57, %v3359_v39  ;;  %v3735_v17 = vld [vmem:[#allocation10 + $0x2b0] sm:$0xff]  ;;  %v3740_v57 = vld [vmem:[#allocation10 + $0x2d8] sm:$0xff] }
 0x34e   : > { %11378 = vmatprep.subr.bf16.mxu1 %v11377_v52  ;;  %v3739_v39 = vld [vmem:[#allocation10 + $0x2d0] sm:$0xff] }
 0x350   : > { %9818 = vmatmul.mubr.f32.vlgmr.msra.gmra.mrb[0].mxu1 %v13974_v38  ;;  %v11393_v38 = vpack.c.bf16 %v3362_v41, %v3361_v44  ;;  %v11461_v44 = vpack.c.bf16 %v3740_v57, %v3739_v39  ;;  %v14217_v41 = vld [vmem:[#allocation3 + $0x6a] sm:$0xff] }
 0x351   : > { %9820 = vmatprep.mubr.f32.mxu1 %v13993_v34  ;;  %11380 = vmatpush3.bf16.msra.mxu1 %v11377_v52  ;;  %v11453_v52 = vpack.c.bf16 %v3736_v9, %v3735_v17  ;;  %v4329_v17 = vld [vmem:[#allocation11 + $0x1b0] sm:$0xff]  ;;  %v4330_v9 = vld [vmem:[#allocation11 + $0x1b8] sm:$0xff]  ;;  %v4336_v39 = vld [vmem:[#allocation11 + $0x1e8] sm:$0xff] }
 0x352   : > { %11382 = vmatprep.subr.bf16.mxu1 %v11381_v22 }
 0x354   : > { %9821 = vmatmul.mubr.f32.gmra.mrb[2].mxu1 %v13989_v49 }
 0x355   : > { %9823 = vmatprep.mubr.f32.mxu1 %v14007_v54  ;;  %11384 = vmatpush3.bf16.msra.mxu1 %v11381_v22  ;;  %v3738_v22 = vld [vmem:[#allocation10 + $0x2c8] sm:$0xff] }
 0x356   : > { %11386 = vmatprep.subr.bf16.mxu1 %v11385_v55  ;;  %v11457_v36 = vpack.c.bf16 %v3738_v22, %v3737_v29  ;;  %v4333_v22 = vld [vmem:[#allocation11 + $0x1d0] sm:$0xff] }
 0x358   : > { %9824 = vmatmul.mubr.f32.gmra.mrb[4].mxu1 %v14003_v1 }
 0x359   : > { %9826 = vmatprep.mubr.f32.mxu1 %v14028_v31  ;;  %11388 = vmatpush3.bf16.msra.mxu1 %v11385_v55  ;;  %v14211_v55 = vld [vmem:[#allocation3 + $0x52] sm:$0xff] }
 0x35a   : > { %11390 = vmatprep.subr.bf16.mxu1 %v11389_v12 }
 0x35c   : > { %9827 = vmatmul.mubr.f32.gmra.mrb[6].mxu1 %v14023_v25 }
 0x35d   : > { %9829 = vmatprep.mubr.f32.mxu1 %v14055_v59  ;;  %11392 = vmatpush3.bf16.msra.mxu1 %v11389_v12  ;;  %v14214_v12 = vld [vmem:[#allocation3 + $0x62] sm:$0xff] }
 0x35e   : > { %11394 = vmatprep.subr.bf16.mxu1 %v11393_v38 }
 0x360   : > { %9830 = vmatmul.mubr.f32.gmra.mrb[8].mxu1 %v14043_v32 }
 0x361   : > { %9832 = vmatprep.mubr.f32.mxu1 %v14070_v37  ;;  %11396 = vmatpush3.bf16.msra.mxu1 %v11393_v38  ;;  %v3741_v38 = vld [vmem:[#allocation10 + $0x2e0] sm:$0xff] }
 0x362   : > { %11398 = vmatprep.subr.bf16.mxu1 %v11397_v58 }
 0x364   : > { %9833 = vmatmul.mubr.f32.gmra.mrb[10].mxu1 %v14059_v35 }
 0x365   : > { %9835 = vmatprep.mubr.f32.mxu1 %v14081_v47  ;;  %11400 = vmatpush3.bf16.msra.mxu1 %v11397_v58  ;;  %v11465_v58 = vpack.c.bf16 %v3742_v53, %v3741_v38  ;;  %v4306_v38 = vld [vmem:[#allocation11] sm:$0xff]  ;;  %v4307_v53 = vld [vmem:[#allocation11 + $0x8] sm:$0xff] }
 0x366   : > { %11402 = vmatprep.subr.bf16.mxu1 %v11401_v63 }
 0x368   : > { %9836 = vmatmul.mubr.f32.gmra.mrb[12].mxu1 %v14078_v28 }
 0x369   : > { %9838 = vmatprep.mubr.f32.mxu1 %v14096_v30  ;;  %11404 = vmatpush3.bf16.msra.mxu1 %v11401_v63  ;;  %v3744_v63 = vld [vmem:[#allocation10 + $0x2f8] sm:$0xff] }
 0x36a   : > { %11406 = vmatprep.subr.bf16.mxu1 %v11405_v24  ;;  %v11469_v50 = vpack.c.bf16 %v3744_v63, %v3743_v48  ;;  %v14275_v48 = vld [vmem:[%s15233_s6 + $0x1] ss:$0 sm:$0xff] }
 0x36c   : > { %9839 = vmatmul.mubr.f32.gmra.mrb[14].mxu1 %v14093_v21 }
 0x36d   : > { %11408 = vmatpush3.bf16.msra.mxu1 %v11405_v24  ;;  %9873 = vmatprep.mubr.f32.mxu1 %v13993_v34  ;;  %v11421_v34 = vpack.c.bf16 %v3558_v43, %v3557_v62  ;;  %v14229_v24 = vld [vmem:[#allocation3 + $0x9a] sm:$0xff]  ;;  %v3912_v62 = vld [vmem:[#allocation10 + $0x428] sm:$0xff] }
 0x36e   : > { %11410 = vmatprep.subr.bf16.mxu1 %v11409_v33 }
 0x370   : > { %9874 = vmatmul.mubr.f32.vlgmr.msra.gmra.mrb[0].mxu1 %v13989_v49  ;;  %v11425_v49 = vpack.c.bf16 %v3560_v0, %v3559_v27  ;;  %v3914_v27 = vld [vmem:[#allocation10 + $0x438] sm:$0xff] }
 0x371   : > { %9876 = vmatprep.mubr.f32.mxu1 %v14007_v54  ;;  %11412 = vmatpush3.bf16.msra.mxu1 %v11409_v33  ;;  %v3561_v54 = vld [vmem:[#allocation10 + $0x150] sm:$0xff] }
 0x372   : > { %11414 = vmatprep.subr.bf16.mxu1 %v11413_v46  ;;  %v14232_v33 = vld [vmem:[#allocation3 + $0xaa] sm:$0xff] }
 0x374   : > { %9877 = vmatmul.mubr.f32.gmra.mrb[2].mxu1 %v14003_v1  ;;  %v11429_v1 = vpack.c.bf16 %v3562_v26, %v3561_v54  ;;  %v3916_v54 = vld [vmem:[#allocation10 + $0x448] sm:$0xff] }
 0x375   : > { %9879 = vmatprep.mubr.f32.mxu1 %v14028_v31  ;;  %11416 = vmatpush3.bf16.msra.mxu1 %v11413_v46  ;;  %v3563_v31 = vld [vmem:[#allocation10 + $0x160] sm:$0xff]  ;;  %v3909_v46 = vld [vmem:[#allocation10 + $0x410] sm:$0xff] }
 0x376   : > { %11418 = vmatprep.subr.bf16.mxu1 %v11417_v40  ;;  %v11477_v19 = vpack.c.bf16 %v3910_v20, %v3909_v46 }
 0x378   : > { %9880 = vmatmul.mubr.f32.gmra.mrb[4].mxu1 %v14023_v25  ;;  %v11433_v25 = vpack.c.bf16 %v3564_v14, %v3563_v31  ;;  %v3918_v31 = vld [vmem:[#allocation10 + $0x458] sm:$0xff] }
 0x379   : > { %9882 = vmatprep.mubr.f32.mxu1 %v14055_v59  ;;  %11420 = vmatpush3.bf16.msra.mxu1 %v11417_v40  ;;  %v3565_v59 = vld [vmem:[#allocation10 + $0x170] sm:$0xff]  ;;  %v3911_v40 = vld [vmem:[#allocation10 + $0x420] sm:$0xff] }
 0x37a   : > { %11422 = vmatprep.subr.bf16.mxu1 %v11421_v34  ;;  %v11481_v43 = vpack.c.bf16 %v3912_v62, %v3911_v40 }
 0x37c   : > { %9883 = vmatmul.mubr.f32.gmra.mrb[6].mxu1 %v14043_v32  ;;  %v2994_v32 = vld [vmem:[#allocation3 + $0xd9] sm:$0xff] }
 0x37d   : > { %9885 = vmatprep.mubr.f32.mxu1 %v14070_v37  ;;  %11424 = vmatpush3.bf16.msra.mxu1 %v11421_v34  ;;  %v11437_v37 = vpack.c.bf16 %v3566_v18, %v3565_v59  ;;  %v3913_v34 = vld [vmem:[#allocation10 + $0x430] sm:$0xff]  ;;  %v3920_v59 = vld [vmem:[#allocation10 + $0x468] sm:$0xff] }
 0x37e   : > { %11426 = vmatprep.subr.bf16.mxu1 %v11425_v49  ;;  %v11485_v0 = vpack.c.bf16 %v3914_v27, %v3913_v34 }
 0x380   : > { %9886 = vmatmul.mubr.f32.gmra.mrb[8].mxu1 %v14059_v35  ;;  %v2995_v35 = vld [vmem:[#allocation3 + $0xe1] sm:$0xff] }
 0x381   : > { %9888 = vmatprep.mubr.f32.mxu1 %v14081_v47  ;;  %11428 = vmatpush3.bf16.msra.mxu1 %v11425_v49  ;;  %v3530_v47 = vld [vmem:[#allocation3 + $0x2] sm:$0xff] }
 0x382   : > { %11430 = vmatprep.subr.bf16.mxu1 %v11429_v1  ;;  %v3915_v49 = vld [vmem:[#allocation10 + $0x440] sm:$0xff] }
 0x383   : > { %v11489_v26 = vpack.c.bf16 %v3916_v54, %v3915_v49 }
 0x384   : > { %9889 = vmatmul.mubr.f32.gmra.mrb[10].mxu1 %v14078_v28  ;;  %v3531_v28 = vld [vmem:[#allocation3 + $0xa] sm:$0xff] }
 0x385   : > { %9891 = vmatprep.mubr.f32.mxu1 %v14096_v30  ;;  %11432 = vmatpush3.bf16.msra.mxu1 %v11429_v1  ;;  %v11445_v30 = vpack.c.bf16 %v3732_v5, %v3731_v61  ;;  %v3917_v1 = vld [vmem:[#allocation10 + $0x450] sm:$0xff]  ;;  %v4323_v61 = vld [vmem:[#allocation11 + $0x180] sm:$0xff]  ;;  %v4324_v5 = vld [vmem:[#allocation11 + $0x188] sm:$0xff] }
 0x386   : > { %11434 = vmatprep.subr.bf16.mxu1 %v11433_v25  ;;  %v11493_v14 = vpack.c.bf16 %v3918_v31, %v3917_v1 }
 0x388   : > { %9892 = vmatmul.mubr.f32.gmra.mrb[12].mxu1 %v14093_v21  ;;  %v11449_v21 = vpack.c.bf16 %v3734_v10, %v3733_v7  ;;  %v4326_v7 = vld [vmem:[#allocation11 + $0x198] sm:$0xff] }
 0x389   : > { %11436 = vmatpush3.bf16.msra.mxu1 %v11433_v25  ;;  %9894 = vmatprep.mubr.f32.mxu1 %v2994_v32  ;;  %v3919_v25 = vld [vmem:[#allocation10 + $0x460] sm:$0xff]  ;;  %v3921_v32 = vld [vmem:[#allocation10 + $0x470] sm:$0xff] }
 0x38a   : > { %11438 = vmatprep.subr.bf16.mxu1 %v11437_v37  ;;  %v11497_v18 = vpack.c.bf16 %v3920_v59, %v3919_v25 }
 0x38c   : > { %9895 = vmatmul.mubr.f32.gmra.mrb[14].mxu1 %v2995_v35  ;;  %v3547_v35 = vld [vmem:[#allocation3 + $0xca] sm:$0xff] }
 0x38d   : > { %11440 = vmatpush3.bf16.msra.mxu1 %v11437_v37  ;;  %9929 = vmatprep.mubr.f32.mxu1 %v3530_v47  ;;  %v3922_v37 = vld [vmem:[#allocation10 + $0x478] sm:$0xff] }
 0x38e   : > { %11442 = vmatprep.subr.bf16.mxu1 %v11441_v4  ;;  %v11501_v3 = vpack.c.bf16 %v3922_v37, %v3921_v32  ;;  %v3548_v47 = vld [vmem:[#allocation3 + $0xda] sm:$0xff] }
 0x390   : > { %9930 = vmatmul.mubr.f32.vlgmr.msra.gmra.mrb[0].mxu1 %v3531_v28  ;;  %v11505_v28 = vpack.c.bf16 %v4324_v5, %v4323_v61 }
 0x391   : > { %9932 = vmatprep.mubr.f32.mxu1 %v14196_v60  ;;  %11444 = vmatpush3.bf16.msra.mxu1 %v11441_v4  ;;  %v3549_v4 = vld [vmem:[#allocation3 + $0xe2] sm:$0xff] }
 0x392   : > { %11446 = vmatprep.subr.bf16.mxu1 %v11445_v30  ;;  %11506 = vmatprep.subr.bf16.mxu0 %v11505_v28 }
 0x393   : > { %11508 = vmatpush3.bf16.msra.mxu0 %v11505_v28 }
 0x394   : > { %9933 = vmatmul.mubr.f32.gmra.mrb[2].mxu1 %v14199_v15 }
 0x395   : > { %9935 = vmatprep.mubr.f32.mxu1 %v14202_v11  ;;  %11448 = vmatpush3.bf16.msra.mxu1 %v11445_v30  ;;  %v4325_v30 = vld [vmem:[#allocation11 + $0x190] sm:$0xff] }
 0x396   : > { %11450 = vmatprep.subr.bf16.mxu1 %v11449_v21  ;;  %v11509_v10 = vpack.c.bf16 %v4326_v7, %v4325_v30 }
 0x398   : > { %9936 = vmatmul.mubr.f32.gmra.mrb[4].mxu1 %v14205_v56  ;;  %11510 = vmatprep.subr.bf16.mxu0 %v11509_v10 }
 0x399   : > { %9938 = vmatprep.mubr.f32.mxu1 %v14208_v8  ;;  %11452 = vmatpush3.bf16.msra.mxu1 %v11449_v21  ;;  %v4328_v21 = vld [vmem:[#allocation11 + $0x1a8] sm:$0xff] }
 0x39a   : > { %11454 = vmatprep.subr.bf16.mxu1 %v11453_v52  ;;  %11512 = vmatpush3.bf16.msra.mxu0 %v11509_v10 }
 0x39c   : > { %9939 = vmatmul.mubr.f32.gmra.mrb[6].mxu1 %v14211_v55 }
 0x39d   : > { %9941 = vmatprep.mubr.f32.mxu1 %v14214_v12  ;;  %11456 = vmatpush3.bf16.msra.mxu1 %v11453_v52  ;;  %v4331_v52 = vld [vmem:[#allocation11 + $0x1c0] sm:$0xff] }
 0x39e   : > { %11458 = vmatprep.subr.bf16.mxu1 %v11457_v36 }
 0x3a0   : > { %9942 = vmatmul.mubr.f32.gmra.mrb[8].mxu1 %v14217_v41 }
 0x3a1   : > { %9944 = vmatprep.mubr.f32.mxu1 %v14220_v16  ;;  %11460 = vmatpush3.bf16.msra.mxu1 %v11457_v36 }
 0x3a2   : > { %11462 = vmatprep.subr.bf16.mxu1 %v11461_v44 }
 0x3a4   : > { %9945 = vmatmul.mubr.f32.gmra.mrb[10].mxu1 %v14223_v6 }
 0x3a5   : > { %9947 = vmatprep.mubr.f32.mxu1 %v14226_v23  ;;  %11464 = vmatpush3.bf16.msra.mxu1 %v11461_v44  ;;  %v4338_v44 = vld [vmem:[#allocation11 + $0x1f8] sm:$0xff] }
 0x3a6   : > { %11466 = vmatprep.subr.bf16.mxu1 %v11465_v58 }
 0x3a8   : > { %9948 = vmatmul.mubr.f32.gmra.mrb[12].mxu1 %v14229_v24 }
 0x3a9   : > { %9950 = vmatprep.mubr.f32.mxu1 %v14232_v33  ;;  %11468 = vmatpush3.bf16.msra.mxu1 %v11465_v58  ;;  %v14270_v58 = vld [vmem:[%s15233_s6] ss:$0 sm:$0xff] }
 0x3aa   : > { %11470 = vmatprep.subr.bf16.mxu1 %v11469_v50 }
 0x3ac   : > { %9951 = vmatmul.mubr.f32.gmra.mrb[14].mxu1 %v14235_v2 }
 0x3ad   : > { %11472 = vmatpush3.bf16.msra.mxu1 %v11469_v50  ;;  %9985 = vmatprep.mubr.f32.mxu1 %v14196_v60  ;;  %v4327_v60 = vld [vmem:[#allocation11 + $0x1a0] sm:$0xff] }
 0x3ae   : > { %11474 = vmatprep.subr.bf16.mxu1 %v11473_v42 }
 0x3b0   : > { %9986 = vmatmul.mubr.f32.vlgmr.msra.gmra.mrb[0].mxu1 %v14199_v15  ;;  %v11513_v15 = vpack.c.bf16 %v4328_v21, %v4327_v60 }
 0x3b1   : > { %9988 = vmatprep.mubr.f32.mxu1 %v14202_v11  ;;  %11476 = vmatpush3.bf16.msra.mxu1 %v11473_v42 }
 0x3b2   : > { %11478 = vmatprep.subr.bf16.mxu1 %v11477_v19  ;;  %11514 = vmatprep.subr.bf16.mxu0 %v11513_v15 }
 0x3b3   : > { %11516 = vmatpush3.bf16.msra.mxu0 %v11513_v15 }
 0x3b4   : > { %9989 = vmatmul.mubr.f32.gmra.mrb[2].mxu1 %v14205_v56 }
 0x3b5   : > { %9991 = vmatprep.mubr.f32.mxu1 %v14208_v8  ;;  %11480 = vmatpush3.bf16.msra.mxu1 %v11477_v19 }
 0x3b6   : > { %11482 = vmatprep.subr.bf16.mxu1 %v11481_v43 }
 0x3b8   : > { %9992 = vmatmul.mubr.f32.gmra.mrb[4].mxu1 %v14211_v55 }
 0x3b9   : > { %9994 = vmatprep.mubr.f32.mxu1 %v14214_v12  ;;  %11484 = vmatpush3.bf16.msra.mxu1 %v11481_v43 }
 0x3ba   : > { %11486 = vmatprep.subr.bf16.mxu1 %v11485_v0 }
 0x3bc   : > { %9995 = vmatmul.mubr.f32.gmra.mrb[6].mxu1 %v14217_v41 }
 0x3bd   : > { %9997 = vmatprep.mubr.f32.mxu1 %v14220_v16  ;;  %11488 = vmatpush3.bf16.msra.mxu1 %v11485_v0 }
 0x3be   : > { %11490 = vmatprep.subr.bf16.mxu1 %v11489_v26 }
 0x3c0   : > { %9998 = vmatmul.mubr.f32.gmra.mrb[8].mxu1 %v14223_v6 }
 0x3c1   : > { %10000 = vmatprep.mubr.f32.mxu1 %v14226_v23  ;;  %11492 = vmatpush3.bf16.msra.mxu1 %v11489_v26 }
 0x3c2   : > { %11494 = vmatprep.subr.bf16.mxu1 %v11493_v14 }
 0x3c4   : > { %10001 = vmatmul.mubr.f32.gmra.mrb[10].mxu1 %v14229_v24 }
 0x3c5   : > { %10003 = vmatprep.mubr.f32.mxu1 %v14232_v33  ;;  %11496 = vmatpush3.bf16.msra.mxu1 %v11493_v14 }
 0x3c6   : > { %11498 = vmatprep.subr.bf16.mxu1 %v11497_v18 }
 0x3c8   : > { %10004 = vmatmul.mubr.f32.gmra.mrb[12].mxu1 %v14235_v2 }
 0x3c9   : > { %10006 = vmatprep.mubr.f32.mxu1 %v3546_v45  ;;  %11500 = vmatpush3.bf16.msra.mxu1 %v11497_v18 }
 0x3ca   : > { %11502 = vmatprep.subr.bf16.mxu1 %v11501_v3 }
 0x3cc   : > { %10007 = vmatmul.mubr.f32.gmra.mrb[14].mxu1 %v3547_v35 }
 0x3cd   : > { %11504 = vmatpush3.bf16.msra.mxu1 %v11501_v3  ;;  %10041 = vmatprep.mubr.f32.mxu1 %v14202_v11  ;;  %v11517_v11 = vpack.c.bf16 %v4330_v9, %v4329_v17 }
 0x3cf   : > { %11518 = vmatprep.subr.bf16.mxu0 %v11517_v11 }
 0x3d0   : > { %10042 = vmatmul.mubr.f32.vlgmr.msra.gmra.mrb[0].mxu1 %v14205_v56  ;;  %11520 = vmatpush3.bf16.msra.mxu0 %v11517_v11  ;;  %v4332_v56 = vld [vmem:[#allocation11 + $0x1c8] sm:$0xff] }
 0x3d1   : > { %10044 = vmatprep.mubr.f32.mxu1 %v14208_v8  ;;  %v11521_v29 = vpack.c.bf16 %v4332_v56, %v4331_v52  ;;  %v4334_v8 = vld [vmem:[#allocation11 + $0x1d8] sm:$0xff] }
 0x3d2   : > { %v11525_v36 = vpack.c.bf16 %v4334_v8, %v4333_v22 }
 0x3d3   : > { %11522 = vmatprep.subr.bf16.mxu0 %v11521_v29 }
 0x3d4   : > { %10045 = vmatmul.mubr.f32.gmra.mrb[2].mxu1 %v14211_v55  ;;  %11524 = vmatpush3.bf16.msra.mxu0 %v11521_v29  ;;  %v4335_v55 = vld [vmem:[#allocation11 + $0x1e0] sm:$0xff] }
 0x3d5   : > { %10047 = vmatprep.mubr.f32.mxu1 %v14214_v12  ;;  %11526 = vmatprep.subr.bf16.mxu0 %v11525_v36  ;;  %v11529_v57 = vpack.c.bf16 %v4336_v39, %v4335_v55  ;;  %v4337_v12 = vld [vmem:[#allocation11 + $0x1f0] sm:$0xff] }
 0x3d8   : > { %10048 = vmatmul.mubr.f32.gmra.mrb[4].mxu1 %v14217_v41  ;;  %11528 = vmatpush3.bf16.msra.mxu0 %v11525_v36  ;;  %v11533_v41 = vpack.c.bf16 %v4338_v44, %v4337_v12 }
 0x3d9   : > { %10050 = vmatprep.mubr.f32.mxu1 %v14220_v16  ;;  %11530 = vmatprep.subr.bf16.mxu0 %v11529_v57  ;;  %v14264_v16 = vpack.c.bf16 %v4307_v53, %v4306_v38 }
 0x3dc   : > { %10051 = vmatmul.mubr.f32.gmra.mrb[6].mxu1 %v14223_v6  ;;  %11532 = vmatpush3.bf16.msra.mxu0 %v11529_v57 }
 0x3dd   : > { %10053 = vmatprep.mubr.f32.mxu1 %v14226_v23  ;;  %11534 = vmatprep.subr.bf16.mxu0 %v11533_v41 }
 0x3e0   : > { %10054 = vmatmul.mubr.f32.gmra.mrb[8].mxu1 %v14229_v24  ;;  %11536 = vmatpush3.bf16.msra.mxu0 %v11533_v41 }
 0x3e1   : > { %10056 = vmatprep.mubr.f32.mxu1 %v14232_v33  ;;  %11538 = vmatprep.subr.bf16.mxu0 %v14264_v16 }
 0x3e4   : > { %10057 = vmatmul.mubr.f32.gmra.mrb[10].mxu1 %v14235_v2 }
 0x3e5   : > { %10059 = vmatprep.mubr.f32.mxu1 %v3546_v45 }
 0x3e8   : > { %10060 = vmatmul.mubr.f32.gmra.mrb[12].mxu1 %v3547_v35 }
 0x3e9   : > { %10062 = vmatprep.mubr.f32.mxu1 %v3548_v47 }
 0x3ec   : > { %10063 = vmatmul.mubr.f32.gmra.mrb[14].mxu1 %v3549_v4 }
 0x4a3   : > { %v10043_v6 = vpop.f32.mrb[0].mxu1 }
 0x4a4   : > { %v4090_v63 = vmul.f32 %v10043_v6, %v14270_v58  ;;  %v3989_v23 = vpop.f32.mrb[1].mxu1 }
 0x4a5   : > { %v4089_v50 = vmul.f32 %v14270_v58, %v3989_v23 }
 0x4a6   : > { %v14280_v24 = vadd.f32 %v14275_v48, %v4090_v63 }
 0x4a7   : > { %v14283_v13 = vadd.f32 %v14275_v48, %v4089_v50  ;;  %v10046_v51 = vpop.f32.mrb[2].mxu1 }
 0x4a8   : > { %v4127_v33 = vmin.f32 %v14280_v24, 30.0  ;;  %v4092_v42 = vmul.f32 %v10046_v51, %v14270_v58  ;;  %v3999_v2 = vpop.f32.mrb[3].mxu1 }
 0x4a9   : > { %v4126_v46 = vmin.f32 %v14283_v13, 30.0  ;;  %v4091_v20 = vmul.f32 %v14270_v58, %v3999_v2 }
 0x4aa   : > { %v4144_v19 = vmul.f32 1.442695, %v4127_v33  ;;  %v14290_v40 = vadd.f32 %v14275_v48, %v4092_v42 }
 0x4ab   : > { %v4142_v62 = vmul.f32 1.442695, %v4126_v46  ;;  %v14293_v43 = vadd.f32 %v14275_v48, %v4091_v20  ;;  %v10049_v34 = vpop.f32.mrb[4].mxu1 }
 0x4ac   : > { %12765 = vpow2.f32 %v4144_v19  ;;  %v4129_v27 = vmin.f32 %v14290_v40, 30.0  ;;  %v4094_v0 = vmul.f32 %v10049_v34, %v14270_v58  ;;  %v4009_v49 = vpop.f32.mrb[5].mxu1 }
 0x4ad   : > { %12767 = vpow2.f32 %v4142_v62  ;;  %v4128_v54 = vmin.f32 %v14293_v43, 30.0  ;;  %v4093_v26 = vmul.f32 %v14270_v58, %v4009_v49 }
 0x4ae   : > { %v4148_v1 = vmul.f32 1.442695, %v4129_v27  ;;  %v14300_v31 = vadd.f32 %v14275_v48, %v4094_v0 }
 0x4af   : > { %v4146_v14 = vmul.f32 1.442695, %v4128_v54  ;;  %v14303_v25 = vadd.f32 %v14275_v48, %v4093_v26  ;;  %v10052_v59 = vpop.f32.mrb[6].mxu1 }
 0x4b0   : > { %12769 = vpow2.f32 %v4148_v1  ;;  %v4131_v18 = vmin.f32 %v14300_v31, 30.0  ;;  %v4096_v32 = vmul.f32 %v10052_v59, %v14270_v58  ;;  %v4019_v37 = vpop.f32.mrb[7].mxu1 }
 0x4b1   : > { %12771 = vpow2.f32 %v4146_v14  ;;  %v4130_v3 = vmin.f32 %v14303_v25, 30.0  ;;  %v4095_v45 = vmul.f32 %v14270_v58, %v4019_v37 }
 0x4b2   : > { %v4152_v35 = vmul.f32 1.442695, %v4131_v18  ;;  %v14310_v47 = vadd.f32 %v14275_v48, %v4096_v32 }
 0x4b3   : > { %v4150_v4 = vmul.f32 1.442695, %v4130_v3  ;;  %v14313_v61 = vadd.f32 %v14275_v48, %v4095_v45  ;;  %v10055_v5 = vpop.f32.mrb[8].mxu1 }
 0x4b4   : > { %12773 = vpow2.f32 %v4152_v35  ;;  %v4133_v28 = vmin.f32 %v14310_v47, 30.0  ;;  %v4098_v30 = vmul.f32 %v10055_v5, %v14270_v58  ;;  %v4029_v7 = vpop.f32.mrb[9].mxu1 }
 0x4b5   : > { %12775 = vpow2.f32 %v4150_v4  ;;  %v4132_v10 = vmin.f32 %v14313_v61, 30.0  ;;  %v4097_v60 = vmul.f32 %v14270_v58, %v4029_v7 }
 0x4b6   : > { %v12766_v21 = vpop.eup %12765  ;;  %v4156_v15 = vmul.f32 1.442695, %v4133_v28  ;;  %v14320_v17 = vadd.f32 %v14275_v48, %v4098_v30 }
 0x4b7   : > { %v12768_v9 = vpop.eup %12767  ;;  %v4175_v11 = vadd.f32 2.0, %v12766_v21  ;;  %v4154_v52 = vmul.f32 1.442695, %v4132_v10  ;;  %v14323_v56 = vadd.f32 %v14275_v48, %v4097_v60  ;;  %v10058_v29 = vpop.f32.mrb[10].mxu1 }
 0x4b8   : > { %v4174_v22 = vadd.f32 2.0, %v12768_v9  ;;  %12777 = vpow2.f32 %v4156_v15  ;;  %v4135_v8 = vmin.f32 %v14320_v17, 30.0  ;;  %v4100_v36 = vmul.f32 %v10058_v29, %v14270_v58  ;;  %v4039_v55 = vpop.f32.mrb[11].mxu1 }
 0x4b9   : > { %v14327_v39 = vmul.f32 %v12766_v21, %v4175_v11  ;;  %12779 = vpow2.f32 %v4154_v52  ;;  %v4134_v57 = vmin.f32 %v14323_v56, 30.0  ;;  %v4099_v12 = vmul.f32 %v14270_v58, %v4039_v55 }
 0x4ba   : > { %v12770_v44 = vpop.eup %12769  ;;  %v14331_v41 = vmul.f32 %v12768_v9, %v4174_v22  ;;  %v4160_v38 = vmul.f32 1.442695, %v4135_v8  ;;  %v14334_v53 = vadd.f32 %v14275_v48, %v4100_v36 }
 0x4bb   : > { %v12772_v6 = vpop.eup %12771  ;;  %v4207_v63 = vadd.f32 2.0, %v14327_v39  ;;  %v4177_v23 = vadd.f32 2.0, %v12770_v44  ;;  %v4158_v50 = vmul.f32 1.442695, %v4134_v57  ;;  %v14338_v51 = vadd.f32 %v14275_v48, %v4099_v12  ;;  %v10061_v33 = vpop.f32.mrb[12].mxu1 }
 0x4bc   : > { %v4206_v42 = vadd.f32 2.0, %v14331_v41  ;;  %v4176_v2 = vadd.f32 2.0, %v12772_v6  ;;  %12781 = vpow2.f32 %v4160_v38  ;;  %v4137_v46 = vmin.f32 %v14334_v53, 30.0  ;;  %v4049_v20 = vpop.f32.mrb[13].mxu1 }
 0x4bd   : > { %12783 = vrcp.f32 %v4207_v63  ;;  %v14342_v19 = vmul.f32 %v12770_v44, %v4177_v23  ;;  %v4136_v62 = vmin.f32 %v14338_v51, 30.0  ;;  %v4102_v34 = vmul.f32 %v10061_v33, %v14270_v58 }
 0x4be   : > { %v12774_v27 = vpop.eup %12773  ;;  %12785 = vrcp.f32 %v4206_v42  ;;  %v14346_v0 = vmul.f32 %v12772_v6, %v4176_v2  ;;  %v4164_v49 = vmul.f32 1.442695, %v4137_v46  ;;  %v4101_v54 = vmul.f32 %v14270_v58, %v4049_v20 }
 0x4bf   : > { %v12776_v26 = vpop.eup %12775  ;;  %v4209_v1 = vadd.f32 2.0, %v14342_v19  ;;  %v4179_v14 = vadd.f32 2.0, %v12774_v27  ;;  %12787 = vpow2.f32 %v4158_v50  ;;  %v4162_v59 = vmul.f32 1.442695, %v4136_v62  ;;  %v10064_v18 = vpop.f32.mrb[14].mxu1 }
 0x4c0   : > { %v4208_v32 = vadd.f32 2.0, %v14346_v0  ;;  %v4178_v37 = vadd.f32 2.0, %v12776_v26  ;;  %12789 = vpow2.f32 %v4164_v49  ;;  %v14352_v3 = vadd.f32 %v14275_v48, %v4102_v34  ;;  %v4059_v45 = vpop.f32.mrb[15].mxu1 }
 0x4c1   : > { %12791 = vrcp.f32 %v4209_v1  ;;  %v14354_v35 = vmul.f32 %v12774_v27, %v4179_v14  ;;  %v14357_v4 = vadd.f32 %v14275_v48, %v4101_v54  ;;  %v4104_v5 = vmul.f32 %v10064_v18, %v14270_v58 }
 0x4c2   : > { %v12778_v28 = vpop.eup %12777  ;;  %12793 = vrcp.f32 %v4208_v32  ;;  %v14360_v30 = vmul.f32 %v12776_v26, %v4178_v37  ;;  %v4139_v7 = vmin.f32 %v14352_v3, 30.0  ;;  %v4103_v10 = vmul.f32 %v14270_v58, %v4059_v45 }
 0x4c3   : > { %v12780_v60 = vpop.eup %12779  ;;  %v4211_v21 = vadd.f32 2.0, %v14354_v35  ;;  %v4181_v15 = vadd.f32 2.0, %v12778_v28  ;;  %12795 = vpow2.f32 %v4162_v59  ;;  %v4138_v9 = vmin.f32 %v14357_v4, 30.0 }
 0x4c4   : > { %v4210_v11 = vadd.f32 2.0, %v14360_v30  ;;  %v4180_v52 = vadd.f32 2.0, %v12780_v60  ;;  %v4168_v29 = vmul.f32 1.442695, %v4139_v7  ;;  %v14368_v22 = vadd.f32 %v14275_v48, %v4104_v5 }
 0x4c5   : > { %12797 = vrcp.f32 %v4211_v21  ;;  %v14370_v8 = vmul.f32 %v12778_v28, %v4181_v15  ;;  %v4166_v36 = vmul.f32 1.442695, %v4138_v9  ;;  %v14373_v58 = vadd.f32 %v14275_v48, %v4103_v10  ;;  %v4309_v21 = vld [vmem:[#allocation11 + $0x18] sm:$0xff] }
 0x4c6   : > { %v12782_v55 = vpop.eup %12781  ;;  %12799 = vrcp.f32 %v4210_v11  ;;  %v14375_v57 = vmul.f32 %v12780_v60, %v4180_v52  ;;  %v4141_v12 = vmin.f32 %v14368_v22, 30.0  ;;  %v4308_v60 = vld [vmem:[#allocation11 + $0x10] sm:$0xff] }
 0x4c7   : > { %v12784_v44 = vpop.eup %12783  ;;  %v4213_v38 = vadd.f32 2.0, %v14370_v8  ;;  %v4183_v6 = vadd.f32 2.0, %v12782_v55  ;;  %12801 = vpow2.f32 %v4168_v29  ;;  %v4140_v63 = vmin.f32 %v14373_v58, 30.0 }
 0x4c8   : > { %v12786_v23 = vpop.eup %12785  ;;  %v4225_v50 = vmul.f32 %v12784_v44, %v14327_v39  ;;  %v4212_v33 = vadd.f32 2.0, %v14375_v57  ;;  %12803 = vpow2.f32 %v4166_v36  ;;  %v4172_v48 = vmul.f32 1.442695, %v4141_v12 }
 0x4c9   : > { %v12788_v42 = vpop.eup %12787  ;;  %v4223_v2 = vmul.f32 %v12786_v23, %v14331_v41  ;;  %12805 = vrcp.f32 %v4213_v38  ;;  %v14383_v46 = vmul.f32 %v12782_v55, %v4183_v6  ;;  %v4170_v20 = vmul.f32 1.442695, %v4140_v63  ;;  %v4310_v63 = vld [vmem:[#allocation11 + $0x20] sm:$0xff]  ;;  %v4311_v23 = vld [vmem:[#allocation11 + $0x28] sm:$0xff] }
 0x4ca   : > { %v12790_v62 = vpop.eup %12789  ;;  %v14386_v34 = vmul.f32 %v4225_v50, %v14280_v24  ;;  %12807 = vrcp.f32 %v4212_v33  ;;  %v4182_v27 = vadd.f32 2.0, %v12788_v42  ;;  %v11541_v44 = vpack.c.bf16 %v4309_v21, %v4308_v60 }
 0x4cb   : > { %v12792_v49 = vpop.eup %12791  ;;  %v14389_v39 = vmul.f32 %v4223_v2, %v14283_v13  ;;  %v4215_v54 = vadd.f32 2.0, %v14383_v46  ;;  %v4185_v26 = vadd.f32 2.0, %v12790_v62  ;;  %12809 = vpow2.f32 %v4172_v48 }
 0x4cc   : > { %v12794_v1 = vpop.eup %12793  ;;  %4271 = vst [vmem:[#allocation4 + $0x21] sm:$0xff] %v14386_v34  ;;  %v4229_v41 = vmul.f32 %v12792_v49, %v14342_v19  ;;  %v14394_v14 = vmul.f32 %v12788_v42, %v4182_v27  ;;  %12811 = vpow2.f32 %v4170_v20 }
 0x4cd   : > { %v12796_v24 = vpop.eup %12795  ;;  %4270 = vst [vmem:[#allocation4 + $0x19] sm:$0xff] %v14389_v39  ;;  %v4227_v59 = vmul.f32 %v12794_v1, %v14346_v0  ;;  %12813 = vrcp.f32 %v4215_v54  ;;  %v14398_v13 = vmul.f32 %v12790_v62, %v4185_v26  ;;  %v11545_v54 = vpack.c.bf16 %v4311_v23, %v4310_v63  ;;  %v4313_v26 = vld [vmem:[#allocation11 + $0x38] sm:$0xff] }
 0x4ce   : > { %v14401_v18 = vmul.f32 %v4229_v41, %v14290_v40  ;;  %v4214_v32 = vadd.f32 2.0, %v14394_v14  ;;  %v4184_v37 = vadd.f32 2.0, %v12796_v24 }
 0x4cf   : > { %v12798_v45 = vpop.eup %12797  ;;  %v14405_v19 = vmul.f32 %v4227_v59, %v14293_v43  ;;  %v4217_v5 = vadd.f32 2.0, %v14398_v13 }
 0x4d0   : > { %v12800_v28 = vpop.eup %12799  ;;  %4273 = vst [vmem:[#allocation4 + $0x39] sm:$0xff] %v14401_v18  ;;  %v4233_v0 = vmul.f32 %v12798_v45, %v14354_v35  ;;  %12815 = vrcp.f32 %v4214_v32  ;;  %v14410_v7 = vmul.f32 %v12796_v24, %v4184_v37 }
 0x4d1   : > { %v12802_v10 = vpop.eup %12801  ;;  %4272 = vst [vmem:[#allocation4 + $0x31] sm:$0xff] %v14405_v19  ;;  %v4231_v40 = vmul.f32 %v12800_v28, %v14360_v30  ;;  %12817 = vrcp.f32 %v4217_v5 }
 0x4d2   : > { %v12804_v43 = vpop.eup %12803  ;;  %v14415_v15 = vmul.f32 %v4233_v0, %v14300_v31  ;;  %v4216_v9 = vadd.f32 2.0, %v14410_v7  ;;  %v4187_v11 = vadd.f32 2.0, %v12802_v10  ;;  %v4315_v0 = vld [vmem:[#allocation11 + $0x48] sm:$0xff] }
 0x4d3   : > { %v12806_v52 = vpop.eup %12805  ;;  %v14419_v35 = vmul.f32 %v4231_v40, %v14303_v25  ;;  %v4186_v29 = vadd.f32 2.0, %v12804_v43 }
 0x4d4   : > { %v12808_v36 = vpop.eup %12807  ;;  %4275 = vst [vmem:[#allocation4 + $0x51] sm:$0xff] %v14415_v15  ;;  %v4237_v30 = vmul.f32 %v12806_v52, %v14370_v8  ;;  %12819 = vrcp.f32 %v4216_v9  ;;  %v14423_v55 = vmul.f32 %v12802_v10, %v4187_v11  ;;  %v14425_v12 = vld [vmem:[#allocation4 + $0x18] sm:$0xff]  ;;  %v14427_v31 = vld [vmem:[#allocation4 + $0x20] sm:$0xff]  ;;  %v4317_v9 = vld [vmem:[#allocation11 + $0x58] sm:$0xff] }
 0x4d5   : > { %v12810_v38 = vpop.eup %12809  ;;  %4274 = vst [vmem:[#allocation4 + $0x49] sm:$0xff] %v14419_v35  ;;  %v4235_v25 = vmul.f32 %v12808_v36, %v14375_v57  ;;  %v14431_v6 = vmul.f32 %v12804_v43, %v4186_v29  ;;  %10097 = vmatprep.mubr.f32.mxu0 %v14425_v12 }
 0x4d6   : > { %v12812_v8 = vpop.eup %12811  ;;  %v14435_v50 = vmul.f32 %v4237_v30, %v14310_v47  ;;  %v4219_v33 = vadd.f32 2.0, %v14423_v55  ;;  %v4189_v48 = vadd.f32 2.0, %v12810_v38  ;;  %10098 = vmatmul.mubr.f32.vlgmr.msra.gmra.mrb[16].mxu0 %v14427_v31  ;;  %v4318_v30 = vld [vmem:[#allocation11 + $0x60] sm:$0xff] }
 0x4d7   : > { %v12814_v42 = vpop.eup %12813  ;;  %v14440_v2 = vmul.f32 %v4235_v25, %v14313_v61  ;;  %v4218_v57 = vadd.f32 2.0, %v14431_v6  ;;  %v4188_v20 = vadd.f32 2.0, %v12812_v8  ;;  %11540 = vmatpush3.bf16.msra.mxu0 %v14264_v16  ;;  %v4312_v16 = vld [vmem:[#allocation11 + $0x30] sm:$0xff] }
 0x4d8   : > { %4277 = vst [vmem:[#allocation4 + $0x69] sm:$0xff] %v14435_v50  ;;  %v4241_v62 = vmul.f32 %v12814_v42, %v14383_v46  ;;  %12821 = vrcp.f32 %v4219_v33  ;;  %v14446_v47 = vmul.f32 %v12810_v38, %v4189_v48  ;;  %v14448_v27 = vld [vmem:[#allocation4 + $0x30] sm:$0xff]  ;;  %v14450_v49 = vld [vmem:[#allocation4 + $0x38] sm:$0xff]  ;;  %11542 = vmatprep.subr.bf16.mxu0 %v11541_v44  ;;  %v4320_v33 = vld [vmem:[#allocation11 + $0x70] sm:$0xff] }
 0x4d9   : > { %4276 = vst [vmem:[#allocation4 + $0x61] sm:$0xff] %v14440_v2  ;;  %12823 = vrcp.f32 %v4218_v57  ;;  %v4204_v61 = vmul.f32 %v12812_v8, %v4188_v20  ;;  %10100 = vmatprep.mubr.f32.mxu0 %v14448_v27  ;;  %v4321_v48 = vld [vmem:[#allocation11 + $0x78] sm:$0xff] }
 0x4da   : > { %v12816_v1 = vpop.eup %12815  ;;  %v14455_v46 = vmul.f32 %v4241_v62, %v14320_v17  ;;  %v4221_v41 = vadd.f32 2.0, %v14446_v47  ;;  %10101 = vmatmul.mubr.f32.gmra.mrb[18].mxu0 %v14450_v49  ;;  %v11549_v17 = vpack.c.bf16 %v4313_v26, %v4312_v16  ;;  %v4630_v62 = vld [vmem:[#allocation11 + $0x300] sm:$0xff] }
 0x4db   : > { %v12818_v24 = vpop.eup %12817  ;;  %v4239_v59 = vmul.f32 %v12816_v1, %v14394_v14  ;;  %v4220_v32 = vadd.f32 2.0, %v4204_v61  ;;  %11544 = vmatpush3.bf16.msra.mxu0 %v11541_v44  ;;  %v4314_v14 = vld [vmem:[#allocation11 + $0x40] sm:$0xff]  ;;  %v4319_v44 = vld [vmem:[#allocation11 + $0x68] sm:$0xff]  ;;  %v4632_v1 = vld [vmem:[#allocation11 + $0x310] sm:$0xff] }
 0x4dc   : > { %4279 = vst [vmem:[#allocation4 + $0x81] sm:$0xff] %v14455_v46  ;;  %v4245_v37 = vmul.f32 %v12818_v24, %v14398_v13  ;;  %12825 = vrcp.f32 %v4221_v41  ;;  %v14462_v45 = vld [vmem:[#allocation4 + $0x48] sm:$0xff]  ;;  %v14464_v5 = vld [vmem:[#allocation4 + $0x50] sm:$0xff]  ;;  %11546 = vmatprep.subr.bf16.mxu0 %v11545_v54  ;;  %v11553_v21 = vpack.c.bf16 %v4315_v0, %v4314_v14  ;;  %v4636_v14 = vld [vmem:[#allocation11 + $0x330] sm:$0xff] }
 0x4dd   : > { %v14467_v28 = vmul.f32 %v4239_v59, %v14323_v56  ;;  %12827 = vrcp.f32 %v4220_v32  ;;  %10103 = vmatprep.mubr.f32.mxu0 %v14462_v45  ;;  %v4633_v41 = vld [vmem:[#allocation11 + $0x318] sm:$0xff]  ;;  %v14530_v24 = vld [vmem:[#allocation3] sm:$0xff] }
 0x4de   : > { %v12820_v10 = vpop.eup %12819  ;;  %v14471_v40 = vmul.f32 %v4245_v37, %v14334_v53  ;;  %10104 = vmatmul.mubr.f32.gmra.mrb[20].mxu0 %v14464_v5  ;;  %v4316_v53 = vld [vmem:[#allocation11 + $0x50] sm:$0xff]  ;;  %v11573_v59 = vpack.c.bf16 %v4633_v41, %v4632_v1  ;;  %v4634_v32 = vld [vmem:[#allocation11 + $0x320] sm:$0xff]  ;;  %v4635_v37 = vld [vmem:[#allocation11 + $0x328] sm:$0xff] }
 0x4df   : > { %4278 = vst [vmem:[#allocation4 + $0x79] sm:$0xff] %v14467_v28  ;;  %v4243_v13 = vmul.f32 %v12820_v10, %v14410_v7  ;;  %11548 = vmatpush3.bf16.msra.mxu0 %v11545_v54  ;;  %v11557_v36 = vpack.c.bf16 %v4317_v9, %v4316_v53  ;;  %v4637_v0 = vld [vmem:[#allocation11 + $0x338] sm:$0xff]  ;;  %v4640_v53 = vld [vmem:[#allocation11 + $0x350] sm:$0xff]  ;;  %v4837_v1 = vld [vmem:[#allocation11 + $0xc8] sm:$0xff] }
 0x4e0   : > { %4281 = vst [vmem:[#allocation4 + $0x99] sm:$0xff] %v14471_v40  ;;  %v14477_v56 = vld [vmem:[#allocation4 + $0x60] sm:$0xff]  ;;  %v14479_v60 = vld [vmem:[#allocation4 + $0x68] sm:$0xff]  ;;  %11550 = vmatprep.subr.bf16.mxu0 %v11549_v17  ;;  %v11581_v10 = vpack.c.bf16 %v4637_v0, %v4636_v14  ;;  %v5010_v0 = vld [vmem:[#allocation11 + $0x220] sm:$0xff] }
 0x4e1   : > { %v14482_v43 = vmul.f32 %v4243_v13, %v14338_v51  ;;  %10106 = vmatprep.mubr.f32.mxu0 %v14477_v56  ;;  %v4638_v13 = vld [vmem:[#allocation11 + $0x340] sm:$0xff]  ;;  %v4641_v9 = vld [vmem:[#allocation11 + $0x358] sm:$0xff] }
 0x4e2   : > { %v12822_v11 = vpop.eup %12821  ;;  %10107 = vmatmul.mubr.f32.gmra.mrb[22].mxu0 %v14479_v60  ;;  %v4839_v41 = vld [vmem:[#allocation11 + $0xd8] sm:$0xff] }
 0x4e3   : > { %v12824_v7 = vpop.eup %12823  ;;  %4280 = vst [vmem:[#allocation4 + $0x91] sm:$0xff] %v14482_v43  ;;  %v4249_v52 = vmul.f32 %v12822_v11, %v14423_v55  ;;  %11552 = vmatpush3.bf16.msra.mxu0 %v11549_v17  ;;  %v11577_v17 = vpack.c.bf16 %v4635_v37, %v4634_v32  ;;  %v4642_v11 = vld [vmem:[#allocation11 + $0x360] sm:$0xff]  ;;  %v4843_v32 = vld [vmem:[#allocation11 + $0xf8] sm:$0xff]  ;;  %v5007_v37 = vld [vmem:[#allocation11 + $0x208] sm:$0xff] }
 0x4e4   : > { %v4247_v29 = vmul.f32 %v12824_v7, %v14431_v6  ;;  %11554 = vmatprep.subr.bf16.mxu0 %v11553_v21  ;;  %v4643_v7 = vld [vmem:[#allocation11 + $0x368] sm:$0xff]  ;;  %v5009_v14 = vld [vmem:[#allocation11 + $0x218] sm:$0xff] }
 0x4e5   : > { %v14490_v51 = vmul.f32 %v4249_v52, %v14352_v3  ;;  %v11593_v52 = vpack.c.bf16 %v4643_v7, %v4642_v11  ;;  %v5017_v11 = vld [vmem:[#allocation11 + $0x258] sm:$0xff] }
 0x4e6   : > { %v12826_v38 = vpop.eup %12825  ;;  %v14493_v25 = vmul.f32 %v4247_v29, %v14357_v4  ;;  %v14495_v63 = vld [vmem:[#allocation4 + $0x78] sm:$0xff]  ;;  %v14497_v23 = vld [vmem:[#allocation4 + $0x80] sm:$0xff]  ;;  %v11561_v4 = vpack.c.bf16 %v4319_v44, %v4318_v30  ;;  %v4828_v44 = vld [vmem:[#allocation11 + $0x80] sm:$0xff] }
 0x4e7   : > { %v12828_v8 = vpop.eup %12827  ;;  %4283 = vst [vmem:[#allocation4 + $0xb1] sm:$0xff] %v14490_v51  ;;  %v4253_v55 = vmul.f32 %v12826_v38, %v14446_v47  ;;  %10109 = vmatprep.mubr.f32.mxu0 %v14495_v63  ;;  %11556 = vmatpush3.bf16.msra.mxu0 %v11553_v21  ;;  %v4631_v47 = vld [vmem:[#allocation11 + $0x308] sm:$0xff]  ;;  %v4644_v29 = vld [vmem:[#allocation11 + $0x370] sm:$0xff] }
 0x4e8   : > { %4282 = vst [vmem:[#allocation4 + $0xa9] sm:$0xff] %v14493_v25  ;;  %v4251_v3 = vmul.f32 %v12828_v8, %v4204_v61  ;;  %10110 = vmatmul.mubr.f32.gmra.mrb[24].mxu0 %v14497_v23  ;;  %11558 = vmatprep.subr.bf16.mxu0 %v11557_v36  ;;  %v11569_v61 = vpack.c.bf16 %v4631_v47, %v4630_v62  ;;  %v4639_v21 = vld [vmem:[#allocation11 + $0x348] sm:$0xff]  ;;  %v4834_v62 = vld [vmem:[#allocation11 + $0xb0] sm:$0xff]  ;;  %v4835_v47 = vld [vmem:[#allocation11 + $0xb8] sm:$0xff] }
 0x4e9   : > { %v14505_v6 = vmul.f32 %v4253_v55, %v14368_v22  ;;  %v11565_v22 = vpack.c.bf16 %v4321_v48, %v4320_v33  ;;  %v4829_v38 = vld [vmem:[#allocation11 + $0x88] sm:$0xff]  ;;  %v4830_v55 = vld [vmem:[#allocation11 + $0x90] sm:$0xff]  ;;  %v4832_v33 = vld [vmem:[#allocation11 + $0xa0] sm:$0xff] }
 0x4ea   : > { %v14508_v42 = vmul.f32 %v4251_v3, %v14373_v58  ;;  %v14510_v57 = vld [vmem:[#allocation4 + $0x90] sm:$0xff]  ;;  %v14512_v20 = vld [vmem:[#allocation4 + $0x98] sm:$0xff]  ;;  %v11601_v8 = vpack.c.bf16 %v4829_v38, %v4828_v44  ;;  %v4831_v3 = vld [vmem:[#allocation11 + $0x98] sm:$0xff] }
 0x4eb   : > { %4285 = vst [vmem:[#allocation4 + $0xc9] sm:$0xff] %v14505_v6  ;;  %10112 = vmatprep.mubr.f32.mxu0 %v14510_v57  ;;  %11560 = vmatpush3.bf16.msra.mxu0 %v11557_v36  ;;  %v4645_v36 = vld [vmem:[#allocation11 + $0x378] sm:$0xff]  ;;  %v4833_v48 = vld [vmem:[#allocation11 + $0xa8] sm:$0xff] }
 0x4ec   : > { %4284 = vst [vmem:[#allocation4 + $0xc1] sm:$0xff] %v14508_v42  ;;  %10113 = vmatmul.mubr.f32.gmra.mrb[26].mxu0 %v14512_v20  ;;  %11562 = vmatprep.subr.bf16.mxu0 %v11561_v4  ;;  %v11597_v30 = vpack.c.bf16 %v4645_v36, %v4644_v29  ;;  %v5019_v29 = vld [vmem:[#allocation11 + $0x268] sm:$0xff]  ;;  %v5021_v44 = vld [vmem:[#allocation11 + $0x278] sm:$0xff] }
 0x4ef   : > { %v14518_v54 = vld [vmem:[#allocation4 + $0xa8] sm:$0xff]  ;;  %v14520_v58 = vld [vmem:[#allocation4 + $0xb0] sm:$0xff]  ;;  %11564 = vmatpush3.bf16.msra.mxu0 %v11561_v4  ;;  %v11605_v4 = vpack.c.bf16 %v4831_v3, %v4830_v55  ;;  %v5185_v55 = vld [vmem:[#allocation11 + $0x388] sm:$0xff] }
 0x4f0   : > { %10115 = vmatprep.mubr.f32.mxu0 %v14518_v54  ;;  %11566 = vmatprep.subr.bf16.mxu0 %v11565_v22 }
 0x4f1   : > { %10116 = vmatmul.mubr.f32.gmra.mrb[28].mxu0 %v14520_v58 }
 0x4f3   : > { %v14524_v16 = vld [vmem:[#allocation4 + $0xc0] sm:$0xff]  ;;  %v14526_v26 = vld [vmem:[#allocation4 + $0xc8] sm:$0xff]  ;;  %11568 = vmatpush3.bf16.msra.mxu0 %v11565_v22  ;;  %v11609_v22 = vpack.c.bf16 %v4833_v48, %v4832_v33 }
 0x4f4   : > { %10118 = vmatprep.mubr.f32.mxu0 %v14524_v16  ;;  %11570 = vmatprep.subr.bf16.mxu0 %v11569_v61  ;;  %v5187_v33 = vld [vmem:[#allocation11 + $0x398] sm:$0xff] }
 0x4f5   : > { %10119 = vmatmul.mubr.f32.gmra.mrb[30].mxu0 %v14526_v26 }
 0x4f6   : > { %10153 = vmatprep.mubr.f32.mxu0 %v14530_v24 }
 0x4f9   : > { %10154 = vmatmul.mubr.f32.vlgmr.msra.gmra.mrb[16].mxu0 %v14530_v24 }
 0x4fa   : > { %10156 = vmatprep.mubr.f32.mxu0 %v14425_v12  ;;  %11572 = vmatpush3.bf16.msra.mxu0 %v11569_v61  ;;  %v11585_v12 = vpack.c.bf16 %v4639_v21, %v4638_v13  ;;  %v4836_v61 = vld [vmem:[#allocation11 + $0xc0] sm:$0xff]  ;;  %v5012_v13 = vld [vmem:[#allocation11 + $0x230] sm:$0xff]  ;;  %v5013_v21 = vld [vmem:[#allocation11 + $0x238] sm:$0xff] }
 0x4fb   : > { %11574 = vmatprep.subr.bf16.mxu0 %v11573_v59 }
 0x4fd   : > { %10157 = vmatmul.mubr.f32.gmra.mrb[18].mxu0 %v14427_v31  ;;  %v11589_v31 = vpack.c.bf16 %v4641_v9, %v4640_v53  ;;  %v5015_v53 = vld [vmem:[#allocation11 + $0x248] sm:$0xff] }
 0x4fe   : > { %10159 = vmatprep.mubr.f32.mxu0 %v14448_v27  ;;  %11576 = vmatpush3.bf16.msra.mxu0 %v11573_v59  ;;  %v4841_v59 = vld [vmem:[#allocation11 + $0xe8] sm:$0xff] }
 0x4ff   : > { %11578 = vmatprep.subr.bf16.mxu0 %v11577_v17 }
 0x501   : > { %10160 = vmatmul.mubr.f32.gmra.mrb[20].mxu0 %v14450_v49 }
 0x502   : > { %10162 = vmatprep.mubr.f32.mxu0 %v14462_v45  ;;  %11580 = vmatpush3.bf16.msra.mxu0 %v11577_v17  ;;  %v5008_v17 = vld [vmem:[#allocation11 + $0x210] sm:$0xff] }
 0x503   : > { %11582 = vmatprep.subr.bf16.mxu0 %v11581_v10 }
 0x505   : > { %10163 = vmatmul.mubr.f32.gmra.mrb[22].mxu0 %v14464_v5 }
 0x506   : > { %10165 = vmatprep.mubr.f32.mxu0 %v14477_v56  ;;  %11584 = vmatpush3.bf16.msra.mxu0 %v11581_v10  ;;  %v5011_v10 = vld [vmem:[#allocation11 + $0x228] sm:$0xff] }
 0x507   : > { %11586 = vmatprep.subr.bf16.mxu0 %v11585_v12 }
 0x509   : > { %10166 = vmatmul.mubr.f32.gmra.mrb[24].mxu0 %v14479_v60 }
 0x50a   : > { %10168 = vmatprep.mubr.f32.mxu0 %v14495_v63  ;;  %11588 = vmatpush3.bf16.msra.mxu0 %v11585_v12  ;;  %v5014_v12 = vld [vmem:[#allocation11 + $0x240] sm:$0xff] }
 0x50b   : > { %11590 = vmatprep.subr.bf16.mxu0 %v11589_v31  ;;  %v11649_v9 = vpack.c.bf16 %v5015_v53, %v5014_v12  ;;  %v5395_v12 = vld [vmem:[#allocation11 + $0x168] sm:$0xff]  ;;  %v5397_v53 = vld [vmem:[#allocation11 + $0x178] sm:$0xff] }
 0x50d   : > { %10169 = vmatmul.mubr.f32.gmra.mrb[26].mxu0 %v14497_v23 }
 0x50e   : > { %10171 = vmatprep.mubr.f32.mxu0 %v14510_v57  ;;  %11592 = vmatpush3.bf16.msra.mxu0 %v11589_v31  ;;  %v5016_v31 = vld [vmem:[#allocation11 + $0x250] sm:$0xff] }
 0x50f   : > { %11594 = vmatprep.subr.bf16.mxu0 %v11593_v52  ;;  %v11653_v7 = vpack.c.bf16 %v5017_v11, %v5016_v31  ;;  %v5561_v31 = vld [vmem:[#allocation11 + $0x288] sm:$0xff] }
 0x511   : > { %10172 = vmatmul.mubr.f32.gmra.mrb[28].mxu0 %v14512_v20 }
 0x512   : > { %10174 = vmatprep.mubr.f32.mxu0 %v14518_v54  ;;  %11596 = vmatpush3.bf16.msra.mxu0 %v11593_v52  ;;  %v5018_v52 = vld [vmem:[#allocation11 + $0x260] sm:$0xff] }
 0x513   : > { %11598 = vmatprep.subr.bf16.mxu0 %v11597_v30  ;;  %v11657_v36 = vpack.c.bf16 %v5019_v29, %v5018_v52  ;;  %v5563_v52 = vld [vmem:[#allocation11 + $0x298] sm:$0xff]  ;;  %v5564_v29 = vld [vmem:[#allocation11 + $0x2a0] sm:$0xff] }
 0x515   : > { %10175 = vmatmul.mubr.f32.gmra.mrb[30].mxu0 %v14520_v58 }
 0x516   : > { %11600 = vmatpush3.bf16.msra.mxu0 %v11597_v30  ;;  %10209 = vmatprep.mubr.f32.mxu0 %v14448_v27  ;;  %v11613_v27 = vpack.c.bf16 %v4835_v47, %v4834_v62  ;;  %v5020_v30 = vld [vmem:[#allocation11 + $0x270] sm:$0xff]  ;;  %v5189_v62 = vld [vmem:[#allocation11 + $0x3a8] sm:$0xff] }
 0x517   : > { %11602 = vmatprep.subr.bf16.mxu0 %v11601_v8  ;;  %v11661_v38 = vpack.c.bf16 %v5021_v44, %v5020_v30  ;;  %v14608_v30 = vld [vmem:[#allocation4 + $0x1a] sm:$0xff]  ;;  %v14611_v44 = vld [vmem:[#allocation4 + $0x22] sm:$0xff] }
 0x519   : > { %10210 = vmatmul.mubr.f32.vlgmr.msra.gmra.mrb[16].mxu0 %v14450_v49  ;;  %v11617_v49 = vpack.c.bf16 %v4837_v1, %v4836_v61  ;;  %v5191_v61 = vld [vmem:[#allocation11 + $0x3b8] sm:$0xff]  ;;  %v5192_v1 = vld [vmem:[#allocation11 + $0x3c0] sm:$0xff] }
 0x51a   : > { %10212 = vmatprep.mubr.f32.mxu0 %v14462_v45  ;;  %11604 = vmatpush3.bf16.msra.mxu0 %v11601_v8  ;;  %v4838_v45 = vld [vmem:[#allocation11 + $0xd0] sm:$0xff]  ;;  %v5184_v8 = vld [vmem:[#allocation11 + $0x380] sm:$0xff] }
 0x51b   : > { %11606 = vmatprep.subr.bf16.mxu0 %v11605_v4  ;;  %v11665_v3 = vpack.c.bf16 %v5185_v55, %v5184_v8  ;;  %v5567_v8 = vld [vmem:[#allocation11 + $0x2b8] sm:$0xff]  ;;  %v14614_v55 = vld [vmem:[#allocation4 + $0x32] sm:$0xff] }
 0x51d   : > { %10213 = vmatmul.mubr.f32.gmra.mrb[18].mxu0 %v14464_v5  ;;  %v11621_v5 = vpack.c.bf16 %v4839_v41, %v4838_v45  ;;  %v5194_v45 = vld [vmem:[#allocation11 + $0x3d0] sm:$0xff]  ;;  %v5195_v41 = vld [vmem:[#allocation11 + $0x3d8] sm:$0xff] }
 0x51e   : > { %10215 = vmatprep.mubr.f32.mxu0 %v14477_v56  ;;  %11608 = vmatpush3.bf16.msra.mxu0 %v11605_v4  ;;  %v4840_v56 = vld [vmem:[#allocation11 + $0xe0] sm:$0xff]  ;;  %v5186_v4 = vld [vmem:[#allocation11 + $0x390] sm:$0xff] }
 0x51f   : > { %11610 = vmatprep.subr.bf16.mxu0 %v11609_v22  ;;  %v11669_v48 = vpack.c.bf16 %v5187_v33, %v5186_v4  ;;  %v14617_v4 = vld [vmem:[#allocation4 + $0x3a] sm:$0xff]  ;;  %v5568_v33 = vld [vmem:[#allocation11 + $0x2c0] sm:$0xff] }
 0x521   : > { %10216 = vmatmul.mubr.f32.gmra.mrb[20].mxu0 %v14479_v60  ;;  %v11625_v60 = vpack.c.bf16 %v4841_v59, %v4840_v56  ;;  %v5196_v56 = vld [vmem:[#allocation11 + $0x3e0] sm:$0xff]  ;;  %v5197_v59 = vld [vmem:[#allocation11 + $0x3e8] sm:$0xff] }
 0x522   : > { %10218 = vmatprep.mubr.f32.mxu0 %v14495_v63  ;;  %11612 = vmatpush3.bf16.msra.mxu0 %v11609_v22  ;;  %v4842_v63 = vld [vmem:[#allocation11 + $0xf0] sm:$0xff]  ;;  %v5188_v22 = vld [vmem:[#allocation11 + $0x3a0] sm:$0xff] }
 0x523   : > { %11614 = vmatprep.subr.bf16.mxu0 %v11613_v27  ;;  %v11673_v47 = vpack.c.bf16 %v5189_v62, %v5188_v22  ;;  %v14620_v22 = vld [vmem:[#allocation4 + $0x4a] sm:$0xff] }
 0x525   : > { %10219 = vmatmul.mubr.f32.gmra.mrb[22].mxu0 %v14497_v23  ;;  %v11629_v23 = vpack.c.bf16 %v4843_v32, %v4842_v63  ;;  %v5198_v63 = vld [vmem:[#allocation11 + $0x3f0] sm:$0xff]  ;;  %v5199_v32 = vld [vmem:[#allocation11 + $0x3f8] sm:$0xff] }
 0x526   : > { %10221 = vmatprep.mubr.f32.mxu0 %v14510_v57  ;;  %11616 = vmatpush3.bf16.msra.mxu0 %v11613_v27  ;;  %v5006_v57 = vld [vmem:[#allocation11 + $0x200] sm:$0xff]  ;;  %v5190_v27 = vld [vmem:[#allocation11 + $0x3b0] sm:$0xff] }
 0x527   : > { %11618 = vmatprep.subr.bf16.mxu0 %v11617_v49 }
 0x529   : > { %10222 = vmatmul.mubr.f32.gmra.mrb[24].mxu0 %v14512_v20  ;;  %v4807_v20 = vld [vmem:[#allocation4 + $0x1] sm:$0xff] }
 0x52a   : > { %10224 = vmatprep.mubr.f32.mxu0 %v14518_v54  ;;  %11620 = vmatpush3.bf16.msra.mxu0 %v11617_v49  ;;  %v11633_v54 = vpack.c.bf16 %v5007_v37, %v5006_v57  ;;  %v5193_v49 = vld [vmem:[#allocation11 + $0x3c8] sm:$0xff]  ;;  %v5382_v57 = vld [vmem:[#allocation11 + $0x100] sm:$0xff] }
 0x52b   : > { %11622 = vmatprep.subr.bf16.mxu0 %v11621_v5  ;;  %v5383_v37 = vld [vmem:[#allocation11 + $0x108] sm:$0xff] }
 0x52d   : > { %10225 = vmatmul.mubr.f32.gmra.mrb[26].mxu0 %v14520_v58  ;;  %v4808_v58 = vld [vmem:[#allocation4 + $0x9] sm:$0xff] }
 0x52e   : > { %10227 = vmatprep.mubr.f32.mxu0 %v14524_v16  ;;  %11624 = vmatpush3.bf16.msra.mxu0 %v11621_v5  ;;  %v11637_v16 = vpack.c.bf16 %v5009_v14, %v5008_v17  ;;  %v11685_v5 = vpack.c.bf16 %v5195_v41, %v5194_v45  ;;  %v5385_v17 = vld [vmem:[#allocation11 + $0x118] sm:$0xff]  ;;  %v5573_v45 = vld [vmem:[#allocation11 + $0x2e8] sm:$0xff] }
 0x52f   : > { %11626 = vmatprep.subr.bf16.mxu0 %v11625_v60  ;;  %v14632_v41 = vld [vmem:[#allocation4 + $0x7a] sm:$0xff] }
 0x531   : > { %10228 = vmatmul.mubr.f32.gmra.mrb[28].mxu0 %v14526_v26  ;;  %v11641_v26 = vpack.c.bf16 %v5011_v10, %v5010_v0  ;;  %v5388_v10 = vld [vmem:[#allocation11 + $0x130] sm:$0xff] }
 0x532   : > { %11628 = vmatpush3.bf16.msra.mxu0 %v11625_v60  ;;  %10230 = vmatprep.mubr.f32.mxu0 %v14530_v24  ;;  %v11689_v60 = vpack.c.bf16 %v5197_v59, %v5196_v56  ;;  %v14635_v56 = vld [vmem:[#allocation4 + $0x82] sm:$0xff] }
 0x533   : > { %11630 = vmatprep.subr.bf16.mxu0 %v11629_v23  ;;  %v5574_v59 = vld [vmem:[#allocation11 + $0x2f0] sm:$0xff] }
 0x535   : > { %10231 = vmatmul.mubr.f32.gmra.mrb[30].mxu0 %v14530_v24  ;;  %v11645_v24 = vpack.c.bf16 %v5013_v21, %v5012_v13  ;;  %v5390_v13 = vld [vmem:[#allocation11 + $0x140] sm:$0xff]  ;;  %v5391_v21 = vld [vmem:[#allocation11 + $0x148] sm:$0xff] }
 0x536   : > { %11632 = vmatpush3.bf16.msra.mxu0 %v11629_v23  ;;  %10265 = vmatprep.mubr.f32.mxu0 %v4807_v20  ;;  %v11693_v23 = vpack.c.bf16 %v5199_v32, %v5198_v63  ;;  %v11697_v20 = vpack.c.bf16 %v5383_v37, %v5382_v57  ;;  %v14638_v63 = vld [vmem:[#allocation4 + $0x92] sm:$0xff] }
 0x537   : > { %11634 = vmatprep.subr.bf16.mxu0 %v11633_v54  ;;  %v5738_v57 = vld [vmem:[#allocation11 + $0x400] sm:$0xff]  ;;  %v5739_v37 = vld [vmem:[#allocation11 + $0x408] sm:$0xff] }
 0x539   : > { %10266 = vmatmul.mubr.f32.vlgmr.msra.gmra.mrb[16].mxu0 %v4808_v58  ;;  %v5386_v58 = vld [vmem:[#allocation11 + $0x120] sm:$0xff] }
 0x53a   : > { %10268 = vmatprep.mubr.f32.mxu0 %v14389_v39  ;;  %11636 = vmatpush3.bf16.msra.mxu0 %v11633_v54  ;;  %v5384_v54 = vld [vmem:[#allocation11 + $0x110] sm:$0xff] }
 0x53b   : > { %11638 = vmatprep.subr.bf16.mxu0 %v11637_v16  ;;  %v11701_v14 = vpack.c.bf16 %v5385_v17, %v5384_v54  ;;  %v11761_v54 = vpack.c.bf16 %v5739_v37, %v5738_v57  ;;  %v14647_v17 = vld [vmem:[#allocation4 + $0xb2] sm:$0xff]  ;;  %v7579_v37 = vld [vmem:[#allocation13 + $0x450] sm:$0xff] }
 0x53c   : > { %v6167_v57 = vld [vmem:[#allocation13 + $0x1e8] sm:$0xff] }
 0x53d   : > { %10269 = vmatmul.mubr.f32.gmra.mrb[18].mxu0 %v14386_v34 }
 0x53e   : > { %10271 = vmatprep.mubr.f32.mxu0 %v14405_v19  ;;  %11640 = vmatpush3.bf16.msra.mxu0 %v11637_v16  ;;  %v5387_v16 = vld [vmem:[#allocation11 + $0x128] sm:$0xff] }
 0x53f   : > { %11642 = vmatprep.subr.bf16.mxu0 %v11641_v26  ;;  %v11705_v0 = vpack.c.bf16 %v5387_v16, %v5386_v58  ;;  %v5741_v58 = vld [vmem:[#allocation11 + $0x418] sm:$0xff] }
 0x541   : > { %10272 = vmatmul.mubr.f32.gmra.mrb[20].mxu0 %v14401_v18 }
 0x542   : > { %10274 = vmatprep.mubr.f32.mxu0 %v14419_v35  ;;  %11644 = vmatpush3.bf16.msra.mxu0 %v11641_v26  ;;  %v5389_v26 = vld [vmem:[#allocation11 + $0x138] sm:$0xff] }
 0x543   : > { %11646 = vmatprep.subr.bf16.mxu0 %v11645_v24 }
 0x545   : > { %10275 = vmatmul.mubr.f32.gmra.mrb[22].mxu0 %v14415_v15 }
 0x546   : > { %10277 = vmatprep.mubr.f32.mxu0 %v14440_v2  ;;  %11648 = vmatpush3.bf16.msra.mxu0 %v11645_v24  ;;  %v5393_v24 = vld [vmem:[#allocation11 + $0x158] sm:$0xff] }
 0x547   : > { %11650 = vmatprep.subr.bf16.mxu0 %v11649_v9 }
 0x549   : > { %10278 = vmatmul.mubr.f32.gmra.mrb[24].mxu0 %v14435_v50 }
 0x54a   : > { %10280 = vmatprep.mubr.f32.mxu0 %v14467_v28  ;;  %11652 = vmatpush3.bf16.msra.mxu0 %v11649_v9  ;;  %v5560_v9 = vld [vmem:[#allocation11 + $0x280] sm:$0xff] }
 0x54b   : > { %11654 = vmatprep.subr.bf16.mxu0 %v11653_v7  ;;  %v11729_v11 = vpack.c.bf16 %v5561_v31, %v5560_v9  ;;  %v5377_v31 = vld [vmem:[#allocation4 + $0xc2] sm:$0xff] }
 0x54d   : > { %10281 = vmatmul.mubr.f32.gmra.mrb[26].mxu0 %v14455_v46 }
 0x54e   : > { %10283 = vmatprep.mubr.f32.mxu0 %v14482_v43  ;;  %11656 = vmatpush3.bf16.msra.mxu0 %v11653_v7  ;;  %v5562_v7 = vld [vmem:[#allocation11 + $0x290] sm:$0xff] }
 0x54f   : > { %11658 = vmatprep.subr.bf16.mxu0 %v11657_v36 }
 0x551   : > { %10284 = vmatmul.mubr.f32.gmra.mrb[28].mxu0 %v14471_v40 }
 0x552   : > { %10286 = vmatprep.mubr.f32.mxu0 %v14493_v25  ;;  %11660 = vmatpush3.bf16.msra.mxu0 %v11657_v36  ;;  %v5565_v36 = vld [vmem:[#allocation11 + $0x2a8] sm:$0xff] }
 0x553   : > { %11662 = vmatprep.subr.bf16.mxu0 %v11661_v38 }
 0x555   : > { %10287 = vmatmul.mubr.f32.gmra.mrb[30].mxu0 %v14490_v51 }
 0x556   : > { %11664 = vmatpush3.bf16.msra.mxu0 %v11661_v38  ;;  %10321 = vmatprep.mubr.f32.mxu0 %v14389_v39  ;;  %v11677_v39 = vpack.c.bf16 %v5191_v61, %v5190_v27  ;;  %v5566_v38 = vld [vmem:[#allocation11 + $0x2b0] sm:$0xff]  ;;  %v5571_v61 = vld [vmem:[#allocation11 + $0x2d8] sm:$0xff] }
 0x557   : > { %11666 = vmatprep.subr.bf16.mxu0 %v11665_v3  ;;  %v5570_v27 = vld [vmem:[#allocation11 + $0x2d0] sm:$0xff] }
 0x559   : > { %10322 = vmatmul.mubr.f32.vlgmr.msra.gmra.mrb[16].mxu0 %v14386_v34  ;;  %v11681_v34 = vpack.c.bf16 %v5193_v49, %v5192_v1  ;;  %v11749_v1 = vpack.c.bf16 %v5571_v61, %v5570_v27  ;;  %v14629_v49 = vld [vmem:[#allocation4 + $0x6a] sm:$0xff]  ;;  %v7574_v27 = vld [vmem:[#allocation13 + $0x428] sm:$0xff] }
 0x55a   : > { %10324 = vmatprep.mubr.f32.mxu0 %v14405_v19  ;;  %11668 = vmatpush3.bf16.msra.mxu0 %v11665_v3  ;;  %v11741_v3 = vpack.c.bf16 %v5567_v8, %v5566_v38  ;;  %v6158_v38 = vld [vmem:[#allocation13 + $0x1a0] sm:$0xff]  ;;  %v6159_v8 = vld [vmem:[#allocation13 + $0x1a8] sm:$0xff] }
 0x55b   : > { %11670 = vmatprep.subr.bf16.mxu0 %v11669_v48 }
 0x55d   : > { %10325 = vmatmul.mubr.f32.gmra.mrb[18].mxu0 %v14401_v18 }
 0x55e   : > { %10327 = vmatprep.mubr.f32.mxu0 %v14419_v35  ;;  %11672 = vmatpush3.bf16.msra.mxu0 %v11669_v48  ;;  %v5569_v48 = vld [vmem:[#allocation11 + $0x2c8] sm:$0xff] }
 0x55f   : > { %11674 = vmatprep.subr.bf16.mxu0 %v11673_v47  ;;  %v11745_v62 = vpack.c.bf16 %v5569_v48, %v5568_v33  ;;  %v6160_v48 = vld [vmem:[#allocation13 + $0x1b0] sm:$0xff] }
 0x561   : > { %10328 = vmatmul.mubr.f32.gmra.mrb[20].mxu0 %v14415_v15 }
 0x562   : > { %10330 = vmatprep.mubr.f32.mxu0 %v14440_v2  ;;  %11676 = vmatpush3.bf16.msra.mxu0 %v11673_v47  ;;  %v14623_v47 = vld [vmem:[#allocation4 + $0x52] sm:$0xff] }
 0x563   : > { %11678 = vmatprep.subr.bf16.mxu0 %v11677_v39 }
 0x565   : > { %10331 = vmatmul.mubr.f32.gmra.mrb[22].mxu0 %v14435_v50 }
 0x566   : > { %10333 = vmatprep.mubr.f32.mxu0 %v14467_v28  ;;  %11680 = vmatpush3.bf16.msra.mxu0 %v11677_v39  ;;  %v14626_v39 = vld [vmem:[#allocation4 + $0x62] sm:$0xff] }
 0x567   : > { %11682 = vmatprep.subr.bf16.mxu0 %v11681_v34 }
 0x569   : > { %10334 = vmatmul.mubr.f32.gmra.mrb[24].mxu0 %v14455_v46 }
 0x56a   : > { %10336 = vmatprep.mubr.f32.mxu0 %v14482_v43  ;;  %11684 = vmatpush3.bf16.msra.mxu0 %v11681_v34  ;;  %v5572_v34 = vld [vmem:[#allocation11 + $0x2e0] sm:$0xff] }
 0x56b   : > { %11686 = vmatprep.subr.bf16.mxu0 %v11685_v5 }
 0x56d   : > { %10337 = vmatmul.mubr.f32.gmra.mrb[26].mxu0 %v14471_v40 }
 0x56e   : > { %10339 = vmatprep.mubr.f32.mxu0 %v14493_v25  ;;  %11688 = vmatpush3.bf16.msra.mxu0 %v11685_v5  ;;  %v11753_v5 = vpack.c.bf16 %v5573_v45, %v5572_v34  ;;  %v7576_v45 = vld [vmem:[#allocation13 + $0x438] sm:$0xff] }
 0x56f   : > { %11690 = vmatprep.subr.bf16.mxu0 %v11689_v60 }
 0x571   : > { %10340 = vmatmul.mubr.f32.gmra.mrb[28].mxu0 %v14490_v51 }
 0x572   : > { %10342 = vmatprep.mubr.f32.mxu0 %v14508_v42  ;;  %11692 = vmatpush3.bf16.msra.mxu0 %v11689_v60  ;;  %v5575_v60 = vld [vmem:[#allocation11 + $0x2f8] sm:$0xff] }
 0x573   : > { %11694 = vmatprep.subr.bf16.mxu0 %v11693_v23  ;;  %v11757_v32 = vpack.c.bf16 %v5575_v60, %v5574_v59  ;;  %v7577_v59 = vld [vmem:[#allocation13 + $0x440] sm:$0xff] }
 0x575   : > { %10343 = vmatmul.mubr.f32.gmra.mrb[30].mxu0 %v14505_v6 }
 0x576   : > { %11696 = vmatpush3.bf16.msra.mxu0 %v11693_v23  ;;  %10377 = vmatprep.mubr.f32.mxu0 %v14405_v19  ;;  %v11709_v19 = vpack.c.bf16 %v5389_v26, %v5388_v10  ;;  %v14641_v23 = vld [vmem:[#allocation4 + $0x9a] sm:$0xff] }
 0x577   : > { %11698 = vmatprep.subr.bf16.mxu0 %v11697_v20  ;;  %v5743_v10 = vld [vmem:[#allocation11 + $0x428] sm:$0xff] }
 0x579   : > { %10378 = vmatmul.mubr.f32.vlgmr.msra.gmra.mrb[16].mxu0 %v14401_v18  ;;  %v11713_v18 = vpack.c.bf16 %v5391_v21, %v5390_v13  ;;  %v5745_v13 = vld [vmem:[#allocation11 + $0x438] sm:$0xff] }
 0x57a   : > { %10380 = vmatprep.mubr.f32.mxu0 %v14419_v35  ;;  %11700 = vmatpush3.bf16.msra.mxu0 %v11697_v20  ;;  %v5392_v35 = vld [vmem:[#allocation11 + $0x150] sm:$0xff]  ;;  %v14644_v20 = vld [vmem:[#allocation4 + $0xaa] sm:$0xff] }
 0x57b   : > { %11702 = vmatprep.subr.bf16.mxu0 %v11701_v14 }
 0x57d   : > { %10381 = vmatmul.mubr.f32.gmra.mrb[18].mxu0 %v14415_v15  ;;  %v11717_v15 = vpack.c.bf16 %v5393_v24, %v5392_v35  ;;  %v5747_v35 = vld [vmem:[#allocation11 + $0x448] sm:$0xff] }
 0x57e   : > { %10383 = vmatprep.mubr.f32.mxu0 %v14440_v2  ;;  %11704 = vmatpush3.bf16.msra.mxu0 %v11701_v14  ;;  %v5394_v2 = vld [vmem:[#allocation11 + $0x160] sm:$0xff]  ;;  %v5740_v14 = vld [vmem:[#allocation11 + $0x410] sm:$0xff] }
 0x57f   : > { %11706 = vmatprep.subr.bf16.mxu0 %v11705_v0  ;;  %v11765_v16 = vpack.c.bf16 %v5741_v58, %v5740_v14  ;;  %v6168_v14 = vld [vmem:[#allocation13 + $0x1f0] sm:$0xff]  ;;  %v6169_v58 = vld [vmem:[#allocation13 + $0x1f8] sm:$0xff] }
 0x581   : > { %10384 = vmatmul.mubr.f32.gmra.mrb[20].mxu0 %v14435_v50  ;;  %v11721_v50 = vpack.c.bf16 %v5395_v12, %v5394_v2  ;;  %v5749_v2 = vld [vmem:[#allocation11 + $0x458] sm:$0xff] }
 0x582   : > { %10386 = vmatprep.mubr.f32.mxu0 %v14467_v28  ;;  %11708 = vmatpush3.bf16.msra.mxu0 %v11705_v0  ;;  %v5396_v28 = vld [vmem:[#allocation11 + $0x170] sm:$0xff]  ;;  %v5742_v0 = vld [vmem:[#allocation11 + $0x420] sm:$0xff] }
 0x583   : > { %11710 = vmatprep.subr.bf16.mxu0 %v11709_v19  ;;  %v11769_v26 = vpack.c.bf16 %v5743_v10, %v5742_v0  ;;  %v11821_v0 = vpack.c.bf16 %v6169_v58, %v6168_v14  ;;  %v7582_v10 = vld [vmem:[#allocation13 + $0x468] sm:$0xff] }
 0x585   : > { %10387 = vmatmul.mubr.f32.gmra.mrb[22].mxu0 %v14455_v46  ;;  %v4825_v46 = vld [vmem:[#allocation4 + $0xd9] sm:$0xff] }
 0x586   : > { %10389 = vmatprep.mubr.f32.mxu0 %v14482_v43  ;;  %11712 = vmatpush3.bf16.msra.mxu0 %v11709_v19  ;;  %v11725_v43 = vpack.c.bf16 %v5397_v53, %v5396_v28  ;;  %v5744_v19 = vld [vmem:[#allocation11 + $0x430] sm:$0xff]  ;;  %v5751_v28 = vld [vmem:[#allocation11 + $0x468] sm:$0xff] }
 0x587   : > { %11714 = vmatprep.subr.bf16.mxu0 %v11713_v18  ;;  %v11773_v21 = vpack.c.bf16 %v5745_v13, %v5744_v19  ;;  %v6137_v19 = vld [vmem:[#allocation13] sm:$0xff]  ;;  %v6138_v13 = vld [vmem:[#allocation13 + $0x8] sm:$0xff] }
 0x589   : > { %10390 = vmatmul.mubr.f32.gmra.mrb[24].mxu0 %v14471_v40  ;;  %v4826_v40 = vld [vmem:[#allocation4 + $0xe1] sm:$0xff] }
 0x58a   : > { %10392 = vmatprep.mubr.f32.mxu0 %v14493_v25  ;;  %11716 = vmatpush3.bf16.msra.mxu0 %v11713_v18  ;;  %v5361_v25 = vld [vmem:[#allocation4 + $0x2] sm:$0xff]  ;;  %v5746_v18 = vld [vmem:[#allocation11 + $0x440] sm:$0xff] }
 0x58b   : > { %11718 = vmatprep.subr.bf16.mxu0 %v11717_v15  ;;  %v11777_v24 = vpack.c.bf16 %v5747_v35, %v5746_v18  ;;  %v14704_v18 = vpack.c.bf16 %v6138_v13, %v6137_v19  ;;  %v7584_v35 = vld [vmem:[#allocation13 + $0x478] sm:$0xff] }
 0x58d   : > { %10393 = vmatmul.mubr.f32.gmra.mrb[26].mxu0 %v14490_v51  ;;  %v5362_v51 = vld [vmem:[#allocation4 + $0xa] sm:$0xff] }
 0x58e   : > { %10395 = vmatprep.mubr.f32.mxu0 %v14508_v42  ;;  %11720 = vmatpush3.bf16.msra.mxu0 %v11717_v15  ;;  %v11733_v42 = vpack.c.bf16 %v5563_v52, %v5562_v7  ;;  %v5748_v15 = vld [vmem:[#allocation11 + $0x450] sm:$0xff]  ;;  %v6154_v7 = vld [vmem:[#allocation13 + $0x180] sm:$0xff]  ;;  %v6155_v52 = vld [vmem:[#allocation13 + $0x188] sm:$0xff] }
 0x58f   : > { %11722 = vmatprep.subr.bf16.mxu0 %v11721_v50  ;;  %v11781_v12 = vpack.c.bf16 %v5749_v2, %v5748_v15  ;;  %v14714_v15 = vld [vmem:[%s15234_s7] ss:$0 sm:$0xff] }
 0x591   : > { %10396 = vmatmul.mubr.f32.gmra.mrb[28].mxu0 %v14505_v6  ;;  %v11737_v6 = vpack.c.bf16 %v5565_v36, %v5564_v29  ;;  %v6157_v29 = vld [vmem:[#allocation13 + $0x198] sm:$0xff]  ;;  %v7569_v36 = vld [vmem:[#allocation13 + $0x400] sm:$0xff] }
 0x592   : > { %11724 = vmatpush3.bf16.msra.mxu0 %v11721_v50  ;;  %10398 = vmatprep.mubr.f32.mxu0 %v4825_v46  ;;  %v5750_v50 = vld [vmem:[#allocation11 + $0x460] sm:$0xff]  ;;  %v5752_v46 = vld [vmem:[#allocation11 + $0x470] sm:$0xff] }
 0x593   : > { %11726 = vmatprep.subr.bf16.mxu0 %v11725_v43  ;;  %v11785_v53 = vpack.c.bf16 %v5751_v28, %v5750_v50 }
 0x595   : > { %10399 = vmatmul.mubr.f32.gmra.mrb[30].mxu0 %v4826_v40  ;;  %v5378_v40 = vld [vmem:[#allocation4 + $0xca] sm:$0xff] }
 0x596   : > { %11728 = vmatpush3.bf16.msra.mxu0 %v11725_v43  ;;  %10433 = vmatprep.mubr.f32.mxu0 %v5361_v25  ;;  %v5753_v43 = vld [vmem:[#allocation11 + $0x478] sm:$0xff]  ;;  %v5379_v25 = vld [vmem:[#allocation4 + $0xda] sm:$0xff] }
 0x597   : > { %11730 = vmatprep.subr.bf16.mxu0 %v11729_v11  ;;  %v11789_v9 = vpack.c.bf16 %v5753_v43, %v5752_v46 }
 0x599   : > { %10434 = vmatmul.mubr.f32.vlgmr.msra.gmra.mrb[16].mxu0 %v5362_v51  ;;  %v11793_v51 = vpack.c.bf16 %v6155_v52, %v6154_v7 }
 0x59a   : > { %10436 = vmatprep.mubr.f32.mxu0 %v14608_v30  ;;  %11732 = vmatpush3.bf16.msra.mxu0 %v11729_v11  ;;  %v5380_v11 = vld [vmem:[#allocation4 + $0xe2] sm:$0xff] }
 0x59b   : > { %11734 = vmatprep.subr.bf16.mxu0 %v11733_v42  ;;  %11794 = vmatprep.subr.bf16.mxu1 %v11793_v51 }
 0x59c   : > { %11796 = vmatpush3.bf16.msra.mxu1 %v11793_v51 }
 0x59d   : > { %10437 = vmatmul.mubr.f32.gmra.mrb[18].mxu0 %v14611_v44 }
 0x59e   : > { %10439 = vmatprep.mubr.f32.mxu0 %v14614_v55  ;;  %11736 = vmatpush3.bf16.msra.mxu0 %v11733_v42  ;;  %v6156_v42 = vld [vmem:[#allocation13 + $0x190] sm:$0xff] }
 0x59f   : > { %11738 = vmatprep.subr.bf16.mxu0 %v11737_v6 }
 0x5a1   : > { %10440 = vmatmul.mubr.f32.gmra.mrb[20].mxu0 %v14617_v4 }
 0x5a2   : > { %10442 = vmatprep.mubr.f32.mxu0 %v14620_v22  ;;  %11740 = vmatpush3.bf16.msra.mxu0 %v11737_v6  ;;  %v7570_v6 = vld [vmem:[#allocation13 + $0x408] sm:$0xff] }
 0x5a3   : > { %11742 = vmatprep.subr.bf16.mxu0 %v11741_v3 }
 0x5a5   : > { %10443 = vmatmul.mubr.f32.gmra.mrb[22].mxu0 %v14623_v47 }
 0x5a6   : > { %10445 = vmatprep.mubr.f32.mxu0 %v14626_v39  ;;  %11744 = vmatpush3.bf16.msra.mxu0 %v11741_v3  ;;  %v11801_v3 = vpack.c.bf16 %v6159_v8, %v6158_v38 }
 0x5a7   : > { %11746 = vmatprep.subr.bf16.mxu0 %v11745_v62 }
 0x5a9   : > { %10446 = vmatmul.mubr.f32.gmra.mrb[24].mxu0 %v14629_v49 }
 0x5aa   : > { %10448 = vmatprep.mubr.f32.mxu0 %v14632_v41  ;;  %11748 = vmatpush3.bf16.msra.mxu0 %v11745_v62  ;;  %v7573_v62 = vld [vmem:[#allocation13 + $0x420] sm:$0xff] }
 0x5ab   : > { %11750 = vmatprep.subr.bf16.mxu0 %v11749_v1  ;;  %v14684_v61 = vpack.c.bf16 %v7574_v27, %v7573_v62 }
 0x5ad   : > { %10449 = vmatmul.mubr.f32.gmra.mrb[26].mxu0 %v14635_v56 }
 0x5ae   : > { %10451 = vmatprep.mubr.f32.mxu0 %v14638_v63  ;;  %11752 = vmatpush3.bf16.msra.mxu0 %v11749_v1  ;;  %v6163_v1 = vld [vmem:[#allocation13 + $0x1c8] sm:$0xff] }
 0x5af   : > { %11754 = vmatprep.subr.bf16.mxu0 %v11753_v5 }
 0x5b1   : > { %10452 = vmatmul.mubr.f32.gmra.mrb[28].mxu0 %v14641_v23 }
 0x5b2   : > { %10454 = vmatprep.mubr.f32.mxu0 %v14644_v20  ;;  %11756 = vmatpush3.bf16.msra.mxu0 %v11753_v5  ;;  %v6164_v5 = vld [vmem:[#allocation13 + $0x1d0] sm:$0xff] }
 0x5b3   : > { %11758 = vmatprep.subr.bf16.mxu0 %v11757_v32 }
 0x5b5   : > { %10455 = vmatmul.mubr.f32.gmra.mrb[30].mxu0 %v14647_v17 }
 0x5b6   : > { %11760 = vmatpush3.bf16.msra.mxu0 %v11757_v32  ;;  %10489 = vmatprep.mubr.f32.mxu0 %v14608_v30  ;;  %v11797_v30 = vpack.c.bf16 %v6157_v29, %v6156_v42 }
 0x5b7   : > { %11762 = vmatprep.subr.bf16.mxu0 %v11761_v54 }
 0x5b8   : > { %11798 = vmatprep.subr.bf16.mxu1 %v11797_v30 }
 0x5b9   : > { %10490 = vmatmul.mubr.f32.vlgmr.msra.gmra.mrb[16].mxu0 %v14611_v44  ;;  %v14676_v44 = vpack.c.bf16 %v7570_v6, %v7569_v36  ;;  %11800 = vmatpush3.bf16.msra.mxu1 %v11797_v30 }
 0x5ba   : > { %10492 = vmatprep.mubr.f32.mxu0 %v14614_v55  ;;  %11764 = vmatpush3.bf16.msra.mxu0 %v11761_v54  ;;  %v7580_v54 = vld [vmem:[#allocation13 + $0x458] sm:$0xff] }
 0x5bb   : > { %11766 = vmatprep.subr.bf16.mxu0 %v11765_v16  ;;  %11802 = vmatprep.subr.bf16.mxu1 %v11801_v3 }
 0x5bd   : > { %10493 = vmatmul.mubr.f32.gmra.mrb[18].mxu0 %v14617_v4  ;;  %11804 = vmatpush3.bf16.msra.mxu1 %v11801_v3 }
 0x5be   : > { %10495 = vmatprep.mubr.f32.mxu0 %v14620_v22  ;;  %11768 = vmatpush3.bf16.msra.mxu0 %v11765_v16  ;;  %v7581_v16 = vld [vmem:[#allocation13 + $0x460] sm:$0xff] }
 0x5bf   : > { %11770 = vmatprep.subr.bf16.mxu0 %v11769_v26 }
 0x5c1   : > { %10496 = vmatmul.mubr.f32.gmra.mrb[20].mxu0 %v14623_v47 }
 0x5c2   : > { %10498 = vmatprep.mubr.f32.mxu0 %v14626_v39  ;;  %11772 = vmatpush3.bf16.msra.mxu0 %v11769_v26  ;;  %v14700_v26 = vpack.c.bf16 %v7582_v10, %v7581_v16 }
 0x5c3   : > { %11774 = vmatprep.subr.bf16.mxu0 %v11773_v21 }
 0x5c5   : > { %10499 = vmatmul.mubr.f32.gmra.mrb[22].mxu0 %v14629_v49 }
 0x5c6   : > { %10501 = vmatprep.mubr.f32.mxu0 %v14632_v41  ;;  %11776 = vmatpush3.bf16.msra.mxu0 %v11773_v21  ;;  %v7583_v21 = vld [vmem:[#allocation13 + $0x470] sm:$0xff] }
 0x5c7   : > { %11778 = vmatprep.subr.bf16.mxu0 %v11777_v24 }
 0x5c9   : > { %10502 = vmatmul.mubr.f32.gmra.mrb[24].mxu0 %v14635_v56 }
 0x5ca   : > { %10504 = vmatprep.mubr.f32.mxu0 %v14638_v63  ;;  %11780 = vmatpush3.bf16.msra.mxu0 %v11777_v24  ;;  %v14706_v24 = vpack.c.bf16 %v7584_v35, %v7583_v21 }
 0x5cb   : > { %11782 = vmatprep.subr.bf16.mxu0 %v11781_v12 }
 0x5cd   : > { %10505 = vmatmul.mubr.f32.gmra.mrb[26].mxu0 %v14641_v23 }
 0x5ce   : > { %10507 = vmatprep.mubr.f32.mxu0 %v14644_v20  ;;  %11784 = vmatpush3.bf16.msra.mxu0 %v11781_v12  ;;  %v14719_v12 = vld [vmem:[%s15234_s7 + $0x1] ss:$0 sm:$0xff] }
 0x5cf   : > { %11786 = vmatprep.subr.bf16.mxu0 %v11785_v53 }
 0x5d1   : > { %10508 = vmatmul.mubr.f32.gmra.mrb[28].mxu0 %v14647_v17 }
 0x5d2   : > { %10510 = vmatprep.mubr.f32.mxu0 %v5377_v31  ;;  %11788 = vmatpush3.bf16.msra.mxu0 %v11785_v53 }
 0x5d3   : > { %11790 = vmatprep.subr.bf16.mxu0 %v11789_v9 }
 0x5d5   : > { %10511 = vmatmul.mubr.f32.gmra.mrb[30].mxu0 %v5378_v40 }
 0x5d6   : > { %11792 = vmatpush3.bf16.msra.mxu0 %v11789_v9  ;;  %10545 = vmatprep.mubr.f32.mxu0 %v14614_v55  ;;  %v7571_v55 = vld [vmem:[#allocation13 + $0x410] sm:$0xff] }
 0x5d7   : > { %12050 = vmatprep.subr.bf16.mxu0 %v14676_v44 }
 0x5d9   : > { %10546 = vmatmul.mubr.f32.vlgmr.msra.gmra.mrb[16].mxu0 %v14617_v4  ;;  %v7572_v4 = vld [vmem:[#allocation13 + $0x418] sm:$0xff] }
 0x5da   : > { %10548 = vmatprep.mubr.f32.mxu0 %v14620_v22  ;;  %12052 = vmatpush3.bf16.msra.mxu0 %v14676_v44  ;;  %v14680_v33 = vpack.c.bf16 %v7572_v4, %v7571_v55  ;;  %v6161_v22 = vld [vmem:[#allocation13 + $0x1b8] sm:$0xff] }
 0x5dc   : > { %12054 = vmatprep.subr.bf16.mxu0 %v14680_v33 }
 0x5dd   : > { %10549 = vmatmul.mubr.f32.gmra.mrb[18].mxu0 %v14623_v47  ;;  %v11805_v47 = vpack.c.bf16 %v6161_v22, %v6160_v48 }
 0x5de   : > { %10551 = vmatprep.mubr.f32.mxu0 %v14626_v39  ;;  %12056 = vmatpush3.bf16.msra.mxu0 %v14680_v33  ;;  %v6162_v39 = vld [vmem:[#allocation13 + $0x1c0] sm:$0xff] }
 0x5df   : > { %11806 = vmatprep.subr.bf16.mxu1 %v11805_v47  ;;  %12058 = vmatprep.subr.bf16.mxu0 %v14684_v61  ;;  %v11809_v34 = vpack.c.bf16 %v6163_v1, %v6162_v39 }
 0x5e0   : > { %11808 = vmatpush3.bf16.msra.mxu1 %v11805_v47 }
 0x5e1   : > { %10552 = vmatmul.mubr.f32.gmra.mrb[20].mxu0 %v14629_v49  ;;  %v7575_v49 = vld [vmem:[#allocation13 + $0x430] sm:$0xff]  ;;  %11810 = vmatprep.subr.bf16.mxu1 %v11809_v34 }
 0x5e2   : > { %10554 = vmatprep.mubr.f32.mxu0 %v14632_v41  ;;  %12060 = vmatpush3.bf16.msra.mxu0 %v14684_v61  ;;  %v14688_v41 = vpack.c.bf16 %v7576_v45, %v7575_v49 }
 0x5e4   : > { %12062 = vmatprep.subr.bf16.mxu0 %v14688_v41  ;;  %11812 = vmatpush3.bf16.msra.mxu1 %v11809_v34 }
 0x5e5   : > { %10555 = vmatmul.mubr.f32.gmra.mrb[22].mxu0 %v14635_v56  ;;  %v6165_v56 = vld [vmem:[#allocation13 + $0x1d8] sm:$0xff] }
 0x5e6   : > { %10557 = vmatprep.mubr.f32.mxu0 %v14638_v63  ;;  %12064 = vmatpush3.bf16.msra.mxu0 %v14688_v41  ;;  %v11813_v60 = vpack.c.bf16 %v6165_v56, %v6164_v5  ;;  %v7578_v63 = vld [vmem:[#allocation13 + $0x448] sm:$0xff] }
 0x5e7   : > { %v14692_v32 = vpack.c.bf16 %v7578_v63, %v7577_v59 }
 0x5e8   : > { %11814 = vmatprep.subr.bf16.mxu1 %v11813_v60 }
 0x5e9   : > { %10558 = vmatmul.mubr.f32.gmra.mrb[24].mxu0 %v14641_v23  ;;  %12066 = vmatprep.subr.bf16.mxu0 %v14692_v32  ;;  %v6166_v23 = vld [vmem:[#allocation13 + $0x1e0] sm:$0xff] }
 0x5ea   : > { %10560 = vmatprep.mubr.f32.mxu0 %v14644_v20  ;;  %11816 = vmatpush3.bf16.msra.mxu1 %v11813_v60  ;;  %v11817_v20 = vpack.c.bf16 %v6167_v57, %v6166_v23 }
 0x5eb   : > { %12068 = vmatpush3.bf16.msra.mxu0 %v14692_v32 }
 0x5ec   : > { %11818 = vmatprep.subr.bf16.mxu1 %v11817_v20 }
 0x5ed   : > { %10561 = vmatmul.mubr.f32.gmra.mrb[26].mxu0 %v14647_v17  ;;  %v14696_v17 = vpack.c.bf16 %v7580_v54, %v7579_v37 }
 0x5ee   : > { %10563 = vmatprep.mubr.f32.mxu0 %v5377_v31  ;;  %11820 = vmatpush3.bf16.msra.mxu1 %v11817_v20 }
 0x5ef   : > { %12070 = vmatprep.subr.bf16.mxu0 %v14696_v17  ;;  %11822 = vmatprep.subr.bf16.mxu1 %v11821_v0 }
 0x5f0   : > { %12072 = vmatpush3.bf16.msra.mxu0 %v14696_v17 }
 0x5f1   : > { %10564 = vmatmul.mubr.f32.gmra.mrb[28].mxu0 %v5378_v40  ;;  %12074 = vmatprep.subr.bf16.mxu0 %v14700_v26 }
 0x5f2   : > { %10566 = vmatprep.mubr.f32.mxu0 %v5379_v25  ;;  %11824 = vmatpush3.bf16.msra.mxu1 %v11821_v0 }
 0x5f3   : > { %11826 = vmatprep.subr.bf16.mxu1 %v14704_v18 }
 0x5f4   : > { %12076 = vmatpush3.bf16.msra.mxu0 %v14700_v26 }
 0x5f5   : > { %10567 = vmatmul.mubr.f32.gmra.mrb[30].mxu0 %v5380_v11  ;;  %12078 = vmatprep.subr.bf16.mxu0 %v14706_v24 }
 0x5f8   : > { %12080 = vmatpush3.bf16.msra.mxu0 %v14706_v24 }
 0x6ac   : > { %v10547_v2 = vpop.f32.mrb[16].mxu0 }
 0x6ad   : > { %v5921_v50 = vmul.f32 %v10547_v2, %v14714_v15  ;;  %v5820_v28 = vpop.f32.mrb[17].mxu0 }
 0x6ae   : > { %v5920_v53 = vmul.f32 %v14714_v15, %v5820_v28 }
 0x6af   : > { %v14724_v46 = vadd.f32 %v14719_v12, %v5921_v50 }
 0x6b0   : > { %v14727_v43 = vadd.f32 %v14719_v12, %v5920_v53  ;;  %v10550_v9 = vpop.f32.mrb[18].mxu0 }
 0x6b1   : > { %v5958_v31 = vmin.f32 %v14724_v46, 30.0  ;;  %v5923_v40 = vmul.f32 %v10550_v9, %v14714_v15  ;;  %v5830_v25 = vpop.f32.mrb[19].mxu0 }
 0x6b2   : > { %v5957_v11 = vmin.f32 %v14727_v43, 30.0  ;;  %v5922_v7 = vmul.f32 %v14714_v15, %v5830_v25 }
 0x6b3   : > { %v5975_v52 = vmul.f32 1.442695, %v5958_v31  ;;  %v14734_v51 = vadd.f32 %v14719_v12, %v5923_v40 }
 0x6b4   : > { %v5973_v42 = vmul.f32 1.442695, %v5957_v11  ;;  %v14737_v29 = vadd.f32 %v14719_v12, %v5922_v7  ;;  %v10553_v36 = vpop.f32.mrb[20].mxu0 }
 0x6b5   : > { %12829 = vpow2.f32 %v5975_v52  ;;  %v5960_v30 = vmin.f32 %v14734_v51, 30.0  ;;  %v5925_v6 = vmul.f32 %v10553_v36, %v14714_v15  ;;  %v5840_v38 = vpop.f32.mrb[21].mxu0 }
 0x6b6   : > { %12831 = vpow2.f32 %v5973_v42  ;;  %v5959_v8 = vmin.f32 %v14737_v29, 30.0  ;;  %v5924_v55 = vmul.f32 %v14714_v15, %v5840_v38 }
 0x6b7   : > { %v5979_v3 = vmul.f32 1.442695, %v5960_v30  ;;  %v14744_v4 = vadd.f32 %v14719_v12, %v5925_v6 }
 0x6b8   : > { %v5977_v48 = vmul.f32 1.442695, %v5959_v8  ;;  %v14747_v22 = vadd.f32 %v14719_v12, %v5924_v55  ;;  %v10556_v62 = vpop.f32.mrb[22].mxu0 }
 0x6b9   : > { %12833 = vpow2.f32 %v5979_v3  ;;  %v5962_v47 = vmin.f32 %v14744_v4, 30.0  ;;  %v5927_v27 = vmul.f32 %v10556_v62, %v14714_v15  ;;  %v5850_v39 = vpop.f32.mrb[23].mxu0 }
 0x6ba   : > { %12835 = vpow2.f32 %v5977_v48  ;;  %v5961_v1 = vmin.f32 %v14747_v22, 30.0  ;;  %v5926_v49 = vmul.f32 %v14714_v15, %v5850_v39 }
 0x6bb   : > { %v5983_v34 = vmul.f32 1.442695, %v5962_v47  ;;  %v14754_v45 = vadd.f32 %v14719_v12, %v5927_v27 }
 0x6bc   : > { %v5981_v5 = vmul.f32 1.442695, %v5961_v1  ;;  %v14757_v56 = vadd.f32 %v14719_v12, %v5926_v49  ;;  %v10559_v59 = vpop.f32.mrb[24].mxu0 }
 0x6bd   : > { %12837 = vpow2.f32 %v5983_v34  ;;  %v5964_v60 = vmin.f32 %v14754_v45, 30.0  ;;  %v5929_v63 = vmul.f32 %v10559_v59, %v14714_v15  ;;  %v5860_v23 = vpop.f32.mrb[25].mxu0 }
 0x6be   : > { %12839 = vpow2.f32 %v5981_v5  ;;  %v5963_v57 = vmin.f32 %v14757_v56, 30.0  ;;  %v5928_v37 = vmul.f32 %v14714_v15, %v5860_v23 }
 0x6bf   : > { %v12830_v20 = vpop.eup %12829  ;;  %v5987_v54 = vmul.f32 1.442695, %v5964_v60  ;;  %v14764_v14 = vadd.f32 %v14719_v12, %v5929_v63 }
 0x6c0   : > { %v12832_v58 = vpop.eup %12831  ;;  %v6006_v16 = vadd.f32 2.0, %v12830_v20  ;;  %v5985_v0 = vmul.f32 1.442695, %v5963_v57  ;;  %v14767_v10 = vadd.f32 %v14719_v12, %v5928_v37  ;;  %v10562_v19 = vpop.f32.mrb[26].mxu0 }
 0x6c1   : > { %v6005_v13 = vadd.f32 2.0, %v12832_v58  ;;  %12841 = vpow2.f32 %v5987_v54  ;;  %v5966_v21 = vmin.f32 %v14764_v14, 30.0  ;;  %v5931_v35 = vmul.f32 %v10562_v19, %v14714_v15  ;;  %v5870_v2 = vpop.f32.mrb[27].mxu0 }
 0x6c2   : > { %v14771_v50 = vmul.f32 %v12830_v20, %v6006_v16  ;;  %12843 = vpow2.f32 %v5985_v0  ;;  %v5965_v28 = vmin.f32 %v14767_v10, 30.0  ;;  %v5930_v53 = vmul.f32 %v14714_v15, %v5870_v2 }
 0x6c3   : > { %v12834_v9 = vpop.eup %12833  ;;  %v14775_v31 = vmul.f32 %v12832_v58, %v6005_v13  ;;  %v5991_v40 = vmul.f32 1.442695, %v5966_v21  ;;  %v14778_v25 = vadd.f32 %v14719_v12, %v5931_v35 }
 0x6c4   : > { %v12836_v11 = vpop.eup %12835  ;;  %v6038_v7 = vadd.f32 2.0, %v14771_v50  ;;  %v6008_v52 = vadd.f32 2.0, %v12834_v9  ;;  %v5989_v42 = vmul.f32 1.442695, %v5965_v28  ;;  %v14782_v36 = vadd.f32 %v14719_v12, %v5930_v53  ;;  %v10565_v30 = vpop.f32.mrb[28].mxu0 }
 0x6c5   : > { %v6037_v6 = vadd.f32 2.0, %v14775_v31  ;;  %v6007_v38 = vadd.f32 2.0, %v12836_v11  ;;  %12845 = vpow2.f32 %v5991_v40  ;;  %v5968_v8 = vmin.f32 %v14778_v25, 30.0  ;;  %v5880_v55 = vpop.f32.mrb[29].mxu0 }
 0x6c6   : > { %12847 = vrcp.f32 %v6038_v7  ;;  %v14786_v3 = vmul.f32 %v12834_v9, %v6008_v52  ;;  %v5967_v48 = vmin.f32 %v14782_v36, 30.0  ;;  %v5933_v62 = vmul.f32 %v10565_v30, %v14714_v15 }
 0x6c7   : > { %v12838_v47 = vpop.eup %12837  ;;  %12849 = vrcp.f32 %v6037_v6  ;;  %v14790_v27 = vmul.f32 %v12836_v11, %v6007_v38  ;;  %v5995_v39 = vmul.f32 1.442695, %v5968_v8  ;;  %v5932_v1 = vmul.f32 %v14714_v15, %v5880_v55 }
 0x6c8   : > { %v12840_v49 = vpop.eup %12839  ;;  %v6040_v34 = vadd.f32 2.0, %v14786_v3  ;;  %v6010_v5 = vadd.f32 2.0, %v12838_v47  ;;  %12851 = vpow2.f32 %v5989_v42  ;;  %v5993_v59 = vmul.f32 1.442695, %v5967_v48  ;;  %v10568_v60 = vpop.f32.mrb[30].mxu0 }
 0x6c9   : > { %v6039_v63 = vadd.f32 2.0, %v14790_v27  ;;  %v6009_v23 = vadd.f32 2.0, %v12840_v49  ;;  %12853 = vpow2.f32 %v5995_v39  ;;  %v14796_v57 = vadd.f32 %v14719_v12, %v5933_v62  ;;  %v5890_v37 = vpop.f32.mrb[31].mxu0 }
 0x6ca   : > { %12855 = vrcp.f32 %v6040_v34  ;;  %v14798_v20 = vmul.f32 %v12838_v47, %v6010_v5  ;;  %v14801_v54 = vadd.f32 %v14719_v12, %v5932_v1  ;;  %v5935_v58 = vmul.f32 %v10568_v60, %v14714_v15 }
 0x6cb   : > { %v12842_v16 = vpop.eup %12841  ;;  %12857 = vrcp.f32 %v6039_v63  ;;  %v14804_v0 = vmul.f32 %v12840_v49, %v6009_v23  ;;  %v5970_v19 = vmin.f32 %v14796_v57, 30.0  ;;  %v5934_v13 = vmul.f32 %v14714_v15, %v5890_v37 }
 0x6cc   : > { %v12844_v21 = vpop.eup %12843  ;;  %v6042_v35 = vadd.f32 2.0, %v14798_v20  ;;  %v6012_v2 = vadd.f32 2.0, %v12842_v16  ;;  %12859 = vpow2.f32 %v5993_v59  ;;  %v5969_v28 = vmin.f32 %v14801_v54, 30.0 }
 0x6cd   : > { %v6041_v53 = vadd.f32 2.0, %v14804_v0  ;;  %v6011_v9 = vadd.f32 2.0, %v12844_v21  ;;  %v5999_v40 = vmul.f32 1.442695, %v5970_v19  ;;  %v14812_v11 = vadd.f32 %v14719_v12, %v5935_v58 }
 0x6ce   : > { %12861 = vrcp.f32 %v6042_v35  ;;  %v14814_v7 = vmul.f32 %v12842_v16, %v6012_v2  ;;  %v5997_v52 = vmul.f32 1.442695, %v5969_v28  ;;  %v14817_v15 = vadd.f32 %v14719_v12, %v5934_v13 }
 0x6cf   : > { %v12846_v42 = vpop.eup %12845  ;;  %12863 = vrcp.f32 %v6041_v53  ;;  %v14819_v30 = vmul.f32 %v12844_v21, %v6011_v9  ;;  %v5972_v6 = vmin.f32 %v14812_v11, 30.0 }
 0x6d0   : > { %v12848_v38 = vpop.eup %12847  ;;  %v6044_v8 = vadd.f32 2.0, %v14814_v7  ;;  %v6014_v55 = vadd.f32 2.0, %v12846_v42  ;;  %12865 = vpow2.f32 %v5999_v40  ;;  %v5971_v48 = vmin.f32 %v14817_v15, 30.0 }
 0x6d1   : > { %v12850_v62 = vpop.eup %12849  ;;  %v6056_v47 = vmul.f32 %v12848_v38, %v14771_v50  ;;  %v6043_v39 = vadd.f32 2.0, %v14819_v30  ;;  %12867 = vpow2.f32 %v5997_v52  ;;  %v6003_v12 = vmul.f32 1.442695, %v5972_v6  ;;  %v6140_v6 = vld [vmem:[#allocation13 + $0x18] sm:$0xff] }
 0x6d2   : > { %v12852_v1 = vpop.eup %12851  ;;  %v6054_v49 = vmul.f32 %v12850_v62, %v14775_v31  ;;  %12869 = vrcp.f32 %v6044_v8  ;;  %v14827_v34 = vmul.f32 %v12846_v42, %v6014_v55  ;;  %v6001_v5 = vmul.f32 1.442695, %v5971_v48  ;;  %v6139_v42 = vld [vmem:[#allocation13 + $0x10] sm:$0xff] }
 0x6d3   : > { %v12854_v59 = vpop.eup %12853  ;;  %v14830_v60 = vmul.f32 %v6056_v47, %v14724_v46  ;;  %12871 = vrcp.f32 %v6043_v39  ;;  %v6013_v63 = vadd.f32 2.0, %v12852_v1 }
 0x6d4   : > { %v12856_v23 = vpop.eup %12855  ;;  %v14833_v50 = vmul.f32 %v6054_v49, %v14727_v43  ;;  %v6046_v37 = vadd.f32 2.0, %v14827_v34  ;;  %v6016_v58 = vadd.f32 2.0, %v12854_v59  ;;  %12873 = vpow2.f32 %v6003_v12 }
 0x6d5   : > { %v12858_v16 = vpop.eup %12857  ;;  %6102 = vst [vmem:[#allocation3 + $0x21] sm:$0xff] %v14830_v60  ;;  %v6060_v31 = vmul.f32 %v12856_v23, %v14786_v3  ;;  %v14838_v19 = vmul.f32 %v12852_v1, %v6013_v63  ;;  %12875 = vpow2.f32 %v6001_v5  ;;  %v11829_v1 = vpack.c.bf16 %v6140_v6, %v6139_v42  ;;  %v6142_v63 = vld [vmem:[#allocation13 + $0x28] sm:$0xff] }
 0x6d6   : > { %v12860_v46 = vpop.eup %12859  ;;  %6101 = vst [vmem:[#allocation3 + $0x19] sm:$0xff] %v14833_v50  ;;  %v6058_v13 = vmul.f32 %v12858_v16, %v14790_v27  ;;  %12877 = vrcp.f32 %v6046_v37  ;;  %v14842_v43 = vmul.f32 %v12854_v59, %v6016_v58  ;;  %v6141_v59 = vld [vmem:[#allocation13 + $0x20] sm:$0xff] }
 0x6d7   : > { %v14845_v21 = vmul.f32 %v6060_v31, %v14734_v51  ;;  %v6045_v35 = vadd.f32 2.0, %v14838_v19  ;;  %v6015_v2 = vadd.f32 2.0, %v12860_v46 }
 0x6d8   : > { %v12862_v28 = vpop.eup %12861  ;;  %v14849_v3 = vmul.f32 %v6058_v13, %v14737_v29  ;;  %v6048_v53 = vadd.f32 2.0, %v14842_v43 }
 0x6d9   : > { %v12864_v9 = vpop.eup %12863  ;;  %6104 = vst [vmem:[#allocation3 + $0x39] sm:$0xff] %v14845_v21  ;;  %v6064_v27 = vmul.f32 %v12862_v28, %v14798_v20  ;;  %12879 = vrcp.f32 %v6045_v35  ;;  %v14854_v40 = vmul.f32 %v12860_v46, %v6015_v2 }
 0x6da   : > { %v12866_v52 = vpop.eup %12865  ;;  %6103 = vst [vmem:[#allocation3 + $0x31] sm:$0xff] %v14849_v3  ;;  %v6062_v51 = vmul.f32 %v12864_v9, %v14804_v0  ;;  %12881 = vrcp.f32 %v6048_v53  ;;  %v6144_v9 = vld [vmem:[#allocation13 + $0x38] sm:$0xff] }
 0x6db   : > { %v12868_v29 = vpop.eup %12867  ;;  %v14859_v38 = vmul.f32 %v6064_v27, %v14744_v4  ;;  %v6047_v8 = vadd.f32 2.0, %v14854_v40  ;;  %v6018_v55 = vadd.f32 2.0, %v12866_v52 }
 0x6dc   : > { %v12870_v48 = vpop.eup %12869  ;;  %v14863_v20 = vmul.f32 %v6062_v51, %v14747_v22  ;;  %v6017_v62 = vadd.f32 2.0, %v12868_v29 }
 0x6dd   : > { %v12872_v47 = vpop.eup %12871  ;;  %6106 = vst [vmem:[#allocation3 + $0x51] sm:$0xff] %v14859_v38  ;;  %v6068_v0 = vmul.f32 %v12870_v48, %v14814_v7  ;;  %12883 = vrcp.f32 %v6047_v8  ;;  %v14867_v39 = vmul.f32 %v12866_v52, %v6018_v55  ;;  %v14869_v12 = vld [vmem:[#allocation3 + $0x18] sm:$0xff]  ;;  %v14871_v4 = vld [vmem:[#allocation3 + $0x20] sm:$0xff] }
 0x6de   : > { %v12874_v49 = vpop.eup %12873  ;;  %6105 = vst [vmem:[#allocation3 + $0x49] sm:$0xff] %v14863_v20  ;;  %v6066_v22 = vmul.f32 %v12872_v47, %v14819_v30  ;;  %v14875_v5 = vmul.f32 %v12868_v29, %v6017_v62  ;;  %10601 = vmatprep.mubr.f32.mxu1 %v14869_v12 }
 0x6df   : > { %v12876_v7 = vpop.eup %12875  ;;  %v14879_v23 = vmul.f32 %v6068_v0, %v14754_v45  ;;  %v6050_v37 = vadd.f32 2.0, %v14867_v39  ;;  %v6020_v58 = vadd.f32 2.0, %v12874_v49  ;;  %10602 = vmatmul.mubr.f32.vlgmr.msra.gmra.mrb[16].mxu1 %v14871_v4  ;;  %v6146_v0 = vld [vmem:[#allocation13 + $0x48] sm:$0xff] }
 0x6e0   : > { %v12878_v16 = vpop.eup %12877  ;;  %v14884_v31 = vmul.f32 %v6066_v22, %v14757_v56  ;;  %v6049_v30 = vadd.f32 2.0, %v14875_v5  ;;  %v6019_v46 = vadd.f32 2.0, %v12876_v7  ;;  %11828 = vmatpush3.bf16.msra.mxu1 %v14704_v18  ;;  %v11833_v56 = vpack.c.bf16 %v6142_v63, %v6141_v59  ;;  %v14903_v18 = vld [vmem:[#allocation3 + $0x3a] sm:$0xff] }
 0x6e1   : > { %6108 = vst [vmem:[#allocation3 + $0x69] sm:$0xff] %v14879_v23  ;;  %v6072_v13 = vmul.f32 %v12878_v16, %v14827_v34  ;;  %12885 = vrcp.f32 %v6050_v37  ;;  %v14890_v45 = vmul.f32 %v12874_v49, %v6020_v58  ;;  %v14892_v35 = vld [vmem:[#allocation3 + $0x30] sm:$0xff]  ;;  %v14896_v28 = vld [vmem:[#allocation3 + $0x38] sm:$0xff]  ;;  %11830 = vmatprep.subr.bf16.mxu1 %v11829_v1 }
 0x6e2   : > { %v14894_v2 = vld [vmem:[#allocation3 + $0x32] sm:$0xff]  ;;  %6107 = vst [vmem:[#allocation3 + $0x61] sm:$0xff] %v14884_v31  ;;  %12887 = vrcp.f32 %v6049_v30  ;;  %v14899_v53 = vmul.f32 %v12876_v7, %v6019_v46  ;;  %10604 = vmatprep.mubr.f32.mxu1 %v14892_v35 }
 0x6e3   : > { %11049 = vmatprep.mubr.f32.mxu0 %v14894_v2  ;;  %v6143_v34 = vld [vmem:[#allocation13 + $0x30] sm:$0xff]  ;;  %v12880_v27 = vpop.eup %12879  ;;  %v14906_v52 = vmul.f32 %v6072_v13, %v14764_v14  ;;  %v6052_v51 = vadd.f32 2.0, %v14890_v45  ;;  %10605 = vmatmul.mubr.f32.gmra.mrb[18].mxu1 %v14896_v28  ;;  %v6148_v37 = vld [vmem:[#allocation13 + $0x58] sm:$0xff]  ;;  %v6149_v13 = vld [vmem:[#allocation13 + $0x60] sm:$0xff] }
 0x6e4   : > { %11050 = vmatmul.mubr.f32.vlgmr.msra.gmra.mrb[32].mxu0 %v14903_v18  ;;  %v12882_v42 = vpop.eup %12881  ;;  %v6070_v6 = vmul.f32 %v12880_v27, %v14838_v19  ;;  %v6051_v29 = vadd.f32 2.0, %v14899_v53  ;;  %11832 = vmatpush3.bf16.msra.mxu1 %v11829_v1  ;;  %v11837_v62 = vpack.c.bf16 %v6144_v9, %v6143_v34  ;;  %v14926_v19 = vld [vmem:[#allocation3 + $0x52] sm:$0xff] }
 0x6e5   : > { %6110 = vst [vmem:[#allocation3 + $0x81] sm:$0xff] %v14906_v52  ;;  %v6076_v8 = vmul.f32 %v12882_v42, %v14842_v43  ;;  %12889 = vrcp.f32 %v6052_v51  ;;  %v14915_v55 = vld [vmem:[#allocation3 + $0x48] sm:$0xff]  ;;  %v14919_v48 = vld [vmem:[#allocation3 + $0x50] sm:$0xff]  ;;  %11834 = vmatprep.subr.bf16.mxu1 %v11833_v56  ;;  %v6145_v43 = vld [vmem:[#allocation13 + $0x40] sm:$0xff] }
 0x6e6   : > { %v14917_v14 = vld [vmem:[#allocation3 + $0x4a] sm:$0xff]  ;;  %v14922_v47 = vmul.f32 %v6070_v6, %v14767_v10  ;;  %12891 = vrcp.f32 %v6051_v29  ;;  %10607 = vmatprep.mubr.f32.mxu1 %v14915_v55  ;;  %v11841_v63 = vpack.c.bf16 %v6146_v0, %v6145_v43  ;;  %v6152_v29 = vld [vmem:[#allocation13 + $0x78] sm:$0xff] }
 0x6e7   : > { %11052 = vmatprep.mubr.f32.mxu0 %v14917_v14  ;;  %v12884_v1 = vpop.eup %12883  ;;  %v14929_v49 = vmul.f32 %v6076_v8, %v14778_v25  ;;  %10608 = vmatmul.mubr.f32.gmra.mrb[20].mxu1 %v14919_v48  ;;  %v6147_v7 = vld [vmem:[#allocation13 + $0x50] sm:$0xff]  ;;  %v6462_v43 = vld [vmem:[#allocation13 + $0x308] sm:$0xff] }
 0x6e8   : > { %11053 = vmatmul.mubr.f32.gmra.mrb[34].mxu0 %v14926_v19  ;;  %6109 = vst [vmem:[#allocation3 + $0x79] sm:$0xff] %v14922_v47  ;;  %v6074_v10 = vmul.f32 %v12884_v1, %v14854_v40  ;;  %11836 = vmatpush3.bf16.msra.mxu1 %v11833_v56  ;;  %v11845_v46 = vpack.c.bf16 %v6148_v37, %v6147_v7  ;;  %v6150_v56 = vld [vmem:[#allocation13 + $0x68] sm:$0xff]  ;;  %v6151_v6 = vld [vmem:[#allocation13 + $0x70] sm:$0xff]  ;;  %v6464_v37 = vld [vmem:[#allocation13 + $0x318] sm:$0xff] }
 0x6e9   : > { %6112 = vst [vmem:[#allocation3 + $0x99] sm:$0xff] %v14929_v49  ;;  %v14936_v22 = vld [vmem:[#allocation3 + $0x60] sm:$0xff]  ;;  %v14938_v59 = vld [vmem:[#allocation3 + $0x68] sm:$0xff]  ;;  %11838 = vmatprep.subr.bf16.mxu1 %v11837_v62  ;;  %v6463_v7 = vld [vmem:[#allocation13 + $0x310] sm:$0xff] }
 0x6ea   : > { %v14941_v25 = vmul.f32 %v6074_v10, %v14782_v36  ;;  %10610 = vmatprep.mubr.f32.mxu1 %v14936_v22 }
 0x6eb   : > { %v12886_v58 = vpop.eup %12885  ;;  %10611 = vmatmul.mubr.f32.gmra.mrb[22].mxu1 %v14938_v59 }
 0x6ec   : > { %v12888_v40 = vpop.eup %12887  ;;  %6111 = vst [vmem:[#allocation3 + $0x91] sm:$0xff] %v14941_v25  ;;  %v6080_v16 = vmul.f32 %v12886_v58, %v14867_v39  ;;  %11840 = vmatpush3.bf16.msra.mxu1 %v11837_v62  ;;  %v14990_v58 = vld [vmem:[#allocation3] sm:$0xff] }
 0x6ed   : > { %v6078_v30 = vmul.f32 %v12888_v40, %v14875_v5  ;;  %11842 = vmatprep.subr.bf16.mxu1 %v11841_v63  ;;  %v11861_v40 = vpack.c.bf16 %v6464_v37, %v6463_v7  ;;  %v6659_v7 = vld [vmem:[#allocation13 + $0x80] sm:$0xff]  ;;  %v6660_v37 = vld [vmem:[#allocation13 + $0x88] sm:$0xff] }
 0x6ee   : > { %v14949_v36 = vmul.f32 %v6080_v16, %v14796_v57  ;;  %v6465_v16 = vld [vmem:[#allocation13 + $0x320] sm:$0xff] }
 0x6ef   : > { %v12890_v34 = vpop.eup %12889  ;;  %v14952_v9 = vmul.f32 %v6078_v30, %v14801_v54  ;;  %v14954_v27 = vld [vmem:[#allocation3 + $0x78] sm:$0xff]  ;;  %v14956_v51 = vld [vmem:[#allocation3 + $0x80] sm:$0xff]  ;;  %v11849_v54 = vpack.c.bf16 %v6150_v56, %v6149_v13  ;;  %v6466_v30 = vld [vmem:[#allocation13 + $0x328] sm:$0xff] }
 0x6f0   : > { %v12892_v42 = vpop.eup %12891  ;;  %6114 = vst [vmem:[#allocation3 + $0xb1] sm:$0xff] %v14949_v36  ;;  %v6084_v39 = vmul.f32 %v12890_v34, %v14890_v45  ;;  %10613 = vmatprep.mubr.f32.mxu1 %v14954_v27  ;;  %11844 = vmatpush3.bf16.msra.mxu1 %v11841_v63  ;;  %v6467_v13 = vld [vmem:[#allocation13 + $0x330] sm:$0xff]  ;;  %v6468_v56 = vld [vmem:[#allocation13 + $0x338] sm:$0xff] }
 0x6f1   : > { %6113 = vst [vmem:[#allocation3 + $0xa9] sm:$0xff] %v14952_v9  ;;  %v6082_v57 = vmul.f32 %v12892_v42, %v14899_v53  ;;  %10614 = vmatmul.mubr.f32.gmra.mrb[24].mxu1 %v14956_v51  ;;  %11846 = vmatprep.subr.bf16.mxu1 %v11845_v46  ;;  %v6461_v53 = vld [vmem:[#allocation13 + $0x300] sm:$0xff]  ;;  %v11869_v34 = vpack.c.bf16 %v6468_v56, %v6467_v13  ;;  %v6664_v56 = vld [vmem:[#allocation13 + $0xa8] sm:$0xff] }
 0x6f2   : > { %v14965_v5 = vmul.f32 %v6084_v39, %v14812_v11  ;;  %v11853_v11 = vpack.c.bf16 %v6152_v29, %v6151_v6  ;;  %v11857_v1 = vpack.c.bf16 %v6462_v43, %v6461_v53  ;;  %v6469_v42 = vld [vmem:[#allocation13 + $0x340] sm:$0xff]  ;;  %v6470_v39 = vld [vmem:[#allocation13 + $0x348] sm:$0xff]  ;;  %v6475_v53 = vld [vmem:[#allocation13 + $0x370] sm:$0xff] }
 0x6f3   : > { %v14968_v8 = vmul.f32 %v6082_v57, %v14817_v15  ;;  %v14970_v45 = vld [vmem:[#allocation3 + $0x90] sm:$0xff]  ;;  %v14972_v62 = vld [vmem:[#allocation3 + $0x98] sm:$0xff]  ;;  %v6473_v6 = vld [vmem:[#allocation13 + $0x360] sm:$0xff] }
 0x6f4   : > { %6116 = vst [vmem:[#allocation3 + $0xc9] sm:$0xff] %v14965_v5  ;;  %10616 = vmatprep.mubr.f32.mxu1 %v14970_v45  ;;  %11848 = vmatpush3.bf16.msra.mxu1 %v11845_v46  ;;  %v11865_v46 = vpack.c.bf16 %v6466_v30, %v6465_v16  ;;  %v6471_v57 = vld [vmem:[#allocation13 + $0x350] sm:$0xff]  ;;  %v6474_v29 = vld [vmem:[#allocation13 + $0x368] sm:$0xff]  ;;  %v6476_v43 = vld [vmem:[#allocation13 + $0x378] sm:$0xff] }
 0x6f5   : > { %6115 = vst [vmem:[#allocation3 + $0xc1] sm:$0xff] %v14968_v8  ;;  %10617 = vmatmul.mubr.f32.gmra.mrb[26].mxu1 %v14972_v62  ;;  %11850 = vmatprep.subr.bf16.mxu1 %v11849_v54  ;;  %v6661_v16 = vld [vmem:[#allocation13 + $0x90] sm:$0xff]  ;;  %v6662_v30 = vld [vmem:[#allocation13 + $0x98] sm:$0xff]  ;;  %v6663_v13 = vld [vmem:[#allocation13 + $0xa0] sm:$0xff] }
 0x6f8   : > { %v14978_v0 = vld [vmem:[#allocation3 + $0xa8] sm:$0xff]  ;;  %v14980_v15 = vld [vmem:[#allocation3 + $0xb0] sm:$0xff]  ;;  %11852 = vmatpush3.bf16.msra.mxu1 %v11849_v54  ;;  %v6472_v54 = vld [vmem:[#allocation13 + $0x358] sm:$0xff] }
 0x6f9   : > { %10619 = vmatprep.mubr.f32.mxu1 %v14978_v0  ;;  %11854 = vmatprep.subr.bf16.mxu1 %v11853_v11 }
 0x6fa   : > { %10620 = vmatmul.mubr.f32.gmra.mrb[28].mxu1 %v14980_v15 }
 0x6fc   : > { %v14984_v10 = vld [vmem:[#allocation3 + $0xc0] sm:$0xff]  ;;  %v14986_v63 = vld [vmem:[#allocation3 + $0xc8] sm:$0xff]  ;;  %11856 = vmatpush3.bf16.msra.mxu1 %v11853_v11  ;;  %v11881_v11 = vpack.c.bf16 %v6474_v29, %v6473_v6  ;;  %v6674_v6 = vld [vmem:[#allocation13 + $0xf8] sm:$0xff] }
 0x6fd   : > { %10622 = vmatprep.mubr.f32.mxu1 %v14984_v10  ;;  %11858 = vmatprep.subr.bf16.mxu1 %v11857_v1  ;;  %v6838_v29 = vld [vmem:[#allocation13 + $0x208] sm:$0xff] }
 0x6fe   : > { %10623 = vmatmul.mubr.f32.gmra.mrb[30].mxu1 %v14986_v63 }
 0x6ff   : > { %10657 = vmatprep.mubr.f32.mxu1 %v14990_v58 }
 0x702   : > { %10658 = vmatmul.mubr.f32.vlgmr.msra.gmra.mrb[16].mxu1 %v14990_v58 }
 0x703   : > { %10660 = vmatprep.mubr.f32.mxu1 %v14869_v12  ;;  %11860 = vmatpush3.bf16.msra.mxu1 %v11857_v1  ;;  %v11873_v12 = vpack.c.bf16 %v6470_v39, %v6469_v42  ;;  %v11885_v1 = vpack.c.bf16 %v6476_v43, %v6475_v53  ;;  %v6665_v42 = vld [vmem:[#allocation13 + $0xb0] sm:$0xff]  ;;  %v6666_v39 = vld [vmem:[#allocation13 + $0xb8] sm:$0xff]  ;;  %v6841_v43 = vld [vmem:[#allocation13 + $0x220] sm:$0xff] }
 0x704   : > { %11862 = vmatprep.subr.bf16.mxu1 %v11861_v40  ;;  %v6840_v53 = vld [vmem:[#allocation13 + $0x218] sm:$0xff] }
 0x706   : > { %10661 = vmatmul.mubr.f32.gmra.mrb[18].mxu1 %v14871_v4  ;;  %v11877_v4 = vpack.c.bf16 %v6472_v54, %v6471_v57  ;;  %v6668_v57 = vld [vmem:[#allocation13 + $0xc8] sm:$0xff]  ;;  %v6670_v54 = vld [vmem:[#allocation13 + $0xd8] sm:$0xff] }
 0x707   : > { %10663 = vmatprep.mubr.f32.mxu1 %v14892_v35  ;;  %11864 = vmatpush3.bf16.msra.mxu1 %v11861_v40  ;;  %v11889_v40 = vpack.c.bf16 %v6660_v37, %v6659_v7  ;;  %v6843_v7 = vld [vmem:[#allocation13 + $0x230] sm:$0xff]  ;;  %v6844_v37 = vld [vmem:[#allocation13 + $0x238] sm:$0xff] }
 0x708   : > { %11866 = vmatprep.subr.bf16.mxu1 %v11865_v46 }
 0x70a   : > { %10664 = vmatmul.mubr.f32.gmra.mrb[20].mxu1 %v14896_v28 }
 0x70b   : > { %10666 = vmatprep.mubr.f32.mxu1 %v14915_v55  ;;  %11868 = vmatpush3.bf16.msra.mxu1 %v11865_v46  ;;  %v11893_v46 = vpack.c.bf16 %v6662_v30, %v6661_v16  ;;  %v6846_v16 = vld [vmem:[#allocation13 + $0x248] sm:$0xff] }
 0x70c   : > { %11870 = vmatprep.subr.bf16.mxu1 %v11869_v34 }
 0x70e   : > { %10667 = vmatmul.mubr.f32.gmra.mrb[22].mxu1 %v14919_v48 }
 0x70f   : > { %10669 = vmatprep.mubr.f32.mxu1 %v14936_v22  ;;  %11872 = vmatpush3.bf16.msra.mxu1 %v11869_v34  ;;  %v11897_v34 = vpack.c.bf16 %v6664_v56, %v6663_v13  ;;  %v6848_v13 = vld [vmem:[#allocation13 + $0x258] sm:$0xff] }
 0x710   : > { %11874 = vmatprep.subr.bf16.mxu1 %v11873_v12 }
 0x712   : > { %10670 = vmatmul.mubr.f32.gmra.mrb[24].mxu1 %v14938_v59 }
 0x713   : > { %10672 = vmatprep.mubr.f32.mxu1 %v14954_v27  ;;  %11876 = vmatpush3.bf16.msra.mxu1 %v11873_v12  ;;  %v6667_v12 = vld [vmem:[#allocation13 + $0xc0] sm:$0xff] }
 0x714   : > { %11878 = vmatprep.subr.bf16.mxu1 %v11877_v4 }
 0x716   : > { %10673 = vmatmul.mubr.f32.gmra.mrb[26].mxu1 %v14956_v51 }
 0x717   : > { %10675 = vmatprep.mubr.f32.mxu1 %v14970_v45  ;;  %11880 = vmatpush3.bf16.msra.mxu1 %v11877_v4  ;;  %v6672_v4 = vld [vmem:[#allocation13 + $0xe8] sm:$0xff] }
 0x718   : > { %11882 = vmatprep.subr.bf16.mxu1 %v11881_v11 }
 0x71a   : > { %10676 = vmatmul.mubr.f32.gmra.mrb[28].mxu1 %v14972_v62 }
 0x71b   : > { %10678 = vmatprep.mubr.f32.mxu1 %v14978_v0  ;;  %11884 = vmatpush3.bf16.msra.mxu1 %v11881_v11  ;;  %v6839_v11 = vld [vmem:[#allocation13 + $0x210] sm:$0xff] }
 0x71c   : > { %11886 = vmatprep.subr.bf16.mxu1 %v11885_v1 }
 0x71e   : > { %10679 = vmatmul.mubr.f32.gmra.mrb[30].mxu1 %v14980_v15 }
 0x71f   : > { %11888 = vmatpush3.bf16.msra.mxu1 %v11885_v1  ;;  %10713 = vmatprep.mubr.f32.mxu1 %v14892_v35  ;;  %v11901_v35 = vpack.c.bf16 %v6666_v39, %v6665_v42  ;;  %v6842_v1 = vld [vmem:[#allocation13 + $0x228] sm:$0xff] }
 0x720   : > { %11890 = vmatprep.subr.bf16.mxu1 %v11889_v40  ;;  %v6850_v42 = vld [vmem:[#allocation13 + $0x268] sm:$0xff] }
 0x722   : > { %10714 = vmatmul.mubr.f32.vlgmr.msra.gmra.mrb[16].mxu1 %v14896_v28  ;;  %v11905_v28 = vpack.c.bf16 %v6668_v57, %v6667_v12  ;;  %v6852_v12 = vld [vmem:[#allocation13 + $0x278] sm:$0xff] }
 0x723   : > { %10716 = vmatprep.mubr.f32.mxu1 %v14915_v55  ;;  %11892 = vmatpush3.bf16.msra.mxu1 %v11889_v40  ;;  %v6669_v55 = vld [vmem:[#allocation13 + $0xd0] sm:$0xff]  ;;  %v6845_v40 = vld [vmem:[#allocation13 + $0x240] sm:$0xff] }
 0x724   : > { %11894 = vmatprep.subr.bf16.mxu1 %v11893_v46  ;;  %v11937_v30 = vpack.c.bf16 %v6846_v16, %v6845_v40  ;;  %v7215_v16 = vld [vmem:[#allocation13 + $0x110] sm:$0xff] }
 0x726   : > { %10717 = vmatmul.mubr.f32.gmra.mrb[18].mxu1 %v14919_v48  ;;  %v11909_v48 = vpack.c.bf16 %v6670_v54, %v6669_v55  ;;  %v7016_v55 = vld [vmem:[#allocation13 + $0x388] sm:$0xff] }
 0x727   : > { %10719 = vmatprep.mubr.f32.mxu1 %v14936_v22  ;;  %11896 = vmatpush3.bf16.msra.mxu1 %v11893_v46  ;;  %v6671_v22 = vld [vmem:[#allocation13 + $0xe0] sm:$0xff]  ;;  %v6847_v46 = vld [vmem:[#allocation13 + $0x250] sm:$0xff] }
 0x728   : > { %11898 = vmatprep.subr.bf16.mxu1 %v11897_v34  ;;  %v11941_v56 = vpack.c.bf16 %v6848_v13, %v6847_v46  ;;  %v7217_v13 = vld [vmem:[#allocation13 + $0x120] sm:$0xff] }
 0x72a   : > { %10720 = vmatmul.mubr.f32.gmra.mrb[20].mxu1 %v14938_v59  ;;  %v11913_v59 = vpack.c.bf16 %v6672_v4, %v6671_v22  ;;  %v7018_v22 = vld [vmem:[#allocation13 + $0x398] sm:$0xff] }
 0x72b   : > { %10722 = vmatprep.mubr.f32.mxu1 %v14954_v27  ;;  %11900 = vmatpush3.bf16.msra.mxu1 %v11897_v34  ;;  %v6673_v27 = vld [vmem:[#allocation13 + $0xf0] sm:$0xff]  ;;  %v6849_v34 = vld [vmem:[#allocation13 + $0x260] sm:$0xff] }
 0x72c   : > { %11902 = vmatprep.subr.bf16.mxu1 %v11901_v35  ;;  %v11945_v39 = vpack.c.bf16 %v6850_v42, %v6849_v34  ;;  %v7219_v42 = vld [vmem:[#allocation13 + $0x130] sm:$0xff] }
 0x72e   : > { %10723 = vmatmul.mubr.f32.gmra.mrb[22].mxu1 %v14956_v51  ;;  %v11917_v51 = vpack.c.bf16 %v6674_v6, %v6673_v27  ;;  %v7020_v27 = vld [vmem:[#allocation13 + $0x3a8] sm:$0xff] }
 0x72f   : > { %10725 = vmatprep.mubr.f32.mxu1 %v14970_v45  ;;  %11904 = vmatpush3.bf16.msra.mxu1 %v11901_v35  ;;  %v6837_v45 = vld [vmem:[#allocation13 + $0x200] sm:$0xff]  ;;  %v6851_v35 = vld [vmem:[#allocation13 + $0x270] sm:$0xff] }
 0x730   : > { %11906 = vmatprep.subr.bf16.mxu1 %v11905_v28  ;;  %v11949_v57 = vpack.c.bf16 %v6852_v12, %v6851_v35  ;;  %v7221_v35 = vld [vmem:[#allocation13 + $0x140] sm:$0xff]  ;;  %v7222_v12 = vld [vmem:[#allocation13 + $0x148] sm:$0xff] }
 0x732   : > { %10726 = vmatmul.mubr.f32.gmra.mrb[24].mxu1 %v14972_v62  ;;  %v6638_v62 = vld [vmem:[#allocation3 + $0x1] sm:$0xff] }
 0x733   : > { %10728 = vmatprep.mubr.f32.mxu1 %v14978_v0  ;;  %11908 = vmatpush3.bf16.msra.mxu1 %v11905_v28  ;;  %v11921_v0 = vpack.c.bf16 %v6838_v29, %v6837_v45  ;;  %v7015_v28 = vld [vmem:[#allocation13 + $0x380] sm:$0xff]  ;;  %v7022_v45 = vld [vmem:[#allocation13 + $0x3b8] sm:$0xff] }
 0x734   : > { %11910 = vmatprep.subr.bf16.mxu1 %v11909_v48  ;;  %v11953_v54 = vpack.c.bf16 %v7016_v55, %v7015_v28  ;;  %v7023_v29 = vld [vmem:[#allocation13 + $0x3c0] sm:$0xff]  ;;  %v7226_v28 = vld [vmem:[#allocation13 + $0x168] sm:$0xff]  ;;  %v7228_v55 = vld [vmem:[#allocation13 + $0x178] sm:$0xff] }
 0x736   : > { %10729 = vmatmul.mubr.f32.gmra.mrb[26].mxu1 %v14980_v15  ;;  %v6639_v15 = vld [vmem:[#allocation3 + $0x9] sm:$0xff] }
 0x737   : > { %10731 = vmatprep.mubr.f32.mxu1 %v14984_v10  ;;  %11912 = vmatpush3.bf16.msra.mxu1 %v11909_v48  ;;  %v11925_v10 = vpack.c.bf16 %v6840_v53, %v6839_v11  ;;  %v7017_v48 = vld [vmem:[#allocation13 + $0x390] sm:$0xff]  ;;  %v7026_v11 = vld [vmem:[#allocation13 + $0x3d8] sm:$0xff] }
 0x738   : > { %11914 = vmatprep.subr.bf16.mxu1 %v11913_v59  ;;  %v11957_v4 = vpack.c.bf16 %v7018_v22, %v7017_v48  ;;  %v7392_v48 = vld [vmem:[#allocation13 + $0x288] sm:$0xff] }
 0x73a   : > { %10732 = vmatmul.mubr.f32.gmra.mrb[28].mxu1 %v14986_v63  ;;  %v11929_v63 = vpack.c.bf16 %v6842_v1, %v6841_v43  ;;  %v7029_v1 = vld [vmem:[#allocation13 + $0x3f0] sm:$0xff] }
 0x73b   : > { %11916 = vmatpush3.bf16.msra.mxu1 %v11913_v59  ;;  %10734 = vmatprep.mubr.f32.mxu1 %v14990_v58  ;;  %v7019_v59 = vld [vmem:[#allocation13 + $0x3a0] sm:$0xff] }
 0x73c   : > { %11918 = vmatprep.subr.bf16.mxu1 %v11917_v51  ;;  %v11961_v6 = vpack.c.bf16 %v7020_v27, %v7019_v59  ;;  %v7394_v59 = vld [vmem:[#allocation13 + $0x298] sm:$0xff]  ;;  %v7395_v27 = vld [vmem:[#allocation13 + $0x2a0] sm:$0xff] }
 0x73e   : > { %10735 = vmatmul.mubr.f32.gmra.mrb[30].mxu1 %v14990_v58  ;;  %v11933_v58 = vpack.c.bf16 %v6844_v37, %v6843_v7  ;;  %v7213_v37 = vld [vmem:[#allocation13 + $0x100] sm:$0xff] }
 0x73f   : > { %11920 = vmatpush3.bf16.msra.mxu1 %v11917_v51  ;;  %10769 = vmatprep.mubr.f32.mxu1 %v6638_v62  ;;  %v7021_v51 = vld [vmem:[#allocation13 + $0x3b0] sm:$0xff]  ;;  %v7024_v62 = vld [vmem:[#allocation13 + $0x3c8] sm:$0xff] }
 0x740   : > { %11922 = vmatprep.subr.bf16.mxu1 %v11921_v0 }
 0x742   : > { %10770 = vmatmul.mubr.f32.vlgmr.msra.gmra.mrb[16].mxu1 %v6639_v15  ;;  %v7027_v15 = vld [vmem:[#allocation13 + $0x3e0] sm:$0xff] }
 0x743   : > { %10772 = vmatprep.mubr.f32.mxu1 %v14833_v50  ;;  %11924 = vmatpush3.bf16.msra.mxu1 %v11921_v0  ;;  %v7025_v0 = vld [vmem:[#allocation13 + $0x3d0] sm:$0xff] }
 0x744   : > { %11926 = vmatprep.subr.bf16.mxu1 %v11925_v10  ;;  %v11973_v53 = vpack.c.bf16 %v7026_v11, %v7025_v0  ;;  %v7400_v0 = vld [vmem:[#allocation13 + $0x2c8] sm:$0xff] }
 0x746   : > { %10773 = vmatmul.mubr.f32.gmra.mrb[18].mxu1 %v14830_v60 }
 0x747   : > { %10775 = vmatprep.mubr.f32.mxu1 %v14849_v3  ;;  %11928 = vmatpush3.bf16.msra.mxu1 %v11925_v10  ;;  %v7028_v10 = vld [vmem:[#allocation13 + $0x3e8] sm:$0xff] }
 0x748   : > { %11930 = vmatprep.subr.bf16.mxu1 %v11929_v63  ;;  %v11977_v43 = vpack.c.bf16 %v7028_v10, %v7027_v15  ;;  %v7402_v15 = vld [vmem:[#allocation13 + $0x2d8] sm:$0xff]  ;;  %v15072_v10 = vld [vmem:[#allocation3 + $0x62] sm:$0xff] }
 0x74a   : > { %10776 = vmatmul.mubr.f32.gmra.mrb[20].mxu1 %v14845_v21 }
 0x74b   : > { %10778 = vmatprep.mubr.f32.mxu1 %v14863_v20  ;;  %11932 = vmatpush3.bf16.msra.mxu1 %v11929_v63  ;;  %v7030_v63 = vld [vmem:[#allocation13 + $0x3f8] sm:$0xff] }
 0x74c   : > { %11934 = vmatprep.subr.bf16.mxu1 %v11933_v58  ;;  %v11981_v7 = vpack.c.bf16 %v7030_v63, %v7029_v1  ;;  %v15075_v1 = vld [vmem:[#allocation3 + $0x6a] sm:$0xff]  ;;  %v7403_v63 = vld [vmem:[#allocation13 + $0x2e0] sm:$0xff] }
 0x74e   : > { %10779 = vmatmul.mubr.f32.gmra.mrb[22].mxu1 %v14859_v38 }
 0x74f   : > { %10781 = vmatprep.mubr.f32.mxu1 %v14884_v31  ;;  %11936 = vmatpush3.bf16.msra.mxu1 %v11933_v58  ;;  %v7214_v58 = vld [vmem:[#allocation13 + $0x108] sm:$0xff] }
 0x750   : > { %11938 = vmatprep.subr.bf16.mxu1 %v11937_v30  ;;  %v11985_v40 = vpack.c.bf16 %v7214_v58, %v7213_v37  ;;  %v7202_v37 = vld [vmem:[#allocation3 + $0x7a] sm:$0xff] }
 0x752   : > { %10782 = vmatmul.mubr.f32.gmra.mrb[24].mxu1 %v14879_v23 }
 0x753   : > { %10784 = vmatprep.mubr.f32.mxu1 %v14922_v47  ;;  %11940 = vmatpush3.bf16.msra.mxu1 %v11937_v30  ;;  %v7216_v30 = vld [vmem:[#allocation13 + $0x118] sm:$0xff] }
 0x754   : > { %11942 = vmatprep.subr.bf16.mxu1 %v11941_v56  ;;  %v11989_v46 = vpack.c.bf16 %v7216_v30, %v7215_v16  ;;  %v7405_v16 = vld [vmem:[#allocation13 + $0x2f0] sm:$0xff]  ;;  %v7406_v30 = vld [vmem:[#allocation13 + $0x2f8] sm:$0xff] }
 0x756   : > { %10785 = vmatmul.mubr.f32.gmra.mrb[26].mxu1 %v14906_v52 }
 0x757   : > { %10787 = vmatprep.mubr.f32.mxu1 %v14941_v25  ;;  %11944 = vmatpush3.bf16.msra.mxu1 %v11941_v56  ;;  %v7218_v56 = vld [vmem:[#allocation13 + $0x128] sm:$0xff] }
 0x758   : > { %11946 = vmatprep.subr.bf16.mxu1 %v11945_v39  ;;  %v11993_v34 = vpack.c.bf16 %v7218_v56, %v7217_v13 }
 0x75a   : > { %10788 = vmatmul.mubr.f32.gmra.mrb[28].mxu1 %v14929_v49 }
 0x75b   : > { %10790 = vmatprep.mubr.f32.mxu1 %v14952_v9  ;;  %11948 = vmatpush3.bf16.msra.mxu1 %v11945_v39  ;;  %v7220_v39 = vld [vmem:[#allocation13 + $0x138] sm:$0xff] }
 0x75c   : > { %11950 = vmatprep.subr.bf16.mxu1 %v11949_v57 }
 0x75e   : > { %10791 = vmatmul.mubr.f32.gmra.mrb[30].mxu1 %v14949_v36 }
 0x75f   : > { %11952 = vmatpush3.bf16.msra.mxu1 %v11949_v57  ;;  %10825 = vmatprep.mubr.f32.mxu1 %v14833_v50  ;;  %v11965_v50 = vpack.c.bf16 %v7022_v45, %v7021_v51  ;;  %v7224_v57 = vld [vmem:[#allocation13 + $0x158] sm:$0xff]  ;;  %v7195_v45 = vld [vmem:[#allocation3 + $0x22] sm:$0xff] }
 0x760   : > { %11954 = vmatprep.subr.bf16.mxu1 %v11953_v54  ;;  %v7194_v51 = vld [vmem:[#allocation3 + $0x1a] sm:$0xff] }
 0x762   : > { %10826 = vmatmul.mubr.f32.vlgmr.msra.gmra.mrb[16].mxu1 %v14830_v60  ;;  %v11969_v60 = vpack.c.bf16 %v7024_v62, %v7023_v29  ;;  %v7398_v29 = vld [vmem:[#allocation13 + $0x2b8] sm:$0xff] }
 0x763   : > { %10828 = vmatprep.mubr.f32.mxu1 %v14849_v3  ;;  %11956 = vmatpush3.bf16.msra.mxu1 %v11953_v54  ;;  %v7391_v54 = vld [vmem:[#allocation13 + $0x280] sm:$0xff] }
 0x764   : > { %11958 = vmatprep.subr.bf16.mxu1 %v11957_v4  ;;  %v12017_v22 = vpack.c.bf16 %v7392_v48, %v7391_v54 }
 0x766   : > { %10829 = vmatmul.mubr.f32.gmra.mrb[18].mxu1 %v14845_v21 }
 0x767   : > { %10831 = vmatprep.mubr.f32.mxu1 %v14863_v20  ;;  %11960 = vmatpush3.bf16.msra.mxu1 %v11957_v4  ;;  %v7393_v4 = vld [vmem:[#allocation13 + $0x290] sm:$0xff] }
 0x768   : > { %11962 = vmatprep.subr.bf16.mxu1 %v11961_v6 }
 0x76a   : > { %10832 = vmatmul.mubr.f32.gmra.mrb[20].mxu1 %v14859_v38 }
 0x76b   : > { %10834 = vmatprep.mubr.f32.mxu1 %v14884_v31  ;;  %11964 = vmatpush3.bf16.msra.mxu1 %v11961_v6  ;;  %v7396_v6 = vld [vmem:[#allocation13 + $0x2a8] sm:$0xff] }
 0x76c   : > { %11966 = vmatprep.subr.bf16.mxu1 %v11965_v50 }
 0x76e   : > { %10835 = vmatmul.mubr.f32.gmra.mrb[22].mxu1 %v14879_v23 }
 0x76f   : > { %10837 = vmatprep.mubr.f32.mxu1 %v14922_v47  ;;  %11968 = vmatpush3.bf16.msra.mxu1 %v11965_v50  ;;  %v7397_v50 = vld [vmem:[#allocation13 + $0x2b0] sm:$0xff] }
 0x770   : > { %11970 = vmatprep.subr.bf16.mxu1 %v11969_v60  ;;  %v12029_v62 = vpack.c.bf16 %v7398_v29, %v7397_v50  ;;  %v12900_v50 = vld [vmem:[#allocation4 + $0x51] sm:$0xff] }
 0x772   : > { %10838 = vmatmul.mubr.f32.gmra.mrb[24].mxu1 %v14906_v52 }
 0x773   : > { %10840 = vmatprep.mubr.f32.mxu1 %v14941_v25  ;;  %11972 = vmatpush3.bf16.msra.mxu1 %v11969_v60  ;;  %v7399_v60 = vld [vmem:[#allocation13 + $0x2c0] sm:$0xff] }
 0x774   : > { %11974 = vmatprep.subr.bf16.mxu1 %v11973_v53  ;;  %v12033_v11 = vpack.c.bf16 %v7400_v0, %v7399_v60  ;;  %v12901_v0 = vld [vmem:[#allocation4 + $0x49] sm:$0xff] }
 0x776   : > { %10841 = vmatmul.mubr.f32.gmra.mrb[26].mxu1 %v14929_v49 }
 0x777   : > { %10843 = vmatprep.mubr.f32.mxu1 %v14952_v9  ;;  %11976 = vmatpush3.bf16.msra.mxu1 %v11973_v53  ;;  %v7401_v53 = vld [vmem:[#allocation13 + $0x2d0] sm:$0xff] }
 0x778   : > { %11978 = vmatprep.subr.bf16.mxu1 %v11977_v43 }
 0x77a   : > { %10844 = vmatmul.mubr.f32.gmra.mrb[28].mxu1 %v14949_v36 }
 0x77b   : > { %10846 = vmatprep.mubr.f32.mxu1 %v14968_v8  ;;  %11980 = vmatpush3.bf16.msra.mxu1 %v11977_v43  ;;  %v12037_v43 = vpack.c.bf16 %v7402_v15, %v7401_v53 }
 0x77c   : > { %11982 = vmatprep.subr.bf16.mxu1 %v11981_v7 }
 0x77e   : > { %10847 = vmatmul.mubr.f32.gmra.mrb[30].mxu1 %v14965_v5 }
 0x77f   : > { %11984 = vmatpush3.bf16.msra.mxu1 %v11981_v7  ;;  %10881 = vmatprep.mubr.f32.mxu1 %v14849_v3  ;;  %v11997_v3 = vpack.c.bf16 %v7220_v39, %v7219_v42  ;;  %v7404_v7 = vld [vmem:[#allocation13 + $0x2e8] sm:$0xff]  ;;  %v7205_v42 = vld [vmem:[#allocation3 + $0x9a] sm:$0xff] }
 0x780   : > { %11986 = vmatprep.subr.bf16.mxu1 %v11985_v40  ;;  %v12041_v58 = vpack.c.bf16 %v7404_v7, %v7403_v63  ;;  %v7206_v39 = vld [vmem:[#allocation3 + $0xaa] sm:$0xff] }
 0x782   : > { %10882 = vmatmul.mubr.f32.vlgmr.msra.gmra.mrb[16].mxu1 %v14845_v21  ;;  %v12001_v21 = vpack.c.bf16 %v7222_v12, %v7221_v35  ;;  %v7207_v12 = vld [vmem:[#allocation3 + $0xb2] sm:$0xff] }
 0x783   : > { %10884 = vmatprep.mubr.f32.mxu1 %v14863_v20  ;;  %11988 = vmatpush3.bf16.msra.mxu1 %v11985_v40  ;;  %v7223_v20 = vld [vmem:[#allocation13 + $0x150] sm:$0xff]  ;;  %v7203_v40 = vld [vmem:[#allocation3 + $0x82] sm:$0xff] }
 0x784   : > { %11990 = vmatprep.subr.bf16.mxu1 %v11989_v46 }
 0x786   : > { %10885 = vmatmul.mubr.f32.gmra.mrb[18].mxu1 %v14859_v38  ;;  %v12005_v38 = vpack.c.bf16 %v7224_v57, %v7223_v20 }
 0x787   : > { %10887 = vmatprep.mubr.f32.mxu1 %v14884_v31  ;;  %11992 = vmatpush3.bf16.msra.mxu1 %v11989_v46  ;;  %v7225_v31 = vld [vmem:[#allocation13 + $0x160] sm:$0xff]  ;;  %v7204_v46 = vld [vmem:[#allocation3 + $0x92] sm:$0xff] }
 0x788   : > { %11994 = vmatprep.subr.bf16.mxu1 %v11993_v34 }
 0x78a   : > { %10888 = vmatmul.mubr.f32.gmra.mrb[20].mxu1 %v14879_v23  ;;  %v12009_v23 = vpack.c.bf16 %v7226_v28, %v7225_v31 }
 0x78b   : > { %10890 = vmatprep.mubr.f32.mxu1 %v14922_v47  ;;  %11996 = vmatpush3.bf16.msra.mxu1 %v11993_v34  ;;  %v7227_v47 = vld [vmem:[#allocation13 + $0x170] sm:$0xff]  ;;  %v12045_v34 = vpack.c.bf16 %v7406_v30, %v7405_v16 }
 0x78c   : > { %11998 = vmatprep.subr.bf16.mxu1 %v11997_v3 }
 0x78e   : > { %10891 = vmatmul.mubr.f32.gmra.mrb[22].mxu1 %v14906_v52  ;;  %v6656_v52 = vld [vmem:[#allocation3 + $0xd9] sm:$0xff] }
 0x78f   : > { %10893 = vmatprep.mubr.f32.mxu1 %v14941_v25  ;;  %12000 = vmatpush3.bf16.msra.mxu1 %v11997_v3  ;;  %v12013_v25 = vpack.c.bf16 %v7228_v55, %v7227_v47 }
 0x790   : > { %12002 = vmatprep.subr.bf16.mxu1 %v12001_v21 }
 0x792   : > { %10894 = vmatmul.mubr.f32.gmra.mrb[24].mxu1 %v14929_v49  ;;  %v6657_v49 = vld [vmem:[#allocation3 + $0xe1] sm:$0xff] }
 0x793   : > { %10896 = vmatprep.mubr.f32.mxu1 %v14952_v9  ;;  %12004 = vmatpush3.bf16.msra.mxu1 %v12001_v21  ;;  %v7192_v9 = vld [vmem:[#allocation3 + $0x2] sm:$0xff] }
 0x794   : > { %12006 = vmatprep.subr.bf16.mxu1 %v12005_v38 }
 0x796   : > { %10897 = vmatmul.mubr.f32.gmra.mrb[26].mxu1 %v14949_v36  ;;  %v7193_v36 = vld [vmem:[#allocation3 + $0xa] sm:$0xff] }
 0x797   : > { %10899 = vmatprep.mubr.f32.mxu1 %v14968_v8  ;;  %12008 = vmatpush3.bf16.msra.mxu1 %v12005_v38  ;;  %v12021_v8 = vpack.c.bf16 %v7394_v59, %v7393_v4  ;;  %v12899_v4 = vld [vmem:[#allocation4 + $0x31] sm:$0xff] }
 0x798   : > { %12010 = vmatprep.subr.bf16.mxu1 %v12009_v23 }
 0x79a   : > { %10900 = vmatmul.mubr.f32.gmra.mrb[28].mxu1 %v14965_v5  ;;  %v12025_v5 = vpack.c.bf16 %v7396_v6, %v7395_v27 }
 0x79b   : > { %12012 = vmatpush3.bf16.msra.mxu1 %v12009_v23  ;;  %10902 = vmatprep.mubr.f32.mxu1 %v6656_v52  ;;  %v12896_v23 = vld [vmem:[#allocation4 + $0x21] sm:$0xff]  ;;  %v12897_v52 = vld [vmem:[#allocation4 + $0x19] sm:$0xff] }
 0x79c   : > { %12014 = vmatprep.subr.bf16.mxu1 %v12013_v25 }
 0x79e   : > { %10903 = vmatmul.mubr.f32.gmra.mrb[30].mxu1 %v6657_v49 }
 0x79f   : > { %12016 = vmatpush3.bf16.msra.mxu1 %v12013_v25  ;;  %10937 = vmatprep.mubr.f32.mxu1 %v7192_v9  ;;  %v12898_v9 = vld [vmem:[#allocation4 + $0x39] sm:$0xff] }
 0x7a0   : > { %12018 = vmatprep.subr.bf16.mxu1 %v12017_v22 }
 0x7a2   : > { %10938 = vmatmul.mubr.f32.vlgmr.msra.gmra.mrb[16].mxu1 %v7193_v36 }
 0x7a3   : > { %10940 = vmatprep.mubr.f32.mxu1 %v7194_v51  ;;  %12020 = vmatpush3.bf16.msra.mxu1 %v12017_v22 }
 0x7a4   : > { %12022 = vmatprep.subr.bf16.mxu1 %v12021_v8 }
 0x7a6   : > { %10941 = vmatmul.mubr.f32.gmra.mrb[18].mxu1 %v7195_v45 }
 0x7a7   : > { %10943 = vmatprep.mubr.f32.mxu1 %v14894_v2  ;;  %12024 = vmatpush3.bf16.msra.mxu1 %v12021_v8 }
 0x7a8   : > { %12026 = vmatprep.subr.bf16.mxu1 %v12025_v5 }
 0x7aa   : > { %10944 = vmatmul.mubr.f32.gmra.mrb[20].mxu1 %v14903_v18 }
 0x7ab   : > { %10946 = vmatprep.mubr.f32.mxu1 %v14917_v14  ;;  %12028 = vmatpush3.bf16.msra.mxu1 %v12025_v5 }
 0x7ac   : > { %12030 = vmatprep.subr.bf16.mxu1 %v12029_v62 }
 0x7ae   : > { %10947 = vmatmul.mubr.f32.gmra.mrb[22].mxu1 %v14926_v19 }
 0x7af   : > { %10949 = vmatprep.mubr.f32.mxu1 %v15072_v10  ;;  %12032 = vmatpush3.bf16.msra.mxu1 %v12029_v62 }
 0x7b0   : > { %12034 = vmatprep.subr.bf16.mxu1 %v12033_v11 }
 0x7b2   : > { %10950 = vmatmul.mubr.f32.gmra.mrb[24].mxu1 %v15075_v1 }
 0x7b3   : > { %10952 = vmatprep.mubr.f32.mxu1 %v7202_v37  ;;  %12036 = vmatpush3.bf16.msra.mxu1 %v12033_v11 }
 0x7b4   : > { %12038 = vmatprep.subr.bf16.mxu1 %v12037_v43 }
 0x7b6   : > { %10953 = vmatmul.mubr.f32.gmra.mrb[26].mxu1 %v7203_v40 }
 0x7b7   : > { %v15078_v13 = vpop.f32.mrb[32].mxu0  ;;  %10955 = vmatprep.mubr.f32.mxu1 %v7204_v46  ;;  %12040 = vmatpush3.bf16.msra.mxu1 %v12037_v43 }
 0x7b8   : > { %v15080_v56 = vpop.f32.mrb[33].mxu0  ;;  %12042 = vmatprep.subr.bf16.mxu1 %v12041_v58 }
 0x7ba   : > { %10956 = vmatmul.mubr.f32.gmra.mrb[28].mxu1 %v7205_v42 }
 0x7bb   : > { %v15082_v3 = vpop.f32.mrb[34].mxu0  ;;  %10958 = vmatprep.mubr.f32.mxu1 %v7206_v39  ;;  %12044 = vmatpush3.bf16.msra.mxu1 %v12041_v58  ;;  %v12903_v58 = vld [vmem:[#allocation4 + $0x61] sm:$0xff] }
 0x7bc   : > { %v15084_v35 = vpop.f32.mrb[35].mxu0  ;;  %12046 = vmatprep.subr.bf16.mxu1 %v12045_v34 }
 0x7be   : > { %10959 = vmatmul.mubr.f32.gmra.mrb[30].mxu1 %v7207_v12 }
 0x7bf   : > { %12048 = vmatpush3.bf16.msra.mxu1 %v12045_v34  ;;  %10993 = vmatprep.mubr.f32.mxu1 %v7194_v51 }
 0x7c0   : > { %12081 = vmatprep.subr.bf16.mxu1 %v14676_v44 }
 0x7c2   : > { %10994 = vmatmul.mubr.f32.vlgmr.msra.gmra.mrb[16].mxu1 %v7195_v45 }
 0x7c3   : > { %10996 = vmatprep.mubr.f32.mxu1 %v14894_v2  ;;  %12089 = vmatpush3.bf16.msra.mxu1 %v14676_v44  ;;  %v7208_v44 = vld [vmem:[#allocation3 + $0xc2] sm:$0xff]  ;;  %v15119_v2 = vld [vmem:[%s15235_s8 + $0x1] ss:$0 sm:$0xff] }
 0x7c4   : > { %12082 = vmatprep.subr.bf16.mxu1 %v14680_v33 }
 0x7c6   : > { %10997 = vmatmul.mubr.f32.gmra.mrb[18].mxu1 %v14903_v18 }
 0x7c7   : > { %10999 = vmatprep.mubr.f32.mxu1 %v14917_v14  ;;  %12090 = vmatpush3.bf16.msra.mxu1 %v14680_v33  ;;  %v7209_v33 = vld [vmem:[#allocation3 + $0xca] sm:$0xff] }
 0x7c8   : > { %12083 = vmatprep.subr.bf16.mxu1 %v14684_v61 }
 0x7ca   : > { %11000 = vmatmul.mubr.f32.gmra.mrb[20].mxu1 %v14926_v19 }
 0x7cb   : > { %11002 = vmatprep.mubr.f32.mxu1 %v15072_v10  ;;  %12091 = vmatpush3.bf16.msra.mxu1 %v14684_v61  ;;  %v7210_v61 = vld [vmem:[#allocation3 + $0xda] sm:$0xff] }
 0x7cc   : > { %12084 = vmatprep.subr.bf16.mxu1 %v14688_v41 }
 0x7ce   : > { %11003 = vmatmul.mubr.f32.gmra.mrb[22].mxu1 %v15075_v1 }
 0x7cf   : > { %11005 = vmatprep.mubr.f32.mxu1 %v7202_v37  ;;  %12092 = vmatpush3.bf16.msra.mxu1 %v14688_v41  ;;  %v7211_v41 = vld [vmem:[#allocation3 + $0xe2] sm:$0xff] }
 0x7d0   : > { %12085 = vmatprep.subr.bf16.mxu1 %v14692_v32 }
 0x7d2   : > { %11006 = vmatmul.mubr.f32.gmra.mrb[24].mxu1 %v7203_v40 }
 0x7d3   : > { %11008 = vmatprep.mubr.f32.mxu1 %v7204_v46  ;;  %12093 = vmatpush3.bf16.msra.mxu1 %v14692_v32 }
 0x7d4   : > { %12086 = vmatprep.subr.bf16.mxu1 %v14696_v17 }
 0x7d6   : > { %11009 = vmatmul.mubr.f32.gmra.mrb[26].mxu1 %v7205_v42 }
 0x7d7   : > { %11011 = vmatprep.mubr.f32.mxu1 %v7206_v39  ;;  %12094 = vmatpush3.bf16.msra.mxu1 %v14696_v17  ;;  %v15113_v17 = vld [vmem:[%s15235_s8] ss:$0 sm:$0xff] }
 0x7d8   : > { %12087 = vmatprep.subr.bf16.mxu1 %v14700_v26 }
 0x7da   : > { %11012 = vmatmul.mubr.f32.gmra.mrb[28].mxu1 %v7207_v12 }
 0x7db   : > { %11014 = vmatprep.mubr.f32.mxu1 %v7208_v44  ;;  %12095 = vmatpush3.bf16.msra.mxu1 %v14700_v26 }
 0x7dc   : > { %12088 = vmatprep.subr.bf16.mxu1 %v14706_v24 }
 0x7de   : > { %11015 = vmatmul.mubr.f32.gmra.mrb[30].mxu1 %v7209_v33 }
 0x7df   : > { %12096 = vmatpush3.bf16.msra.mxu1 %v14706_v24  ;;  %11055 = vmatprep.mubr.f32.mxu1 %v15072_v10 }
 0x7e2   : > { %11056 = vmatmul.mubr.f32.vlgmr.msra.gmra.mrb[20].mxu1 %v15075_v1  ;;  %v12902_v1 = vld [vmem:[#allocation4 + $0x69] sm:$0xff] }
 0x7e3   : > { %11058 = vmatprep.mubr.f32.mxu1 %v7202_v37 }
 0x7e6   : > { %11059 = vmatmul.mubr.f32.gmra.mrb[22].mxu1 %v7203_v40 }
 0x7e7   : > { %11061 = vmatprep.mubr.f32.mxu1 %v7204_v46 }
 0x7ea   : > { %11062 = vmatmul.mubr.f32.gmra.mrb[24].mxu1 %v7205_v42 }
 0x7eb   : > { %11064 = vmatprep.mubr.f32.mxu1 %v7206_v39 }
 0x7ee   : > { %11065 = vmatmul.mubr.f32.gmra.mrb[26].mxu1 %v7207_v12 }
 0x7ef   : > { %11067 = vmatprep.mubr.f32.mxu1 %v7208_v44 }
 0x7f2   : > { %11068 = vmatmul.mubr.f32.gmra.mrb[28].mxu1 %v7209_v33 }
 0x7f3   : > { %11070 = vmatprep.mubr.f32.mxu1 %v7210_v61 }
 0x7f6   : > { %11071 = vmatmul.mubr.f32.gmra.mrb[30].mxu1 %v7211_v41  ;;  %v12906_v41 = vld [vmem:[#allocation4 + $0x99] sm:$0xff] }
 0x895   : > { %v10995_v32 = vpop.f32.mrb[16].mxu1 }
 0x896   : > { %v12097_v26 = vadd.f32 %v15078_v13, %v10995_v32  ;;  %v7473_v24 = vpop.f32.mrb[17].mxu1 }
 0x897   : > { %v12098_v18 = vadd.f32 %v15080_v56, %v7473_v24  ;;  %v12904_v56 = vld [vmem:[#allocation4 + $0x81] sm:$0xff] }
 0x898   : > { %v7752_v14 = vmul.f32 %v12097_v26, %v15113_v17 }
 0x899   : > { %v7751_v19 = vmul.f32 %v12098_v18, %v15113_v17  ;;  %v10998_v21 = vpop.f32.mrb[18].mxu1  ;;  %v12907_v18 = vld [vmem:[#allocation4 + $0x91] sm:$0xff] }
 0x89a   : > { %v7773_v20 = vadd.f32 %v15119_v2, %v7752_v14  ;;  %v12099_v57 = vadd.f32 %v15082_v3, %v10998_v21  ;;  %v7483_v38 = vpop.f32.mrb[19].mxu1  ;;  %v12905_v3 = vld [vmem:[#allocation4 + $0x79] sm:$0xff] }
 0x89b   : > { %v7772_v31 = vadd.f32 %v15119_v2, %v7751_v19  ;;  %v12100_v28 = vadd.f32 %v15084_v35, %v7483_v38  ;;  %v12908_v38 = vld [vmem:[#allocation4 + $0xb1] sm:$0xff] }
 0x89c   : > { %v7789_v47 = vadd.f32 %v12896_v23, %v7773_v20  ;;  %v7754_v55 = vmul.f32 %v12099_v57, %v15113_v17 }
 0x89d   : > { %v7788_v25 = vadd.f32 %v12897_v52, %v7772_v31  ;;  %v7753_v54 = vmul.f32 %v12100_v28, %v15113_v17 }
 0x89e   : > { %7805 = vst [vmem:[%s15132_s26 + $0x8] sm:$0xff] %v7789_v47  ;;  %v7775_v48 = vadd.f32 %v15119_v2, %v7754_v55  ;;  %v12909_v47 = vld [vmem:[#allocation4 + $0xa9] sm:$0xff] }
 0x89f   : > { %7804 = vst [vmem:[%s15132_s26] sm:$0xff] %v7788_v25  ;;  %v7774_v49 = vadd.f32 %v15119_v2, %v7753_v54 }
 0x8a0   : > { %v7791_v22 = vadd.f32 %v12898_v9, %v7775_v48  ;;  %v12910_v48 = vld [vmem:[#allocation4 + $0xc9] sm:$0xff] }
 0x8a1   : > { %v7790_v59 = vadd.f32 %v12899_v4, %v7774_v49 }
 0x8a2   : > { %7807 = vst [vmem:[%s15132_s26 + $0x18] sm:$0xff] %v7791_v22 }
 0x8a3   : > { %7806 = vst [vmem:[%s15132_s26 + $0x10] sm:$0xff] %v7790_v59 }
 0x8b5   : > { %v11057_v36 = vpop.f32.mrb[20].mxu1 }
 0x8b6   : > { %v7756_v8 = vmul.f32 %v11057_v36, %v15113_v17  ;;  %v7671_v27 = vpop.f32.mrb[21].mxu1 }
 0x8b7   : > { %v7755_v6 = vmul.f32 %v15113_v17, %v7671_v27 }
 0x8b8   : > { %v7777_v51 = vadd.f32 %v15119_v2, %v7756_v8 }
 0x8b9   : > { %v7776_v5 = vadd.f32 %v15119_v2, %v7755_v6  ;;  %v11060_v45 = vpop.f32.mrb[22].mxu1 }
 0x8ba   : > { %v7793_v29 = vadd.f32 %v12900_v50, %v7777_v51  ;;  %v7758_v62 = vmul.f32 %v11060_v45, %v15113_v17  ;;  %v7681_v60 = vpop.f32.mrb[23].mxu1 }
 0x8bb   : > { %v7792_v11 = vadd.f32 %v12901_v0, %v7776_v5  ;;  %v7757_v53 = vmul.f32 %v15113_v17, %v7681_v60 }
 0x8bc   : > { %7809 = vst [vmem:[%s15132_s26 + $0x28] sm:$0xff] %v7793_v29  ;;  %v7779_v15 = vadd.f32 %v15119_v2, %v7758_v62 }
 0x8bd   : > { %7808 = vst [vmem:[%s15132_s26 + $0x20] sm:$0xff] %v7792_v11  ;;  %v7778_v10 = vadd.f32 %v15119_v2, %v7757_v53  ;;  %v11063_v43 = vpop.f32.mrb[24].mxu1 }
 0x8be   : > { %v7795_v63 = vadd.f32 %v12902_v1, %v7779_v15  ;;  %v7760_v7 = vmul.f32 %v11063_v43, %v15113_v17  ;;  %v7691_v37 = vpop.f32.mrb[25].mxu1 }
 0x8bf   : > { %v7794_v40 = vadd.f32 %v12903_v58, %v7778_v10  ;;  %v7759_v16 = vmul.f32 %v15113_v17, %v7691_v37 }
 0x8c0   : > { %7811 = vst [vmem:[%s15132_s26 + $0x38] sm:$0xff] %v7795_v63  ;;  %v7781_v30 = vadd.f32 %v15119_v2, %v7760_v7 }
 0x8c1   : > { %7810 = vst [vmem:[%s15132_s26 + $0x30] sm:$0xff] %v7794_v40  ;;  %v7780_v46 = vadd.f32 %v15119_v2, %v7759_v16  ;;  %v11066_v13 = vpop.f32.mrb[26].mxu1 }
 0x8c2   : > { %v7797_v34 = vadd.f32 %v12904_v56, %v7781_v30  ;;  %v7762_v42 = vmul.f32 %v11066_v13, %v15113_v17  ;;  %v7701_v39 = vpop.f32.mrb[27].mxu1 }
 0x8c3   : > { %v7796_v35 = vadd.f32 %v12905_v3, %v7780_v46  ;;  %v7761_v12 = vmul.f32 %v15113_v17, %v7701_v39 }
 0x8c4   : > { %7813 = vst [vmem:[%s15132_s26 + $0x48] sm:$0xff] %v7797_v34  ;;  %v7783_v44 = vadd.f32 %v15119_v2, %v7762_v42 }
 0x8c5   : > { %7812 = vst [vmem:[%s15132_s26 + $0x40] sm:$0xff] %v7796_v35  ;;  %v7782_v33 = vadd.f32 %v15119_v2, %v7761_v12  ;;  %v11069_v61 = vpop.f32.mrb[28].mxu1 }
 0x8c6   : > { %v7799_v32 = vadd.f32 %v12906_v41, %v7783_v44  ;;  %v7764_v26 = vmul.f32 %v11069_v61, %v15113_v17  ;;  %v7711_v24 = vpop.f32.mrb[29].mxu1 }
 0x8c7   : > { %v7798_v14 = vadd.f32 %v12907_v18, %v7782_v33  ;;  %v7763_v19 = vmul.f32 %v15113_v17, %v7711_v24 }
 0x8c8   : > { %7815 = vst [vmem:[%s15132_s26 + $0x58] sm:$0xff] %v7799_v32  ;;  %v7785_v21 = vadd.f32 %v15119_v2, %v7764_v26 }
 0x8c9   : > { %7814 = vst [vmem:[%s15132_s26 + $0x50] sm:$0xff] %v7798_v14  ;;  %v7784_v20 = vadd.f32 %v15119_v2, %v7763_v19  ;;  %v11072_v57 = vpop.f32.mrb[30].mxu1 }
 0x8ca   : > { %v7801_v31 = vadd.f32 %v12908_v38, %v7785_v21  ;;  %v7766_v28 = vmul.f32 %v11072_v57, %v15113_v17  ;;  %v7721_v23 = vpop.f32.mrb[31].mxu1 }
 0x8cb   : > { %v7800_v55 = vadd.f32 %v12909_v47, %v7784_v20  ;;  %v7765_v52 = vmul.f32 %v15113_v17, %v7721_v23  ;;  %v12911_v17 = vld [vmem:[#allocation4 + $0xc1] sm:$0xff] }
 0x8cc   : > { %7817 = vst [vmem:[%s15132_s26 + $0x68] sm:$0xff] %v7801_v31  ;;  %v7787_v25 = vadd.f32 %v15119_v2, %v7766_v28 }
 0x8cd   : > { %7816 = vst [vmem:[%s15132_s26 + $0x60] sm:$0xff] %v7800_v55  ;;  %v7786_v54 = vadd.f32 %v15119_v2, %v7765_v52 }
 0x8ce   : > { %v7803_v49 = vadd.f32 %v12910_v48, %v7787_v25 }
 0x8cf   : > { %v7802_v9 = vadd.f32 %v12911_v17, %v7786_v54 }
 0x8d0   : > { %7819 = vst [vmem:[%s15132_s26 + $0x78] sm:$0xff] %v7803_v49 }
 0x8d1   : > { %7818 = vst [vmem:[%s15132_s26 + $0x70] sm:$0xff] %v7802_v9 }
 0x8d2   : > { %13067 = shalt.err (!%p13064_p13)
}
 0x8d3   : > { %s13068_s15 = scalar_lea.hbm %s15179_s18, 2048  ;;  %s13072_s26 = scalar_lea.hbm %s15260_s29, 4096 }
 0x8d4   : > { %p13069_p9 = scmp.ne.s32.totalorder %s15179_s18, %s13068_s15  ;;  %p13073_p4 = scmp.lt.u32.totalorder %s15179_s18, %s15260_s29 }
 0x8d5   : > { %p13074_p8 = scmp.lt.u32.totalorder %s13072_s26, %s13068_s15  ;;  %p13076_p3 = scmp.lt.u32.totalorder %s13068_s15, %s15179_s18 }
 0x8d6   : > { %p13070_p0 = pnand %p13069_p9, %p13362_p10 }
 0x8d7   : > { %p13075_p6 = por %p13074_p8, %p13073_p4 }
 0x8d8   : > { %p13071_p11 = pneg %p13070_p0 }
 0x8d9   : > { %p13077_p5 = por %p13076_p3, %p13075_p6 }
 0x8db   : > { %p13078_p7 = pnand %p13077_p5, %p13071_p11 }
 0x8dd   : > { %13081 = shalt.err (!%p13078_p7)
}
 0x8de   : > { %s13139_s20 = smov 128   ;;  %s13140_s16 = smov 8  }
 0x8df   : > { %12627 = dma.vmem_to_hbm [thread:$0]  (%p13362_p10), %s15181_s19, 2048, %s15179_s18, %s7821_s13, %s13139_s20, %s13139_s20, %s13140_s16  }
 0x8e0 PF: > { %s15261_s23 = sld [smem:[#allocation19_spill]]  ;;  %s15262_s24 = sld [smem:[#allocation20_spill]] }
 0x8e1   : > { %p15264_p1 = scmp.ge.s32.totalorder %s13128_s12, 2 }
 0x8e6   : > { %s7849_s9 = sand.u32 1, %s15261_s23   ;;  %p15263_p12 = scmp.ne.s32.totalorder %s15262_s24, 0 }
 0x8e7   : > { %s7850_s15 = scalar_lea.sflag [#allocation7], %s7849_s9 }
 0x8e8   : > { %p12647_p2 = pnand %p15264_p1, %p15263_p12 }
 0x8ea   : > { %13111 = dma.done.wait (!%p12647_p2), %s7850_s15, 2048  }
 0x8eb   : > { %13113 = vsyncadd (!%p12647_p2), %s7850_s15, 4294965248  ;;  %p24_p13 = scmp.ge.s32.totalorder %s13352_s14, 4   ;;  %s15265_s30 = smov %s13120_s10 }
 0x8ec   : > { %s15266_s10 = smov %s13124_s11  ;;  %s15267_s11 = smov %s13368_s28 }
 0x8ed   : > { %s15268_s12 = smov %s13352_s14  ;;  %26 = sbr.rel (!%p24_p13) target bundleno = 9 (0x9), region = 155 }
 0x8f4   :  { %7855 = vsyncpa [#allocation6], 1 }
 0x8f5   :  { %7857 = vsyncpa [#allocation6 + $0x1], 1 }
 0x8f6   :  { %7858 = vsyncpa [#allocation9], 1 }
 0x8f7   :  { %7859 = vsyncpa [#allocation12], 1 }
 0x8f8   :  { %7860 = vsyncpa [#allocation7], 1 }
 0x8f9   :  { %7862 = vsyncpa [#allocation7 + $0x1], 1 }

</bundles_post_ra>
